<compile_context>
chip_gen: v5e
topology: v5e:2x2
jax: 0.10.0
libtpu: 0.0.40
codegen_flags: <defaults>
</compile_context>

<pallas_src>
import functools

import jax
import jax.numpy as jnp
from jax.experimental import pallas as pl
from jax.experimental.pallas import tpu as pltpu


# ---------------------------------------------------------------------------
# Pallas kernels
# ---------------------------------------------------------------------------
def gru_seq_kernel(x_ref, wih_ref, whh_ref, bih_ref, bhh_ref, out_ref,
                   gi_ref, h_ref, *, reverse, residual):
    """Full GRU layer over the sequence in a single kernel invocation.

    x_ref:   (T, B, D)   input sequence, ORIGINAL time order (VMEM)
    wih_ref: (D, 3H)     fused input->hidden weights, gate order (r, z, n)
    whh_ref: (H, 3H)     fused hidden->hidden weights
    bih_ref, bhh_ref: (1, 3H)
    out_ref: (T, B, H)   output sequence, ORIGINAL time order
    gi_ref:  (T, B, 3H)  VMEM scratch: hoisted input projections
    h_ref:   (B, H)      VMEM scratch: recurrent hidden state
    reverse:  process original time backwards (folds the sequence flip)
    residual: out[t] = x[t] + h_t (folds the residual add; requires D == H)
    """
    T, B, D = x_ref.shape
    H = whh_ref.shape[0]
    unroll = T <= 32

    wih = wih_ref[...]
    bih = bih_ref[...]
    whh = whh_ref[...]
    bhh = bhh_ref[...]

    # --- Prologue: hoist the fused input projection off the serial chain.
    #     The T projections are independent -> with unroll the scheduler
    #     overlaps them back-to-back on the MXU.
    def project(t, carry):
        gi_ref[t] = (jnp.dot(x_ref[t], wih,
                             preferred_element_type=jnp.float32) + bih)
        return carry

    jax.lax.fori_loop(0, T, project, 0, unroll=unroll)

    # --- Sequential recurrence: one (B,H)x(H,3H) dot per step.
    h_ref[...] = jnp.zeros_like(h_ref)

    def step(i, carry):
        t = (T - 1 - i) if reverse else i          # time flip folded into index
        gi = gi_ref[t]                              # (B, 3H)
        h = h_ref[...]                              # (B, H)
        gh = jnp.dot(h, whh, preferred_element_type=jnp.float32) + bhh
        r = jax.nn.sigmoid(gi[:, 0:H] + gh[:, 0:H])
        z = jax.nn.sigmoid(gi[:, H:2 * H] + gh[:, H:2 * H])
        n = jnp.tanh(gi[:, 2 * H:3 * H] + r * gh[:, 2 * H:3 * H])
        h_new = (1.0 - z) * n + z * h
        h_ref[...] = h_new
        if residual:
            out_ref[t] = x_ref[t] + h_new           # residual folded in
        else:
            out_ref[t] = h_new
        return carry

    jax.lax.fori_loop(0, T, step, 0, unroll=unroll)


def head_kernel(x_ref, w_ref, b_ref, o_ref):
    """Linear + log_softmax over the (padded) class axis for one row tile."""
    logits = jnp.dot(x_ref[...], w_ref[...],
                     preferred_element_type=jnp.float32) + b_ref[...]
    m = jnp.max(logits, axis=-1, keepdims=True)
    s = logits - m
    lse = jnp.log(jnp.sum(jnp.exp(s), axis=-1, keepdims=True))
    o_ref[...] = s - lse


# ---------------------------------------------------------------------------
# Wrappers
# ---------------------------------------------------------------------------
def gru_layer(x_tm, wih, whh, bih, bhh, *, reverse, residual):
    """x_tm: (T, B, D) time-major, original time order. Returns (T, B, H)."""
    T, B, D = x_tm.shape
    H = whh.shape[0]
    kernel = functools.partial(gru_seq_kernel, reverse=reverse, residual=residual)
    return pl.pallas_call(
        kernel,
        out_shape=jax.ShapeDtypeStruct((T, B, H), jnp.float32),
        grid=(1,),
        in_specs=[
            pl.BlockSpec((T, B, D), lambda i: (0, 0, 0)),
            pl.BlockSpec((D, 3 * H), lambda i: (0, 0)),
            pl.BlockSpec((H, 3 * H), lambda i: (0, 0)),
            pl.BlockSpec((1, 3 * H), lambda i: (0, 0)),
            pl.BlockSpec((1, 3 * H), lambda i: (0, 0)),
        ],
        out_specs=pl.BlockSpec((T, B, H), lambda i: (0, 0, 0)),
        scratch_shapes=[
            pltpu.VMEM((T, B, 3 * H), jnp.float32),   # hoisted projections
            pltpu.VMEM((B, H), jnp.float32),          # recurrent hidden state
        ],
        compiler_params=pltpu.CompilerParams(
            dimension_semantics=("arbitrary",)),
    )(x_tm, wih, whh, bih, bhh)


def head(x2d, w, b):
    """x2d: (N, H) -> log_softmax(x2d @ w + b) of shape (N, C)."""
    N, H = x2d.shape
    C = w.shape[-1]
    Cp = pl.cdiv(C, 128) * 128
    # Pad the class dim to a lane-dense 128 multiple; padded bias = -1e30 so
    # padded logits contribute exp(.) == 0 and the real-class log-softmax is
    # unchanged (padded output columns are sliced away below).
    w_p = jnp.pad(w, ((0, 0), (0, Cp - C)))
    b_p = jnp.pad(b, ((0, 0), (0, Cp - C)), constant_values=-1e30)
    tile_n = N if N <= 1024 else 512
    out = pl.pallas_call(
        head_kernel,
        out_shape=jax.ShapeDtypeStruct((N, Cp), jnp.float32),
        grid=(pl.cdiv(N, tile_n),),
        in_specs=[
            pl.BlockSpec((tile_n, H), lambda i: (i, 0)),
            pl.BlockSpec((H, Cp), lambda i: (0, 0)),
            pl.BlockSpec((1, Cp), lambda i: (0, 0)),
        ],
        out_specs=pl.BlockSpec((tile_n, Cp), lambda i: (i, 0)),
        compiler_params=pltpu.CompilerParams(
            dimension_semantics=("parallel",)),
    )(x2d, w_p, b_p)
    return out[:, :C]


def bigru_predicate_detection(x, layer_params, w_out, b_out):
    """x: (B, T, input_dim) batch-first.  Returns stacked (B, T, dim_out)."""
    depth = len(layer_params)
    x_tm = jnp.transpose(x, (1, 0, 2))                   # (T, B, D) time-major
    out = gru_layer(x_tm, *layer_params[0], reverse=False, residual=False)
    for l, params in enumerate(layer_params[1:], start=1):
        # Layer l of the bidirectional stack runs over the flipped sequence;
        # flip + residual are folded into the kernel, output stays in original
        # time order (processing direction alternates with layer parity).
        out = gru_layer(out, *params, reverse=(l % 2 == 1), residual=True)
    if depth % 2 == 1:
        # BiGRUForSRL applies one extra flip after the stack; with an odd
        # number of layers it survives in the returned ordering.
        out = out[::-1]
    out_bt = jnp.transpose(out, (1, 0, 2))               # (B, T, H)
    B, T, H = out_bt.shape
    logp = head(out_bt.reshape(B * T, H), w_out, b_out).reshape(B, T, -1)
    # The PyTorch module returns [logp[i] for i in range(B)]; per the perf
    # feedback we return the stacked array (build the list outside jit if the
    # list API is needed).
    return logp


# ---------------------------------------------------------------------------
# Pure-JAX reference (mirrors the PyTorch structure, incl. explicit flips)
# ---------------------------------------------------------------------------
def gru_layer_ref(x_tm, wih, whh, bih, bhh):
    T, B, D = x_tm.shape
    H = whh.shape[0]

    def step(h, x_t):
        gi = x_t @ wih + bih
        gh = h @ whh + bhh
        r = jax.nn.sigmoid(gi[:, :H] + gh[:, :H])
        z = jax.nn.sigmoid(gi[:, H:2 * H] + gh[:, H:2 * H])
        n = jnp.tanh(gi[:, 2 * H:] + r * gh[:, 2 * H:])
        h_new = (1.0 - z) * n + z * h
        return h_new, h_new

    _, ys = jax.lax.scan(step, jnp.zeros((B, H), jnp.float32), x_tm)
    return ys


def forward_ref(x, layer_params, w_out, b_out):
    x_tm = jnp.transpose(x, (1, 0, 2))
    out = gru_layer_ref(x_tm, *layer_params[0])
    for params in layer_params[1:]:
        flipped = out[::-1]
        out = flipped + gru_layer_ref(flipped, *params)
    out = out[::-1]
    out_bt = jnp.transpose(out, (1, 0, 2))
    logits = out_bt @ w_out + b_out[0]
    return jax.nn.log_softmax(logits, axis=-1)


# ---------------------------------------------------------------------------
# Parameter init (deterministic, PyTorch-style uniform(-1/sqrt(H), 1/sqrt(H)))
# Fused gate layout: (D, 3H) / (H, 3H) / (1, 3H), gate order (r, z, n).
# ---------------------------------------------------------------------------
def init_params(key, input_dim, dim_u, depth, dim_out):
    k = 1.0 / float(dim_u) ** 0.5
    layers = []
    d_in = input_dim
    for _ in range(depth):
        key, k0, k1, k2, k3 = jax.random.split(key, 5)
        wih = jax.random.uniform(k0, (d_in, 3 * dim_u), jnp.float32, -k, k)
        whh = jax.random.uniform(k1, (dim_u, 3 * dim_u), jnp.float32, -k, k)
        bih = jax.random.uniform(k2, (1, 3 * dim_u), jnp.float32, -k, k)
        bhh = jax.random.uniform(k3, (1, 3 * dim_u), jnp.float32, -k, k)
        layers.append((wih, whh, bih, bhh))
        d_in = dim_u
    key, ka, kb = jax.random.split(key, 3)
    w_out = jax.random.uniform(ka, (dim_u, dim_out), jnp.float32, -k, k)
    b_out = jax.random.uniform(kb, (1, dim_out), jnp.float32, -k, k)
    return layers, w_out, b_out


if __name__ == "__main__":
    B, T = 2, 8
    input_dim, dim_u, depth, dim_out = 16, 32, 2, 8

    key = jax.random.PRNGKey(0)
    key, kx, kp = jax.random.split(key, 3)
    x = jax.random.normal(kx, (B, T, input_dim), jnp.float32)
    layer_params, w_out, b_out = init_params(kp, input_dim, dim_u, depth, dim_out)

    fwd = jax.jit(bigru_predicate_detection)
    logp = jax.block_until_ready(fwd(x, layer_params, w_out, b_out))

    ref = forward_ref(x, layer_params, w_out, b_out)
    assert logp.shape == (B, T, dim_out)
    assert jnp.allclose(logp, ref, atol=1e-3, rtol=1e-3), "mismatch vs JAX reference"

    print("KERNEL_OK")
</pallas_src>

<mosaic_0001>
module attributes {stable_mosaic.version = 11 : i64} {
  func.func @gru_seq_kernel(%arg0: i32, %arg1: memref<8x2x16xf32, #tpu.memory_space<vmem>>, %arg2: memref<16x96xf32, #tpu.memory_space<vmem>>, %arg3: memref<32x96xf32, #tpu.memory_space<vmem>>, %arg4: memref<1x96xf32, #tpu.memory_space<vmem>>, %arg5: memref<1x96xf32, #tpu.memory_space<vmem>>, %arg6: memref<8x2x32xf32, #tpu.memory_space<vmem>>, %arg7: memref<8x2x96xf32, #tpu.memory_space<vmem>>, %arg8: memref<2x32xf32, #tpu.memory_space<vmem>>) attributes {dimension_semantics = [#tpu.dimension_semantics<arbitrary>], iteration_bounds = array<i64: 1>, scalar_prefetch = 0 : i64, scratch_operands = 2 : i64, tpu.core_type = #tpu.core_type<tc>, window_params = [{pipeline_mode = #tpu.pipeline_mode<synchronous>, transform_indices = @transform_0, window_bounds = array<i64: 8, 2, 16>}, {pipeline_mode = #tpu.pipeline_mode<synchronous>, transform_indices = @transform_1, window_bounds = array<i64: 16, 96>}, {pipeline_mode = #tpu.pipeline_mode<synchronous>, transform_indices = @transform_2, window_bounds = array<i64: 32, 96>}, {pipeline_mode = #tpu.pipeline_mode<synchronous>, transform_indices = @transform_3, window_bounds = array<i64: 1, 96>}, {pipeline_mode = #tpu.pipeline_mode<synchronous>, transform_indices = @transform_4, window_bounds = array<i64: 1, 96>}, {pipeline_mode = #tpu.pipeline_mode<synchronous>, transform_indices = @transform_5, window_bounds = array<i64: 8, 2, 32>}]} {
    %c0 = arith.constant 0 : index
    %c0_0 = arith.constant 0 : index
    %0 = vector.load %arg2[%c0, %c0_0] : memref<16x96xf32, #tpu.memory_space<vmem>>, vector<16x96xf32>
    %c0_1 = arith.constant 0 : index
    %c0_2 = arith.constant 0 : index
    %1 = vector.load %arg4[%c0_1, %c0_2] : memref<1x96xf32, #tpu.memory_space<vmem>>, vector<1x96xf32>
    %c0_3 = arith.constant 0 : index
    %c0_4 = arith.constant 0 : index
    %2 = vector.load %arg3[%c0_3, %c0_4] : memref<32x96xf32, #tpu.memory_space<vmem>>, vector<32x96xf32>
    %c0_5 = arith.constant 0 : index
    %c0_6 = arith.constant 0 : index
    %3 = vector.load %arg5[%c0_5, %c0_6] : memref<1x96xf32, #tpu.memory_space<vmem>>, vector<1x96xf32>
    %c0_i32 = arith.constant 0 : i32
    %4 = arith.index_cast %c0_i32 : i32 to index
    %c0_7 = arith.constant 0 : index
    %c0_8 = arith.constant 0 : index
    %5 = vector.load %arg1[%4, %c0_7, %c0_8] : memref<8x2x16xf32, #tpu.memory_space<vmem>>, vector<1x2x16xf32>
    %6 = vector.shape_cast %5 : vector<1x2x16xf32> to vector<2x16xf32>
    %cst = arith.constant dense<0.000000e+00> : vector<2x96xf32>
    %7 = tpu.matmul %6, %0, %cst {dimension_numbers = #tpu.dot_dimension_numbers<[1], [0], [0], [1], [0, 0, 1, 1], [], []>} : vector<2x16xf32>, vector<16x96xf32>, vector<2x96xf32> -> vector<2x96xf32>
    %8 = vector.broadcast %1 : vector<1x96xf32> to vector<2x96xf32>
    %9 = arith.addf %7, %8 : vector<2x96xf32>
    %10 = arith.index_cast %c0_i32 : i32 to index
    %c0_9 = arith.constant 0 : index
    %c0_10 = arith.constant 0 : index
    %11 = vector.load %arg7[%10, %c0_9, %c0_10] : memref<8x2x96xf32, #tpu.memory_space<vmem>>, vector<1x2x96xf32>
    %12 = vector.shape_cast %11 : vector<1x2x96xf32> to vector<2x96xf32>
    %13 = vector.shape_cast %9 : vector<2x96xf32> to vector<1x2x96xf32>
    tpu.vector_store %arg7[%10, %c0_9, %c0_10], %13 {strides = array<i32>} : memref<8x2x96xf32, #tpu.memory_space<vmem>>, vector<1x2x96xf32>,
    %c1_i32 = arith.constant 1 : i32
    %14 = arith.index_cast %c1_i32 : i32 to index
    %c0_11 = arith.constant 0 : index
    %c0_12 = arith.constant 0 : index
    %15 = vector.load %arg1[%14, %c0_11, %c0_12] : memref<8x2x16xf32, #tpu.memory_space<vmem>>, vector<1x2x16xf32>
    %16 = vector.shape_cast %15 : vector<1x2x16xf32> to vector<2x16xf32>
    %cst_13 = arith.constant dense<0.000000e+00> : vector<2x96xf32>
    %17 = tpu.matmul %16, %0, %cst_13 {dimension_numbers = #tpu.dot_dimension_numbers<[1], [0], [0], [1], [0, 0, 1, 1], [], []>} : vector<2x16xf32>, vector<16x96xf32>, vector<2x96xf32> -> vector<2x96xf32>
    %18 = vector.broadcast %1 : vector<1x96xf32> to vector<2x96xf32>
    %19 = arith.addf %17, %18 : vector<2x96xf32>
    %20 = arith.index_cast %c1_i32 : i32 to index
    %c0_14 = arith.constant 0 : index
    %c0_15 = arith.constant 0 : index
    %21 = vector.load %arg7[%20, %c0_14, %c0_15] : memref<8x2x96xf32, #tpu.memory_space<vmem>>, vector<1x2x96xf32>
    %22 = vector.shape_cast %21 : vector<1x2x96xf32> to vector<2x96xf32>
    %23 = vector.shape_cast %19 : vector<2x96xf32> to vector<1x2x96xf32>
    tpu.vector_store %arg7[%20, %c0_14, %c0_15], %23 {strides = array<i32>} : memref<8x2x96xf32, #tpu.memory_space<vmem>>, vector<1x2x96xf32>,
    %c2_i32 = arith.constant 2 : i32
    %24 = arith.index_cast %c2_i32 : i32 to index
    %c0_16 = arith.constant 0 : index
    %c0_17 = arith.constant 0 : index
    %25 = vector.load %arg1[%24, %c0_16, %c0_17] : memref<8x2x16xf32, #tpu.memory_space<vmem>>, vector<1x2x16xf32>
    %26 = vector.shape_cast %25 : vector<1x2x16xf32> to vector<2x16xf32>
    %cst_18 = arith.constant dense<0.000000e+00> : vector<2x96xf32>
    %27 = tpu.matmul %26, %0, %cst_18 {dimension_numbers = #tpu.dot_dimension_numbers<[1], [0], [0], [1], [0, 0, 1, 1], [], []>} : vector<2x16xf32>, vector<16x96xf32>, vector<2x96xf32> -> vector<2x96xf32>
    %28 = vector.broadcast %1 : vector<1x96xf32> to vector<2x96xf32>
    %29 = arith.addf %27, %28 : vector<2x96xf32>
    %30 = arith.index_cast %c2_i32 : i32 to index
    %c0_19 = arith.constant 0 : index
    %c0_20 = arith.constant 0 : index
    %31 = vector.load %arg7[%30, %c0_19, %c0_20] : memref<8x2x96xf32, #tpu.memory_space<vmem>>, vector<1x2x96xf32>
    %32 = vector.shape_cast %31 : vector<1x2x96xf32> to vector<2x96xf32>
    %33 = vector.shape_cast %29 : vector<2x96xf32> to vector<1x2x96xf32>
    tpu.vector_store %arg7[%30, %c0_19, %c0_20], %33 {strides = array<i32>} : memref<8x2x96xf32, #tpu.memory_space<vmem>>, vector<1x2x96xf32>,
    %c3_i32 = arith.constant 3 : i32
    %34 = arith.index_cast %c3_i32 : i32 to index
    %c0_21 = arith.constant 0 : index
    %c0_22 = arith.constant 0 : index
    %35 = vector.load %arg1[%34, %c0_21, %c0_22] : memref<8x2x16xf32, #tpu.memory_space<vmem>>, vector<1x2x16xf32>
    %36 = vector.shape_cast %35 : vector<1x2x16xf32> to vector<2x16xf32>
    %cst_23 = arith.constant dense<0.000000e+00> : vector<2x96xf32>
    %37 = tpu.matmul %36, %0, %cst_23 {dimension_numbers = #tpu.dot_dimension_numbers<[1], [0], [0], [1], [0, 0, 1, 1], [], []>} : vector<2x16xf32>, vector<16x96xf32>, vector<2x96xf32> -> vector<2x96xf32>
    %38 = vector.broadcast %1 : vector<1x96xf32> to vector<2x96xf32>
    %39 = arith.addf %37, %38 : vector<2x96xf32>
    %40 = arith.index_cast %c3_i32 : i32 to index
    %c0_24 = arith.constant 0 : index
    %c0_25 = arith.constant 0 : index
    %41 = vector.load %arg7[%40, %c0_24, %c0_25] : memref<8x2x96xf32, #tpu.memory_space<vmem>>, vector<1x2x96xf32>
    %42 = vector.shape_cast %41 : vector<1x2x96xf32> to vector<2x96xf32>
    %43 = vector.shape_cast %39 : vector<2x96xf32> to vector<1x2x96xf32>
    tpu.vector_store %arg7[%40, %c0_24, %c0_25], %43 {strides = array<i32>} : memref<8x2x96xf32, #tpu.memory_space<vmem>>, vector<1x2x96xf32>,
    %c4_i32 = arith.constant 4 : i32
    %44 = arith.index_cast %c4_i32 : i32 to index
    %c0_26 = arith.constant 0 : index
    %c0_27 = arith.constant 0 : index
    %45 = vector.load %arg1[%44, %c0_26, %c0_27] : memref<8x2x16xf32, #tpu.memory_space<vmem>>, vector<1x2x16xf32>
    %46 = vector.shape_cast %45 : vector<1x2x16xf32> to vector<2x16xf32>
    %cst_28 = arith.constant dense<0.000000e+00> : vector<2x96xf32>
    %47 = tpu.matmul %46, %0, %cst_28 {dimension_numbers = #tpu.dot_dimension_numbers<[1], [0], [0], [1], [0, 0, 1, 1], [], []>} : vector<2x16xf32>, vector<16x96xf32>, vector<2x96xf32> -> vector<2x96xf32>
    %48 = vector.broadcast %1 : vector<1x96xf32> to vector<2x96xf32>
    %49 = arith.addf %47, %48 : vector<2x96xf32>
    %50 = arith.index_cast %c4_i32 : i32 to index
    %c0_29 = arith.constant 0 : index
    %c0_30 = arith.constant 0 : index
    %51 = vector.load %arg7[%50, %c0_29, %c0_30] : memref<8x2x96xf32, #tpu.memory_space<vmem>>, vector<1x2x96xf32>
    %52 = vector.shape_cast %51 : vector<1x2x96xf32> to vector<2x96xf32>
    %53 = vector.shape_cast %49 : vector<2x96xf32> to vector<1x2x96xf32>
    tpu.vector_store %arg7[%50, %c0_29, %c0_30], %53 {strides = array<i32>} : memref<8x2x96xf32, #tpu.memory_space<vmem>>, vector<1x2x96xf32>,
    %c5_i32 = arith.constant 5 : i32
    %54 = arith.index_cast %c5_i32 : i32 to index
    %c0_31 = arith.constant 0 : index
    %c0_32 = arith.constant 0 : index
    %55 = vector.load %arg1[%54, %c0_31, %c0_32] : memref<8x2x16xf32, #tpu.memory_space<vmem>>, vector<1x2x16xf32>
    %56 = vector.shape_cast %55 : vector<1x2x16xf32> to vector<2x16xf32>
    %cst_33 = arith.constant dense<0.000000e+00> : vector<2x96xf32>
    %57 = tpu.matmul %56, %0, %cst_33 {dimension_numbers = #tpu.dot_dimension_numbers<[1], [0], [0], [1], [0, 0, 1, 1], [], []>} : vector<2x16xf32>, vector<16x96xf32>, vector<2x96xf32> -> vector<2x96xf32>
    %58 = vector.broadcast %1 : vector<1x96xf32> to vector<2x96xf32>
    %59 = arith.addf %57, %58 : vector<2x96xf32>
    %60 = arith.index_cast %c5_i32 : i32 to index
    %c0_34 = arith.constant 0 : index
    %c0_35 = arith.constant 0 : index
    %61 = vector.load %arg7[%60, %c0_34, %c0_35] : memref<8x2x96xf32, #tpu.memory_space<vmem>>, vector<1x2x96xf32>
    %62 = vector.shape_cast %61 : vector<1x2x96xf32> to vector<2x96xf32>
    %63 = vector.shape_cast %59 : vector<2x96xf32> to vector<1x2x96xf32>
    tpu.vector_store %arg7[%60, %c0_34, %c0_35], %63 {strides = array<i32>} : memref<8x2x96xf32, #tpu.memory_space<vmem>>, vector<1x2x96xf32>,
    %c6_i32 = arith.constant 6 : i32
    %64 = arith.index_cast %c6_i32 : i32 to index
    %c0_36 = arith.constant 0 : index
    %c0_37 = arith.constant 0 : index
    %65 = vector.load %arg1[%64, %c0_36, %c0_37] : memref<8x2x16xf32, #tpu.memory_space<vmem>>, vector<1x2x16xf32>
    %66 = vector.shape_cast %65 : vector<1x2x16xf32> to vector<2x16xf32>
    %cst_38 = arith.constant dense<0.000000e+00> : vector<2x96xf32>
    %67 = tpu.matmul %66, %0, %cst_38 {dimension_numbers = #tpu.dot_dimension_numbers<[1], [0], [0], [1], [0, 0, 1, 1], [], []>} : vector<2x16xf32>, vector<16x96xf32>, vector<2x96xf32> -> vector<2x96xf32>
    %68 = vector.broadcast %1 : vector<1x96xf32> to vector<2x96xf32>
    %69 = arith.addf %67, %68 : vector<2x96xf32>
    %70 = arith.index_cast %c6_i32 : i32 to index
    %c0_39 = arith.constant 0 : index
    %c0_40 = arith.constant 0 : index
    %71 = vector.load %arg7[%70, %c0_39, %c0_40] : memref<8x2x96xf32, #tpu.memory_space<vmem>>, vector<1x2x96xf32>
    %72 = vector.shape_cast %71 : vector<1x2x96xf32> to vector<2x96xf32>
    %73 = vector.shape_cast %69 : vector<2x96xf32> to vector<1x2x96xf32>
    tpu.vector_store %arg7[%70, %c0_39, %c0_40], %73 {strides = array<i32>} : memref<8x2x96xf32, #tpu.memory_space<vmem>>, vector<1x2x96xf32>,
    %c7_i32 = arith.constant 7 : i32
    %74 = arith.index_cast %c7_i32 : i32 to index
    %c0_41 = arith.constant 0 : index
    %c0_42 = arith.constant 0 : index
    %75 = vector.load %arg1[%74, %c0_41, %c0_42] : memref<8x2x16xf32, #tpu.memory_space<vmem>>, vector<1x2x16xf32>
    %76 = vector.shape_cast %75 : vector<1x2x16xf32> to vector<2x16xf32>
    %cst_43 = arith.constant dense<0.000000e+00> : vector<2x96xf32>
    %77 = tpu.matmul %76, %0, %cst_43 {dimension_numbers = #tpu.dot_dimension_numbers<[1], [0], [0], [1], [0, 0, 1, 1], [], []>} : vector<2x16xf32>, vector<16x96xf32>, vector<2x96xf32> -> vector<2x96xf32>
    %78 = vector.broadcast %1 : vector<1x96xf32> to vector<2x96xf32>
    %79 = arith.addf %77, %78 : vector<2x96xf32>
    %80 = arith.index_cast %c7_i32 : i32 to index
    %c0_44 = arith.constant 0 : index
    %c0_45 = arith.constant 0 : index
    %81 = vector.load %arg7[%80, %c0_44, %c0_45] : memref<8x2x96xf32, #tpu.memory_space<vmem>>, vector<1x2x96xf32>
    %82 = vector.shape_cast %81 : vector<1x2x96xf32> to vector<2x96xf32>
    %83 = vector.shape_cast %79 : vector<2x96xf32> to vector<1x2x96xf32>
    tpu.vector_store %arg7[%80, %c0_44, %c0_45], %83 {strides = array<i32>} : memref<8x2x96xf32, #tpu.memory_space<vmem>>, vector<1x2x96xf32>,
    %c8_i32 = arith.constant 8 : i32
    %cst_46 = arith.constant 0.000000e+00 : f32
    %84 = vector.broadcast %cst_46 : f32 to vector<2x32xf32>
    %c0_47 = arith.constant 0 : index
    %c0_48 = arith.constant 0 : index
    %85 = vector.load %arg8[%c0_47, %c0_48] : memref<2x32xf32, #tpu.memory_space<vmem>>, vector<2x32xf32>
    tpu.vector_store %arg8[%c0_47, %c0_48], %84 {strides = array<i32>} : memref<2x32xf32, #tpu.memory_space<vmem>>, vector<2x32xf32>,
    %c0_i32_49 = arith.constant 0 : i32
    %86 = arith.index_cast %c0_i32_49 : i32 to index
    %c0_50 = arith.constant 0 : index
    %c0_51 = arith.constant 0 : index
    %87 = vector.load %arg7[%86, %c0_50, %c0_51] : memref<8x2x96xf32, #tpu.memory_space<vmem>>, vector<1x2x96xf32>
    %88 = vector.shape_cast %87 : vector<1x2x96xf32> to vector<2x96xf32>
    %c0_52 = arith.constant 0 : index
    %c0_53 = arith.constant 0 : index
    %89 = vector.load %arg8[%c0_52, %c0_53] : memref<2x32xf32, #tpu.memory_space<vmem>>, vector<2x32xf32>
    %cst_54 = arith.constant dense<0.000000e+00> : vector<2x96xf32>
    %90 = tpu.matmul %89, %2, %cst_54 {dimension_numbers = #tpu.dot_dimension_numbers<[1], [0], [0], [1], [0, 0, 1, 1], [], []>} : vector<2x32xf32>, vector<32x96xf32>, vector<2x96xf32> -> vector<2x96xf32>
    %91 = vector.broadcast %3 : vector<1x96xf32> to vector<2x96xf32>
    %92 = arith.addf %90, %91 : vector<2x96xf32>
    %93 = vector.extract_strided_slice %88 {offsets = [0, 0], sizes = [2, 32], strides = [1, 1]} : vector<2x96xf32> to vector<2x32xf32>
    %94 = vector.extract_strided_slice %92 {offsets = [0, 0], sizes = [2, 32], strides = [1, 1]} : vector<2x96xf32> to vector<2x32xf32>
    %95 = arith.addf %93, %94 : vector<2x32xf32>
    %96 = arith.negf %95 : vector<2x32xf32>
    %97 = math.exp %96 : vector<2x32xf32>
    %cst_55 = arith.constant 1.000000e+00 : f32
    %98 = vector.broadcast %cst_55 : f32 to vector<2x32xf32>
    %99 = arith.addf %98, %97 : vector<2x32xf32>
    %100 = arith.divf %98, %99 : vector<2x32xf32>
    %101 = vector.extract_strided_slice %88 {offsets = [0, 32], sizes = [2, 32], strides = [1, 1]} : vector<2x96xf32> to vector<2x32xf32>
    %102 = vector.extract_strided_slice %92 {offsets = [0, 32], sizes = [2, 32], strides = [1, 1]} : vector<2x96xf32> to vector<2x32xf32>
    %103 = arith.addf %101, %102 : vector<2x32xf32>
    %104 = arith.negf %103 : vector<2x32xf32>
    %105 = math.exp %104 : vector<2x32xf32>
    %cst_56 = arith.constant 1.000000e+00 : f32
    %106 = vector.broadcast %cst_56 : f32 to vector<2x32xf32>
    %107 = arith.addf %106, %105 : vector<2x32xf32>
    %108 = arith.divf %106, %107 : vector<2x32xf32>
    %109 = vector.extract_strided_slice %88 {offsets = [0, 64], sizes = [2, 32], strides = [1, 1]} : vector<2x96xf32> to vector<2x32xf32>
    %110 = vector.extract_strided_slice %92 {offsets = [0, 64], sizes = [2, 32], strides = [1, 1]} : vector<2x96xf32> to vector<2x32xf32>
    %111 = arith.mulf %100, %110 : vector<2x32xf32>
    %112 = arith.addf %109, %111 : vector<2x32xf32>
    %113 = math.tanh %112 : vector<2x32xf32>
    %cst_57 = arith.constant 1.000000e+00 : f32
    %114 = vector.broadcast %cst_57 : f32 to vector<2x32xf32>
    %115 = arith.subf %114, %108 : vector<2x32xf32>
    %116 = arith.mulf %115, %113 : vector<2x32xf32>
    %117 = arith.mulf %108, %89 : vector<2x32xf32>
    %118 = arith.addf %116, %117 : vector<2x32xf32>
    %c0_58 = arith.constant 0 : index
    %c0_59 = arith.constant 0 : index
    %119 = vector.load %arg8[%c0_58, %c0_59] : memref<2x32xf32, #tpu.memory_space<vmem>>, vector<2x32xf32>
    tpu.vector_store %arg8[%c0_58, %c0_59], %118 {strides = array<i32>} : memref<2x32xf32, #tpu.memory_space<vmem>>, vector<2x32xf32>,
    %120 = arith.index_cast %c0_i32_49 : i32 to index
    %c0_60 = arith.constant 0 : index
    %c0_61 = arith.constant 0 : index
    %121 = vector.load %arg6[%120, %c0_60, %c0_61] : memref<8x2x32xf32, #tpu.memory_space<vmem>>, vector<1x2x32xf32>
    %122 = vector.shape_cast %121 : vector<1x2x32xf32> to vector<2x32xf32>
    %123 = vector.shape_cast %118 : vector<2x32xf32> to vector<1x2x32xf32>
    tpu.vector_store %arg6[%120, %c0_60, %c0_61], %123 {strides = array<i32>} : memref<8x2x32xf32, #tpu.memory_space<vmem>>, vector<1x2x32xf32>,
    %c1_i32_62 = arith.constant 1 : i32
    %124 = arith.index_cast %c1_i32_62 : i32 to index
    %c0_63 = arith.constant 0 : index
    %c0_64 = arith.constant 0 : index
    %125 = vector.load %arg7[%124, %c0_63, %c0_64] : memref<8x2x96xf32, #tpu.memory_space<vmem>>, vector<1x2x96xf32>
    %126 = vector.shape_cast %125 : vector<1x2x96xf32> to vector<2x96xf32>
    %c0_65 = arith.constant 0 : index
    %c0_66 = arith.constant 0 : index
    %127 = vector.load %arg8[%c0_65, %c0_66] : memref<2x32xf32, #tpu.memory_space<vmem>>, vector<2x32xf32>
    %cst_67 = arith.constant dense<0.000000e+00> : vector<2x96xf32>
    %128 = tpu.matmul %127, %2, %cst_67 {dimension_numbers = #tpu.dot_dimension_numbers<[1], [0], [0], [1], [0, 0, 1, 1], [], []>} : vector<2x32xf32>, vector<32x96xf32>, vector<2x96xf32> -> vector<2x96xf32>
    %129 = vector.broadcast %3 : vector<1x96xf32> to vector<2x96xf32>
    %130 = arith.addf %128, %129 : vector<2x96xf32>
    %131 = vector.extract_strided_slice %126 {offsets = [0, 0], sizes = [2, 32], strides = [1, 1]} : vector<2x96xf32> to vector<2x32xf32>
    %132 = vector.extract_strided_slice %130 {offsets = [0, 0], sizes = [2, 32], strides = [1, 1]} : vector<2x96xf32> to vector<2x32xf32>
    %133 = arith.addf %131, %132 : vector<2x32xf32>
    %134 = arith.negf %133 : vector<2x32xf32>
    %135 = math.exp %134 : vector<2x32xf32>
    %cst_68 = arith.constant 1.000000e+00 : f32
    %136 = vector.broadcast %cst_68 : f32 to vector<2x32xf32>
    %137 = arith.addf %136, %135 : vector<2x32xf32>
    %138 = arith.divf %136, %137 : vector<2x32xf32>
    %139 = vector.extract_strided_slice %126 {offsets = [0, 32], sizes = [2, 32], strides = [1, 1]} : vector<2x96xf32> to vector<2x32xf32>
    %140 = vector.extract_strided_slice %130 {offsets = [0, 32], sizes = [2, 32], strides = [1, 1]} : vector<2x96xf32> to vector<2x32xf32>
    %141 = arith.addf %139, %140 : vector<2x32xf32>
    %142 = arith.negf %141 : vector<2x32xf32>
    %143 = math.exp %142 : vector<2x32xf32>
    %cst_69 = arith.constant 1.000000e+00 : f32
    %144 = vector.broadcast %cst_69 : f32 to vector<2x32xf32>
    %145 = arith.addf %144, %143 : vector<2x32xf32>
    %146 = arith.divf %144, %145 : vector<2x32xf32>
    %147 = vector.extract_strided_slice %126 {offsets = [0, 64], sizes = [2, 32], strides = [1, 1]} : vector<2x96xf32> to vector<2x32xf32>
    %148 = vector.extract_strided_slice %130 {offsets = [0, 64], sizes = [2, 32], strides = [1, 1]} : vector<2x96xf32> to vector<2x32xf32>
    %149 = arith.mulf %138, %148 : vector<2x32xf32>
    %150 = arith.addf %147, %149 : vector<2x32xf32>
    %151 = math.tanh %150 : vector<2x32xf32>
    %cst_70 = arith.constant 1.000000e+00 : f32
    %152 = vector.broadcast %cst_70 : f32 to vector<2x32xf32>
    %153 = arith.subf %152, %146 : vector<2x32xf32>
    %154 = arith.mulf %153, %151 : vector<2x32xf32>
    %155 = arith.mulf %146, %127 : vector<2x32xf32>
    %156 = arith.addf %154, %155 : vector<2x32xf32>
    %c0_71 = arith.constant 0 : index
    %c0_72 = arith.constant 0 : index
    %157 = vector.load %arg8[%c0_71, %c0_72] : memref<2x32xf32, #tpu.memory_space<vmem>>, vector<2x32xf32>
    tpu.vector_store %arg8[%c0_71, %c0_72], %156 {strides = array<i32>} : memref<2x32xf32, #tpu.memory_space<vmem>>, vector<2x32xf32>,
    %158 = arith.index_cast %c1_i32_62 : i32 to index
    %c0_73 = arith.constant 0 : index
    %c0_74 = arith.constant 0 : index
    %159 = vector.load %arg6[%158, %c0_73, %c0_74] : memref<8x2x32xf32, #tpu.memory_space<vmem>>, vector<1x2x32xf32>
    %160 = vector.shape_cast %159 : vector<1x2x32xf32> to vector<2x32xf32>
    %161 = vector.shape_cast %156 : vector<2x32xf32> to vector<1x2x32xf32>
    tpu.vector_store %arg6[%158, %c0_73, %c0_74], %161 {strides = array<i32>} : memref<8x2x32xf32, #tpu.memory_space<vmem>>, vector<1x2x32xf32>,
    %c2_i32_75 = arith.constant 2 : i32
    %162 = arith.index_cast %c2_i32_75 : i32 to index
    %c0_76 = arith.constant 0 : index
    %c0_77 = arith.constant 0 : index
    %163 = vector.load %arg7[%162, %c0_76, %c0_77] : memref<8x2x96xf32, #tpu.memory_space<vmem>>, vector<1x2x96xf32>
    %164 = vector.shape_cast %163 : vector<1x2x96xf32> to vector<2x96xf32>
    %c0_78 = arith.constant 0 : index
    %c0_79 = arith.constant 0 : index
    %165 = vector.load %arg8[%c0_78, %c0_79] : memref<2x32xf32, #tpu.memory_space<vmem>>, vector<2x32xf32>
    %cst_80 = arith.constant dense<0.000000e+00> : vector<2x96xf32>
    %166 = tpu.matmul %165, %2, %cst_80 {dimension_numbers = #tpu.dot_dimension_numbers<[1], [0], [0], [1], [0, 0, 1, 1], [], []>} : vector<2x32xf32>, vector<32x96xf32>, vector<2x96xf32> -> vector<2x96xf32>
    %167 = vector.broadcast %3 : vector<1x96xf32> to vector<2x96xf32>
    %168 = arith.addf %166, %167 : vector<2x96xf32>
    %169 = vector.extract_strided_slice %164 {offsets = [0, 0], sizes = [2, 32], strides = [1, 1]} : vector<2x96xf32> to vector<2x32xf32>
    %170 = vector.extract_strided_slice %168 {offsets = [0, 0], sizes = [2, 32], strides = [1, 1]} : vector<2x96xf32> to vector<2x32xf32>
    %171 = arith.addf %169, %170 : vector<2x32xf32>
    %172 = arith.negf %171 : vector<2x32xf32>
    %173 = math.exp %172 : vector<2x32xf32>
    %cst_81 = arith.constant 1.000000e+00 : f32
    %174 = vector.broadcast %cst_81 : f32 to vector<2x32xf32>
    %175 = arith.addf %174, %173 : vector<2x32xf32>
    %176 = arith.divf %174, %175 : vector<2x32xf32>
    %177 = vector.extract_strided_slice %164 {offsets = [0, 32], sizes = [2, 32], strides = [1, 1]} : vector<2x96xf32> to vector<2x32xf32>
    %178 = vector.extract_strided_slice %168 {offsets = [0, 32], sizes = [2, 32], strides = [1, 1]} : vector<2x96xf32> to vector<2x32xf32>
    %179 = arith.addf %177, %178 : vector<2x32xf32>
    %180 = arith.negf %179 : vector<2x32xf32>
    %181 = math.exp %180 : vector<2x32xf32>
    %cst_82 = arith.constant 1.000000e+00 : f32
    %182 = vector.broadcast %cst_82 : f32 to vector<2x32xf32>
    %183 = arith.addf %182, %181 : vector<2x32xf32>
    %184 = arith.divf %182, %183 : vector<2x32xf32>
    %185 = vector.extract_strided_slice %164 {offsets = [0, 64], sizes = [2, 32], strides = [1, 1]} : vector<2x96xf32> to vector<2x32xf32>
    %186 = vector.extract_strided_slice %168 {offsets = [0, 64], sizes = [2, 32], strides = [1, 1]} : vector<2x96xf32> to vector<2x32xf32>
    %187 = arith.mulf %176, %186 : vector<2x32xf32>
    %188 = arith.addf %185, %187 : vector<2x32xf32>
    %189 = math.tanh %188 : vector<2x32xf32>
    %cst_83 = arith.constant 1.000000e+00 : f32
    %190 = vector.broadcast %cst_83 : f32 to vector<2x32xf32>
    %191 = arith.subf %190, %184 : vector<2x32xf32>
    %192 = arith.mulf %191, %189 : vector<2x32xf32>
    %193 = arith.mulf %184, %165 : vector<2x32xf32>
    %194 = arith.addf %192, %193 : vector<2x32xf32>
    %c0_84 = arith.constant 0 : index
    %c0_85 = arith.constant 0 : index
    %195 = vector.load %arg8[%c0_84, %c0_85] : memref<2x32xf32, #tpu.memory_space<vmem>>, vector<2x32xf32>
    tpu.vector_store %arg8[%c0_84, %c0_85], %194 {strides = array<i32>} : memref<2x32xf32, #tpu.memory_space<vmem>>, vector<2x32xf32>,
    %196 = arith.index_cast %c2_i32_75 : i32 to index
    %c0_86 = arith.constant 0 : index
    %c0_87 = arith.constant 0 : index
    %197 = vector.load %arg6[%196, %c0_86, %c0_87] : memref<8x2x32xf32, #tpu.memory_space<vmem>>, vector<1x2x32xf32>
    %198 = vector.shape_cast %197 : vector<1x2x32xf32> to vector<2x32xf32>
    %199 = vector.shape_cast %194 : vector<2x32xf32> to vector<1x2x32xf32>
    tpu.vector_store %arg6[%196, %c0_86, %c0_87], %199 {strides = array<i32>} : memref<8x2x32xf32, #tpu.memory_space<vmem>>, vector<1x2x32xf32>,
    %c3_i32_88 = arith.constant 3 : i32
    %200 = arith.index_cast %c3_i32_88 : i32 to index
    %c0_89 = arith.constant 0 : index
    %c0_90 = arith.constant 0 : index
    %201 = vector.load %arg7[%200, %c0_89, %c0_90] : memref<8x2x96xf32, #tpu.memory_space<vmem>>, vector<1x2x96xf32>
    %202 = vector.shape_cast %201 : vector<1x2x96xf32> to vector<2x96xf32>
    %c0_91 = arith.constant 0 : index
    %c0_92 = arith.constant 0 : index
    %203 = vector.load %arg8[%c0_91, %c0_92] : memref<2x32xf32, #tpu.memory_space<vmem>>, vector<2x32xf32>
    %cst_93 = arith.constant dense<0.000000e+00> : vector<2x96xf32>
    %204 = tpu.matmul %203, %2, %cst_93 {dimension_numbers = #tpu.dot_dimension_numbers<[1], [0], [0], [1], [0, 0, 1, 1], [], []>} : vector<2x32xf32>, vector<32x96xf32>, vector<2x96xf32> -> vector<2x96xf32>
    %205 = vector.broadcast %3 : vector<1x96xf32> to vector<2x96xf32>
    %206 = arith.addf %204, %205 : vector<2x96xf32>
    %207 = vector.extract_strided_slice %202 {offsets = [0, 0], sizes = [2, 32], strides = [1, 1]} : vector<2x96xf32> to vector<2x32xf32>
    %208 = vector.extract_strided_slice %206 {offsets = [0, 0], sizes = [2, 32], strides = [1, 1]} : vector<2x96xf32> to vector<2x32xf32>
    %209 = arith.addf %207, %208 : vector<2x32xf32>
    %210 = arith.negf %209 : vector<2x32xf32>
    %211 = math.exp %210 : vector<2x32xf32>
    %cst_94 = arith.constant 1.000000e+00 : f32
    %212 = vector.broadcast %cst_94 : f32 to vector<2x32xf32>
    %213 = arith.addf %212, %211 : vector<2x32xf32>
    %214 = arith.divf %212, %213 : vector<2x32xf32>
    %215 = vector.extract_strided_slice %202 {offsets = [0, 32], sizes = [2, 32], strides = [1, 1]} : vector<2x96xf32> to vector<2x32xf32>
    %216 = vector.extract_strided_slice %206 {offsets = [0, 32], sizes = [2, 32], strides = [1, 1]} : vector<2x96xf32> to vector<2x32xf32>
    %217 = arith.addf %215, %216 : vector<2x32xf32>
    %218 = arith.negf %217 : vector<2x32xf32>
    %219 = math.exp %218 : vector<2x32xf32>
    %cst_95 = arith.constant 1.000000e+00 : f32
    %220 = vector.broadcast %cst_95 : f32 to vector<2x32xf32>
    %221 = arith.addf %220, %219 : vector<2x32xf32>
    %222 = arith.divf %220, %221 : vector<2x32xf32>
    %223 = vector.extract_strided_slice %202 {offsets = [0, 64], sizes = [2, 32], strides = [1, 1]} : vector<2x96xf32> to vector<2x32xf32>
    %224 = vector.extract_strided_slice %206 {offsets = [0, 64], sizes = [2, 32], strides = [1, 1]} : vector<2x96xf32> to vector<2x32xf32>
    %225 = arith.mulf %214, %224 : vector<2x32xf32>
    %226 = arith.addf %223, %225 : vector<2x32xf32>
    %227 = math.tanh %226 : vector<2x32xf32>
    %cst_96 = arith.constant 1.000000e+00 : f32
    %228 = vector.broadcast %cst_96 : f32 to vector<2x32xf32>
    %229 = arith.subf %228, %222 : vector<2x32xf32>
    %230 = arith.mulf %229, %227 : vector<2x32xf32>
    %231 = arith.mulf %222, %203 : vector<2x32xf32>
    %232 = arith.addf %230, %231 : vector<2x32xf32>
    %c0_97 = arith.constant 0 : index
    %c0_98 = arith.constant 0 : index
    %233 = vector.load %arg8[%c0_97, %c0_98] : memref<2x32xf32, #tpu.memory_space<vmem>>, vector<2x32xf32>
    tpu.vector_store %arg8[%c0_97, %c0_98], %232 {strides = array<i32>} : memref<2x32xf32, #tpu.memory_space<vmem>>, vector<2x32xf32>,
    %234 = arith.index_cast %c3_i32_88 : i32 to index
    %c0_99 = arith.constant 0 : index
    %c0_100 = arith.constant 0 : index
    %235 = vector.load %arg6[%234, %c0_99, %c0_100] : memref<8x2x32xf32, #tpu.memory_space<vmem>>, vector<1x2x32xf32>
    %236 = vector.shape_cast %235 : vector<1x2x32xf32> to vector<2x32xf32>
    %237 = vector.shape_cast %232 : vector<2x32xf32> to vector<1x2x32xf32>
    tpu.vector_store %arg6[%234, %c0_99, %c0_100], %237 {strides = array<i32>} : memref<8x2x32xf32, #tpu.memory_space<vmem>>, vector<1x2x32xf32>,
    %c4_i32_101 = arith.constant 4 : i32
    %238 = arith.index_cast %c4_i32_101 : i32 to index
    %c0_102 = arith.constant 0 : index
    %c0_103 = arith.constant 0 : index
    %239 = vector.load %arg7[%238, %c0_102, %c0_103] : memref<8x2x96xf32, #tpu.memory_space<vmem>>, vector<1x2x96xf32>
    %240 = vector.shape_cast %239 : vector<1x2x96xf32> to vector<2x96xf32>
    %c0_104 = arith.constant 0 : index
    %c0_105 = arith.constant 0 : index
    %241 = vector.load %arg8[%c0_104, %c0_105] : memref<2x32xf32, #tpu.memory_space<vmem>>, vector<2x32xf32>
    %cst_106 = arith.constant dense<0.000000e+00> : vector<2x96xf32>
    %242 = tpu.matmul %241, %2, %cst_106 {dimension_numbers = #tpu.dot_dimension_numbers<[1], [0], [0], [1], [0, 0, 1, 1], [], []>} : vector<2x32xf32>, vector<32x96xf32>, vector<2x96xf32> -> vector<2x96xf32>
    %243 = vector.broadcast %3 : vector<1x96xf32> to vector<2x96xf32>
    %244 = arith.addf %242, %243 : vector<2x96xf32>
    %245 = vector.extract_strided_slice %240 {offsets = [0, 0], sizes = [2, 32], strides = [1, 1]} : vector<2x96xf32> to vector<2x32xf32>
    %246 = vector.extract_strided_slice %244 {offsets = [0, 0], sizes = [2, 32], strides = [1, 1]} : vector<2x96xf32> to vector<2x32xf32>
    %247 = arith.addf %245, %246 : vector<2x32xf32>
    %248 = arith.negf %247 : vector<2x32xf32>
    %249 = math.exp %248 : vector<2x32xf32>
    %cst_107 = arith.constant 1.000000e+00 : f32
    %250 = vector.broadcast %cst_107 : f32 to vector<2x32xf32>
    %251 = arith.addf %250, %249 : vector<2x32xf32>
    %252 = arith.divf %250, %251 : vector<2x32xf32>
    %253 = vector.extract_strided_slice %240 {offsets = [0, 32], sizes = [2, 32], strides = [1, 1]} : vector<2x96xf32> to vector<2x32xf32>
    %254 = vector.extract_strided_slice %244 {offsets = [0, 32], sizes = [2, 32], strides = [1, 1]} : vector<2x96xf32> to vector<2x32xf32>
    %255 = arith.addf %253, %254 : vector<2x32xf32>
    %256 = arith.negf %255 : vector<2x32xf32>
    %257 = math.exp %256 : vector<2x32xf32>
    %cst_108 = arith.constant 1.000000e+00 : f32
    %258 = vector.broadcast %cst_108 : f32 to vector<2x32xf32>
    %259 = arith.addf %258, %257 : vector<2x32xf32>
    %260 = arith.divf %258, %259 : vector<2x32xf32>
    %261 = vector.extract_strided_slice %240 {offsets = [0, 64], sizes = [2, 32], strides = [1, 1]} : vector<2x96xf32> to vector<2x32xf32>
    %262 = vector.extract_strided_slice %244 {offsets = [0, 64], sizes = [2, 32], strides = [1, 1]} : vector<2x96xf32> to vector<2x32xf32>
    %263 = arith.mulf %252, %262 : vector<2x32xf32>
    %264 = arith.addf %261, %263 : vector<2x32xf32>
    %265 = math.tanh %264 : vector<2x32xf32>
    %cst_109 = arith.constant 1.000000e+00 : f32
    %266 = vector.broadcast %cst_109 : f32 to vector<2x32xf32>
    %267 = arith.subf %266, %260 : vector<2x32xf32>
    %268 = arith.mulf %267, %265 : vector<2x32xf32>
    %269 = arith.mulf %260, %241 : vector<2x32xf32>
    %270 = arith.addf %268, %269 : vector<2x32xf32>
    %c0_110 = arith.constant 0 : index
    %c0_111 = arith.constant 0 : index
    %271 = vector.load %arg8[%c0_110, %c0_111] : memref<2x32xf32, #tpu.memory_space<vmem>>, vector<2x32xf32>
    tpu.vector_store %arg8[%c0_110, %c0_111], %270 {strides = array<i32>} : memref<2x32xf32, #tpu.memory_space<vmem>>, vector<2x32xf32>,
    %272 = arith.index_cast %c4_i32_101 : i32 to index
    %c0_112 = arith.constant 0 : index
    %c0_113 = arith.constant 0 : index
    %273 = vector.load %arg6[%272, %c0_112, %c0_113] : memref<8x2x32xf32, #tpu.memory_space<vmem>>, vector<1x2x32xf32>
    %274 = vector.shape_cast %273 : vector<1x2x32xf32> to vector<2x32xf32>
    %275 = vector.shape_cast %270 : vector<2x32xf32> to vector<1x2x32xf32>
    tpu.vector_store %arg6[%272, %c0_112, %c0_113], %275 {strides = array<i32>} : memref<8x2x32xf32, #tpu.memory_space<vmem>>, vector<1x2x32xf32>,
    %c5_i32_114 = arith.constant 5 : i32
    %276 = arith.index_cast %c5_i32_114 : i32 to index
    %c0_115 = arith.constant 0 : index
    %c0_116 = arith.constant 0 : index
    %277 = vector.load %arg7[%276, %c0_115, %c0_116] : memref<8x2x96xf32, #tpu.memory_space<vmem>>, vector<1x2x96xf32>
    %278 = vector.shape_cast %277 : vector<1x2x96xf32> to vector<2x96xf32>
    %c0_117 = arith.constant 0 : index
    %c0_118 = arith.constant 0 : index
    %279 = vector.load %arg8[%c0_117, %c0_118] : memref<2x32xf32, #tpu.memory_space<vmem>>, vector<2x32xf32>
    %cst_119 = arith.constant dense<0.000000e+00> : vector<2x96xf32>
    %280 = tpu.matmul %279, %2, %cst_119 {dimension_numbers = #tpu.dot_dimension_numbers<[1], [0], [0], [1], [0, 0, 1, 1], [], []>} : vector<2x32xf32>, vector<32x96xf32>, vector<2x96xf32> -> vector<2x96xf32>
    %281 = vector.broadcast %3 : vector<1x96xf32> to vector<2x96xf32>
    %282 = arith.addf %280, %281 : vector<2x96xf32>
    %283 = vector.extract_strided_slice %278 {offsets = [0, 0], sizes = [2, 32], strides = [1, 1]} : vector<2x96xf32> to vector<2x32xf32>
    %284 = vector.extract_strided_slice %282 {offsets = [0, 0], sizes = [2, 32], strides = [1, 1]} : vector<2x96xf32> to vector<2x32xf32>
    %285 = arith.addf %283, %284 : vector<2x32xf32>
    %286 = arith.negf %285 : vector<2x32xf32>
    %287 = math.exp %286 : vector<2x32xf32>
    %cst_120 = arith.constant 1.000000e+00 : f32
    %288 = vector.broadcast %cst_120 : f32 to vector<2x32xf32>
    %289 = arith.addf %288, %287 : vector<2x32xf32>
    %290 = arith.divf %288, %289 : vector<2x32xf32>
    %291 = vector.extract_strided_slice %278 {offsets = [0, 32], sizes = [2, 32], strides = [1, 1]} : vector<2x96xf32> to vector<2x32xf32>
    %292 = vector.extract_strided_slice %282 {offsets = [0, 32], sizes = [2, 32], strides = [1, 1]} : vector<2x96xf32> to vector<2x32xf32>
    %293 = arith.addf %291, %292 : vector<2x32xf32>
    %294 = arith.negf %293 : vector<2x32xf32>
    %295 = math.exp %294 : vector<2x32xf32>
    %cst_121 = arith.constant 1.000000e+00 : f32
    %296 = vector.broadcast %cst_121 : f32 to vector<2x32xf32>
    %297 = arith.addf %296, %295 : vector<2x32xf32>
    %298 = arith.divf %296, %297 : vector<2x32xf32>
    %299 = vector.extract_strided_slice %278 {offsets = [0, 64], sizes = [2, 32], strides = [1, 1]} : vector<2x96xf32> to vector<2x32xf32>
    %300 = vector.extract_strided_slice %282 {offsets = [0, 64], sizes = [2, 32], strides = [1, 1]} : vector<2x96xf32> to vector<2x32xf32>
    %301 = arith.mulf %290, %300 : vector<2x32xf32>
    %302 = arith.addf %299, %301 : vector<2x32xf32>
    %303 = math.tanh %302 : vector<2x32xf32>
    %cst_122 = arith.constant 1.000000e+00 : f32
    %304 = vector.broadcast %cst_122 : f32 to vector<2x32xf32>
    %305 = arith.subf %304, %298 : vector<2x32xf32>
    %306 = arith.mulf %305, %303 : vector<2x32xf32>
    %307 = arith.mulf %298, %279 : vector<2x32xf32>
    %308 = arith.addf %306, %307 : vector<2x32xf32>
    %c0_123 = arith.constant 0 : index
    %c0_124 = arith.constant 0 : index
    %309 = vector.load %arg8[%c0_123, %c0_124] : memref<2x32xf32, #tpu.memory_space<vmem>>, vector<2x32xf32>
    tpu.vector_store %arg8[%c0_123, %c0_124], %308 {strides = array<i32>} : memref<2x32xf32, #tpu.memory_space<vmem>>, vector<2x32xf32>,
    %310 = arith.index_cast %c5_i32_114 : i32 to index
    %c0_125 = arith.constant 0 : index
    %c0_126 = arith.constant 0 : index
    %311 = vector.load %arg6[%310, %c0_125, %c0_126] : memref<8x2x32xf32, #tpu.memory_space<vmem>>, vector<1x2x32xf32>
    %312 = vector.shape_cast %311 : vector<1x2x32xf32> to vector<2x32xf32>
    %313 = vector.shape_cast %308 : vector<2x32xf32> to vector<1x2x32xf32>
    tpu.vector_store %arg6[%310, %c0_125, %c0_126], %313 {strides = array<i32>} : memref<8x2x32xf32, #tpu.memory_space<vmem>>, vector<1x2x32xf32>,
    %c6_i32_127 = arith.constant 6 : i32
    %314 = arith.index_cast %c6_i32_127 : i32 to index
    %c0_128 = arith.constant 0 : index
    %c0_129 = arith.constant 0 : index
    %315 = vector.load %arg7[%314, %c0_128, %c0_129] : memref<8x2x96xf32, #tpu.memory_space<vmem>>, vector<1x2x96xf32>
    %316 = vector.shape_cast %315 : vector<1x2x96xf32> to vector<2x96xf32>
    %c0_130 = arith.constant 0 : index
    %c0_131 = arith.constant 0 : index
    %317 = vector.load %arg8[%c0_130, %c0_131] : memref<2x32xf32, #tpu.memory_space<vmem>>, vector<2x32xf32>
    %cst_132 = arith.constant dense<0.000000e+00> : vector<2x96xf32>
    %318 = tpu.matmul %317, %2, %cst_132 {dimension_numbers = #tpu.dot_dimension_numbers<[1], [0], [0], [1], [0, 0, 1, 1], [], []>} : vector<2x32xf32>, vector<32x96xf32>, vector<2x96xf32> -> vector<2x96xf32>
    %319 = vector.broadcast %3 : vector<1x96xf32> to vector<2x96xf32>
    %320 = arith.addf %318, %319 : vector<2x96xf32>
    %321 = vector.extract_strided_slice %316 {offsets = [0, 0], sizes = [2, 32], strides = [1, 1]} : vector<2x96xf32> to vector<2x32xf32>
    %322 = vector.extract_strided_slice %320 {offsets = [0, 0], sizes = [2, 32], strides = [1, 1]} : vector<2x96xf32> to vector<2x32xf32>
    %323 = arith.addf %321, %322 : vector<2x32xf32>
    %324 = arith.negf %323 : vector<2x32xf32>
    %325 = math.exp %324 : vector<2x32xf32>
    %cst_133 = arith.constant 1.000000e+00 : f32
    %326 = vector.broadcast %cst_133 : f32 to vector<2x32xf32>
    %327 = arith.addf %326, %325 : vector<2x32xf32>
    %328 = arith.divf %326, %327 : vector<2x32xf32>
    %329 = vector.extract_strided_slice %316 {offsets = [0, 32], sizes = [2, 32], strides = [1, 1]} : vector<2x96xf32> to vector<2x32xf32>
    %330 = vector.extract_strided_slice %320 {offsets = [0, 32], sizes = [2, 32], strides = [1, 1]} : vector<2x96xf32> to vector<2x32xf32>
    %331 = arith.addf %329, %330 : vector<2x32xf32>
    %332 = arith.negf %331 : vector<2x32xf32>
    %333 = math.exp %332 : vector<2x32xf32>
    %cst_134 = arith.constant 1.000000e+00 : f32
    %334 = vector.broadcast %cst_134 : f32 to vector<2x32xf32>
    %335 = arith.addf %334, %333 : vector<2x32xf32>
    %336 = arith.divf %334, %335 : vector<2x32xf32>
    %337 = vector.extract_strided_slice %316 {offsets = [0, 64], sizes = [2, 32], strides = [1, 1]} : vector<2x96xf32> to vector<2x32xf32>
    %338 = vector.extract_strided_slice %320 {offsets = [0, 64], sizes = [2, 32], strides = [1, 1]} : vector<2x96xf32> to vector<2x32xf32>
    %339 = arith.mulf %328, %338 : vector<2x32xf32>
    %340 = arith.addf %337, %339 : vector<2x32xf32>
    %341 = math.tanh %340 : vector<2x32xf32>
    %cst_135 = arith.constant 1.000000e+00 : f32
    %342 = vector.broadcast %cst_135 : f32 to vector<2x32xf32>
    %343 = arith.subf %342, %336 : vector<2x32xf32>
    %344 = arith.mulf %343, %341 : vector<2x32xf32>
    %345 = arith.mulf %336, %317 : vector<2x32xf32>
    %346 = arith.addf %344, %345 : vector<2x32xf32>
    %c0_136 = arith.constant 0 : index
    %c0_137 = arith.constant 0 : index
    %347 = vector.load %arg8[%c0_136, %c0_137] : memref<2x32xf32, #tpu.memory_space<vmem>>, vector<2x32xf32>
    tpu.vector_store %arg8[%c0_136, %c0_137], %346 {strides = array<i32>} : memref<2x32xf32, #tpu.memory_space<vmem>>, vector<2x32xf32>,
    %348 = arith.index_cast %c6_i32_127 : i32 to index
    %c0_138 = arith.constant 0 : index
    %c0_139 = arith.constant 0 : index
    %349 = vector.load %arg6[%348, %c0_138, %c0_139] : memref<8x2x32xf32, #tpu.memory_space<vmem>>, vector<1x2x32xf32>
    %350 = vector.shape_cast %349 : vector<1x2x32xf32> to vector<2x32xf32>
    %351 = vector.shape_cast %346 : vector<2x32xf32> to vector<1x2x32xf32>
    tpu.vector_store %arg6[%348, %c0_138, %c0_139], %351 {strides = array<i32>} : memref<8x2x32xf32, #tpu.memory_space<vmem>>, vector<1x2x32xf32>,
    %c7_i32_140 = arith.constant 7 : i32
    %352 = arith.index_cast %c7_i32_140 : i32 to index
    %c0_141 = arith.constant 0 : index
    %c0_142 = arith.constant 0 : index
    %353 = vector.load %arg7[%352, %c0_141, %c0_142] : memref<8x2x96xf32, #tpu.memory_space<vmem>>, vector<1x2x96xf32>
    %354 = vector.shape_cast %353 : vector<1x2x96xf32> to vector<2x96xf32>
    %c0_143 = arith.constant 0 : index
    %c0_144 = arith.constant 0 : index
    %355 = vector.load %arg8[%c0_143, %c0_144] : memref<2x32xf32, #tpu.memory_space<vmem>>, vector<2x32xf32>
    %cst_145 = arith.constant dense<0.000000e+00> : vector<2x96xf32>
    %356 = tpu.matmul %355, %2, %cst_145 {dimension_numbers = #tpu.dot_dimension_numbers<[1], [0], [0], [1], [0, 0, 1, 1], [], []>} : vector<2x32xf32>, vector<32x96xf32>, vector<2x96xf32> -> vector<2x96xf32>
    %357 = vector.broadcast %3 : vector<1x96xf32> to vector<2x96xf32>
    %358 = arith.addf %356, %357 : vector<2x96xf32>
    %359 = vector.extract_strided_slice %354 {offsets = [0, 0], sizes = [2, 32], strides = [1, 1]} : vector<2x96xf32> to vector<2x32xf32>
    %360 = vector.extract_strided_slice %358 {offsets = [0, 0], sizes = [2, 32], strides = [1, 1]} : vector<2x96xf32> to vector<2x32xf32>
    %361 = arith.addf %359, %360 : vector<2x32xf32>
    %362 = arith.negf %361 : vector<2x32xf32>
    %363 = math.exp %362 : vector<2x32xf32>
    %cst_146 = arith.constant 1.000000e+00 : f32
    %364 = vector.broadcast %cst_146 : f32 to vector<2x32xf32>
    %365 = arith.addf %364, %363 : vector<2x32xf32>
    %366 = arith.divf %364, %365 : vector<2x32xf32>
    %367 = vector.extract_strided_slice %354 {offsets = [0, 32], sizes = [2, 32], strides = [1, 1]} : vector<2x96xf32> to vector<2x32xf32>
    %368 = vector.extract_strided_slice %358 {offsets = [0, 32], sizes = [2, 32], strides = [1, 1]} : vector<2x96xf32> to vector<2x32xf32>
    %369 = arith.addf %367, %368 : vector<2x32xf32>
    %370 = arith.negf %369 : vector<2x32xf32>
    %371 = math.exp %370 : vector<2x32xf32>
    %cst_147 = arith.constant 1.000000e+00 : f32
    %372 = vector.broadcast %cst_147 : f32 to vector<2x32xf32>
    %373 = arith.addf %372, %371 : vector<2x32xf32>
    %374 = arith.divf %372, %373 : vector<2x32xf32>
    %375 = vector.extract_strided_slice %354 {offsets = [0, 64], sizes = [2, 32], strides = [1, 1]} : vector<2x96xf32> to vector<2x32xf32>
    %376 = vector.extract_strided_slice %358 {offsets = [0, 64], sizes = [2, 32], strides = [1, 1]} : vector<2x96xf32> to vector<2x32xf32>
    %377 = arith.mulf %366, %376 : vector<2x32xf32>
    %378 = arith.addf %375, %377 : vector<2x32xf32>
    %379 = math.tanh %378 : vector<2x32xf32>
    %cst_148 = arith.constant 1.000000e+00 : f32
    %380 = vector.broadcast %cst_148 : f32 to vector<2x32xf32>
    %381 = arith.subf %380, %374 : vector<2x32xf32>
    %382 = arith.mulf %381, %379 : vector<2x32xf32>
    %383 = arith.mulf %374, %355 : vector<2x32xf32>
    %384 = arith.addf %382, %383 : vector<2x32xf32>
    %c0_149 = arith.constant 0 : index
    %c0_150 = arith.constant 0 : index
    %385 = vector.load %arg8[%c0_149, %c0_150] : memref<2x32xf32, #tpu.memory_space<vmem>>, vector<2x32xf32>
    tpu.vector_store %arg8[%c0_149, %c0_150], %384 {strides = array<i32>} : memref<2x32xf32, #tpu.memory_space<vmem>>, vector<2x32xf32>,
    %386 = arith.index_cast %c7_i32_140 : i32 to index
    %c0_151 = arith.constant 0 : index
    %c0_152 = arith.constant 0 : index
    %387 = vector.load %arg6[%386, %c0_151, %c0_152] : memref<8x2x32xf32, #tpu.memory_space<vmem>>, vector<1x2x32xf32>
    %388 = vector.shape_cast %387 : vector<1x2x32xf32> to vector<2x32xf32>
    %389 = vector.shape_cast %384 : vector<2x32xf32> to vector<1x2x32xf32>
    tpu.vector_store %arg6[%386, %c0_151, %c0_152], %389 {strides = array<i32>} : memref<8x2x32xf32, #tpu.memory_space<vmem>>, vector<1x2x32xf32>,
    %c8_i32_153 = arith.constant 8 : i32
    return
  }
  func.func @transform_0(%arg0: i32) -> (i32, i32, i32) {
    %c0_i32 = arith.constant 0 : i32
    %c0_i32_0 = arith.constant 0 : i32
    %c0_i32_1 = arith.constant 0 : i32
    %c0_i32_2 = arith.constant 0 : i32
    return %c0_i32, %c0_i32_0, %c0_i32_1 : i32, i32, i32
  }
  func.func @transform_1(%arg0: i32) -> (i32, i32) {
    %c0_i32 = arith.constant 0 : i32
    %c0_i32_0 = arith.constant 0 : i32
    %c0_i32_1 = arith.constant 0 : i32
    return %c0_i32, %c0_i32_0 : i32, i32
  }
  func.func @transform_2(%arg0: i32) -> (i32, i32) {
    %c0_i32 = arith.constant 0 : i32
    %c0_i32_0 = arith.constant 0 : i32
    %c0_i32_1 = arith.constant 0 : i32
    return %c0_i32, %c0_i32_0 : i32, i32
  }
  func.func @transform_3(%arg0: i32) -> (i32, i32) {
    %c0_i32 = arith.constant 0 : i32
    %c0_i32_0 = arith.constant 0 : i32
    %c0_i32_1 = arith.constant 0 : i32
    return %c0_i32, %c0_i32_0 : i32, i32
  }
  func.func @transform_4(%arg0: i32) -> (i32, i32) {
    %c0_i32 = arith.constant 0 : i32
    %c0_i32_0 = arith.constant 0 : i32
    %c0_i32_1 = arith.constant 0 : i32
    return %c0_i32, %c0_i32_0 : i32, i32
  }
  func.func @transform_5(%arg0: i32) -> (i32, i32, i32) {
    %c0_i32 = arith.constant 0 : i32
    %c0_i32_0 = arith.constant 0 : i32
    %c0_i32_1 = arith.constant 0 : i32
    %c0_i32_2 = arith.constant 0 : i32
    return %c0_i32, %c0_i32_0, %c0_i32_1 : i32, i32, i32
  }
}

module attributes {stable_mosaic.version = 11 : i64} {
  func.func @gru_seq_kernel(%arg0: i32, %arg1: memref<8x2x32xf32, #tpu.memory_space<vmem>>, %arg2: memref<32x96xf32, #tpu.memory_space<vmem>>, %arg3: memref<32x96xf32, #tpu.memory_space<vmem>>, %arg4: memref<1x96xf32, #tpu.memory_space<vmem>>, %arg5: memref<1x96xf32, #tpu.memory_space<vmem>>, %arg6: memref<8x2x32xf32, #tpu.memory_space<vmem>>, %arg7: memref<8x2x96xf32, #tpu.memory_space<vmem>>, %arg8: memref<2x32xf32, #tpu.memory_space<vmem>>) attributes {dimension_semantics = [#tpu.dimension_semantics<arbitrary>], iteration_bounds = array<i64: 1>, scalar_prefetch = 0 : i64, scratch_operands = 2 : i64, tpu.core_type = #tpu.core_type<tc>, window_params = [{pipeline_mode = #tpu.pipeline_mode<synchronous>, transform_indices = @transform_0, window_bounds = array<i64: 8, 2, 32>}, {pipeline_mode = #tpu.pipeline_mode<synchronous>, transform_indices = @transform_1, window_bounds = array<i64: 32, 96>}, {pipeline_mode = #tpu.pipeline_mode<synchronous>, transform_indices = @transform_2, window_bounds = array<i64: 32, 96>}, {pipeline_mode = #tpu.pipeline_mode<synchronous>, transform_indices = @transform_3, window_bounds = array<i64: 1, 96>}, {pipeline_mode = #tpu.pipeline_mode<synchronous>, transform_indices = @transform_4, window_bounds = array<i64: 1, 96>}, {pipeline_mode = #tpu.pipeline_mode<synchronous>, transform_indices = @transform_5, window_bounds = array<i64: 8, 2, 32>}]} {
    %c0 = arith.constant 0 : index
    %c0_0 = arith.constant 0 : index
    %0 = vector.load %arg2[%c0, %c0_0] : memref<32x96xf32, #tpu.memory_space<vmem>>, vector<32x96xf32>
    %c0_1 = arith.constant 0 : index
    %c0_2 = arith.constant 0 : index
    %1 = vector.load %arg4[%c0_1, %c0_2] : memref<1x96xf32, #tpu.memory_space<vmem>>, vector<1x96xf32>
    %c0_3 = arith.constant 0 : index
    %c0_4 = arith.constant 0 : index
    %2 = vector.load %arg3[%c0_3, %c0_4] : memref<32x96xf32, #tpu.memory_space<vmem>>, vector<32x96xf32>
    %c0_5 = arith.constant 0 : index
    %c0_6 = arith.constant 0 : index
    %3 = vector.load %arg5[%c0_5, %c0_6] : memref<1x96xf32, #tpu.memory_space<vmem>>, vector<1x96xf32>
    %c0_i32 = arith.constant 0 : i32
    %4 = arith.index_cast %c0_i32 : i32 to index
    %c0_7 = arith.constant 0 : index
    %c0_8 = arith.constant 0 : index
    %5 = vector.load %arg1[%4, %c0_7, %c0_8] : memref<8x2x32xf32, #tpu.memory_space<vmem>>, vector<1x2x32xf32>
    %6 = vector.shape_cast %5 : vector<1x2x32xf32> to vector<2x32xf32>
    %cst = arith.constant dense<0.000000e+00> : vector<2x96xf32>
    %7 = tpu.matmul %6, %0, %cst {dimension_numbers = #tpu.dot_dimension_numbers<[1], [0], [0], [1], [0, 0, 1, 1], [], []>} : vector<2x32xf32>, vector<32x96xf32>, vector<2x96xf32> -> vector<2x96xf32>
    %8 = vector.broadcast %1 : vector<1x96xf32> to vector<2x96xf32>
    %9 = arith.addf %7, %8 : vector<2x96xf32>
    %10 = arith.index_cast %c0_i32 : i32 to index
    %c0_9 = arith.constant 0 : index
    %c0_10 = arith.constant 0 : index
    %11 = vector.load %arg7[%10, %c0_9, %c0_10] : memref<8x2x96xf32, #tpu.memory_space<vmem>>, vector<1x2x96xf32>
    %12 = vector.shape_cast %11 : vector<1x2x96xf32> to vector<2x96xf32>
    %13 = vector.shape_cast %9 : vector<2x96xf32> to vector<1x2x96xf32>
    tpu.vector_store %arg7[%10, %c0_9, %c0_10], %13 {strides = array<i32>} : memref<8x2x96xf32, #tpu.memory_space<vmem>>, vector<1x2x96xf32>,
    %c1_i32 = arith.constant 1 : i32
    %14 = arith.index_cast %c1_i32 : i32 to index
    %c0_11 = arith.constant 0 : index
    %c0_12 = arith.constant 0 : index
    %15 = vector.load %arg1[%14, %c0_11, %c0_12] : memref<8x2x32xf32, #tpu.memory_space<vmem>>, vector<1x2x32xf32>
    %16 = vector.shape_cast %15 : vector<1x2x32xf32> to vector<2x32xf32>
    %cst_13 = arith.constant dense<0.000000e+00> : vector<2x96xf32>
    %17 = tpu.matmul %16, %0, %cst_13 {dimension_numbers = #tpu.dot_dimension_numbers<[1], [0], [0], [1], [0, 0, 1, 1], [], []>} : vector<2x32xf32>, vector<32x96xf32>, vector<2x96xf32> -> vector<2x96xf32>
    %18 = vector.broadcast %1 : vector<1x96xf32> to vector<2x96xf32>
    %19 = arith.addf %17, %18 : vector<2x96xf32>
    %20 = arith.index_cast %c1_i32 : i32 to index
    %c0_14 = arith.constant 0 : index
    %c0_15 = arith.constant 0 : index
    %21 = vector.load %arg7[%20, %c0_14, %c0_15] : memref<8x2x96xf32, #tpu.memory_space<vmem>>, vector<1x2x96xf32>
    %22 = vector.shape_cast %21 : vector<1x2x96xf32> to vector<2x96xf32>
    %23 = vector.shape_cast %19 : vector<2x96xf32> to vector<1x2x96xf32>
    tpu.vector_store %arg7[%20, %c0_14, %c0_15], %23 {strides = array<i32>} : memref<8x2x96xf32, #tpu.memory_space<vmem>>, vector<1x2x96xf32>,
    %c2_i32 = arith.constant 2 : i32
    %24 = arith.index_cast %c2_i32 : i32 to index
    %c0_16 = arith.constant 0 : index
    %c0_17 = arith.constant 0 : index
    %25 = vector.load %arg1[%24, %c0_16, %c0_17] : memref<8x2x32xf32, #tpu.memory_space<vmem>>, vector<1x2x32xf32>
    %26 = vector.shape_cast %25 : vector<1x2x32xf32> to vector<2x32xf32>
    %cst_18 = arith.constant dense<0.000000e+00> : vector<2x96xf32>
    %27 = tpu.matmul %26, %0, %cst_18 {dimension_numbers = #tpu.dot_dimension_numbers<[1], [0], [0], [1], [0, 0, 1, 1], [], []>} : vector<2x32xf32>, vector<32x96xf32>, vector<2x96xf32> -> vector<2x96xf32>
    %28 = vector.broadcast %1 : vector<1x96xf32> to vector<2x96xf32>
    %29 = arith.addf %27, %28 : vector<2x96xf32>
    %30 = arith.index_cast %c2_i32 : i32 to index
    %c0_19 = arith.constant 0 : index
    %c0_20 = arith.constant 0 : index
    %31 = vector.load %arg7[%30, %c0_19, %c0_20] : memref<8x2x96xf32, #tpu.memory_space<vmem>>, vector<1x2x96xf32>
    %32 = vector.shape_cast %31 : vector<1x2x96xf32> to vector<2x96xf32>
    %33 = vector.shape_cast %29 : vector<2x96xf32> to vector<1x2x96xf32>
    tpu.vector_store %arg7[%30, %c0_19, %c0_20], %33 {strides = array<i32>} : memref<8x2x96xf32, #tpu.memory_space<vmem>>, vector<1x2x96xf32>,
    %c3_i32 = arith.constant 3 : i32
    %34 = arith.index_cast %c3_i32 : i32 to index
    %c0_21 = arith.constant 0 : index
    %c0_22 = arith.constant 0 : index
    %35 = vector.load %arg1[%34, %c0_21, %c0_22] : memref<8x2x32xf32, #tpu.memory_space<vmem>>, vector<1x2x32xf32>
    %36 = vector.shape_cast %35 : vector<1x2x32xf32> to vector<2x32xf32>
    %cst_23 = arith.constant dense<0.000000e+00> : vector<2x96xf32>
    %37 = tpu.matmul %36, %0, %cst_23 {dimension_numbers = #tpu.dot_dimension_numbers<[1], [0], [0], [1], [0, 0, 1, 1], [], []>} : vector<2x32xf32>, vector<32x96xf32>, vector<2x96xf32> -> vector<2x96xf32>
    %38 = vector.broadcast %1 : vector<1x96xf32> to vector<2x96xf32>
    %39 = arith.addf %37, %38 : vector<2x96xf32>
    %40 = arith.index_cast %c3_i32 : i32 to index
    %c0_24 = arith.constant 0 : index
    %c0_25 = arith.constant 0 : index
    %41 = vector.load %arg7[%40, %c0_24, %c0_25] : memref<8x2x96xf32, #tpu.memory_space<vmem>>, vector<1x2x96xf32>
    %42 = vector.shape_cast %41 : vector<1x2x96xf32> to vector<2x96xf32>
    %43 = vector.shape_cast %39 : vector<2x96xf32> to vector<1x2x96xf32>
    tpu.vector_store %arg7[%40, %c0_24, %c0_25], %43 {strides = array<i32>} : memref<8x2x96xf32, #tpu.memory_space<vmem>>, vector<1x2x96xf32>,
    %c4_i32 = arith.constant 4 : i32
    %44 = arith.index_cast %c4_i32 : i32 to index
    %c0_26 = arith.constant 0 : index
    %c0_27 = arith.constant 0 : index
    %45 = vector.load %arg1[%44, %c0_26, %c0_27] : memref<8x2x32xf32, #tpu.memory_space<vmem>>, vector<1x2x32xf32>
    %46 = vector.shape_cast %45 : vector<1x2x32xf32> to vector<2x32xf32>
    %cst_28 = arith.constant dense<0.000000e+00> : vector<2x96xf32>
    %47 = tpu.matmul %46, %0, %cst_28 {dimension_numbers = #tpu.dot_dimension_numbers<[1], [0], [0], [1], [0, 0, 1, 1], [], []>} : vector<2x32xf32>, vector<32x96xf32>, vector<2x96xf32> -> vector<2x96xf32>
    %48 = vector.broadcast %1 : vector<1x96xf32> to vector<2x96xf32>
    %49 = arith.addf %47, %48 : vector<2x96xf32>
    %50 = arith.index_cast %c4_i32 : i32 to index
    %c0_29 = arith.constant 0 : index
    %c0_30 = arith.constant 0 : index
    %51 = vector.load %arg7[%50, %c0_29, %c0_30] : memref<8x2x96xf32, #tpu.memory_space<vmem>>, vector<1x2x96xf32>
    %52 = vector.shape_cast %51 : vector<1x2x96xf32> to vector<2x96xf32>
    %53 = vector.shape_cast %49 : vector<2x96xf32> to vector<1x2x96xf32>
    tpu.vector_store %arg7[%50, %c0_29, %c0_30], %53 {strides = array<i32>} : memref<8x2x96xf32, #tpu.memory_space<vmem>>, vector<1x2x96xf32>,
    %c5_i32 = arith.constant 5 : i32
    %54 = arith.index_cast %c5_i32 : i32 to index
    %c0_31 = arith.constant 0 : index
    %c0_32 = arith.constant 0 : index
    %55 = vector.load %arg1[%54, %c0_31, %c0_32] : memref<8x2x32xf32, #tpu.memory_space<vmem>>, vector<1x2x32xf32>
    %56 = vector.shape_cast %55 : vector<1x2x32xf32> to vector<2x32xf32>
    %cst_33 = arith.constant dense<0.000000e+00> : vector<2x96xf32>
    %57 = tpu.matmul %56, %0, %cst_33 {dimension_numbers = #tpu.dot_dimension_numbers<[1], [0], [0], [1], [0, 0, 1, 1], [], []>} : vector<2x32xf32>, vector<32x96xf32>, vector<2x96xf32> -> vector<2x96xf32>
    %58 = vector.broadcast %1 : vector<1x96xf32> to vector<2x96xf32>
    %59 = arith.addf %57, %58 : vector<2x96xf32>
    %60 = arith.index_cast %c5_i32 : i32 to index
    %c0_34 = arith.constant 0 : index
    %c0_35 = arith.constant 0 : index
    %61 = vector.load %arg7[%60, %c0_34, %c0_35] : memref<8x2x96xf32, #tpu.memory_space<vmem>>, vector<1x2x96xf32>
    %62 = vector.shape_cast %61 : vector<1x2x96xf32> to vector<2x96xf32>
    %63 = vector.shape_cast %59 : vector<2x96xf32> to vector<1x2x96xf32>
    tpu.vector_store %arg7[%60, %c0_34, %c0_35], %63 {strides = array<i32>} : memref<8x2x96xf32, #tpu.memory_space<vmem>>, vector<1x2x96xf32>,
    %c6_i32 = arith.constant 6 : i32
    %64 = arith.index_cast %c6_i32 : i32 to index
    %c0_36 = arith.constant 0 : index
    %c0_37 = arith.constant 0 : index
    %65 = vector.load %arg1[%64, %c0_36, %c0_37] : memref<8x2x32xf32, #tpu.memory_space<vmem>>, vector<1x2x32xf32>
    %66 = vector.shape_cast %65 : vector<1x2x32xf32> to vector<2x32xf32>
    %cst_38 = arith.constant dense<0.000000e+00> : vector<2x96xf32>
    %67 = tpu.matmul %66, %0, %cst_38 {dimension_numbers = #tpu.dot_dimension_numbers<[1], [0], [0], [1], [0, 0, 1, 1], [], []>} : vector<2x32xf32>, vector<32x96xf32>, vector<2x96xf32> -> vector<2x96xf32>
    %68 = vector.broadcast %1 : vector<1x96xf32> to vector<2x96xf32>
    %69 = arith.addf %67, %68 : vector<2x96xf32>
    %70 = arith.index_cast %c6_i32 : i32 to index
    %c0_39 = arith.constant 0 : index
    %c0_40 = arith.constant 0 : index
    %71 = vector.load %arg7[%70, %c0_39, %c0_40] : memref<8x2x96xf32, #tpu.memory_space<vmem>>, vector<1x2x96xf32>
    %72 = vector.shape_cast %71 : vector<1x2x96xf32> to vector<2x96xf32>
    %73 = vector.shape_cast %69 : vector<2x96xf32> to vector<1x2x96xf32>
    tpu.vector_store %arg7[%70, %c0_39, %c0_40], %73 {strides = array<i32>} : memref<8x2x96xf32, #tpu.memory_space<vmem>>, vector<1x2x96xf32>,
    %c7_i32 = arith.constant 7 : i32
    %74 = arith.index_cast %c7_i32 : i32 to index
    %c0_41 = arith.constant 0 : index
    %c0_42 = arith.constant 0 : index
    %75 = vector.load %arg1[%74, %c0_41, %c0_42] : memref<8x2x32xf32, #tpu.memory_space<vmem>>, vector<1x2x32xf32>
    %76 = vector.shape_cast %75 : vector<1x2x32xf32> to vector<2x32xf32>
    %cst_43 = arith.constant dense<0.000000e+00> : vector<2x96xf32>
    %77 = tpu.matmul %76, %0, %cst_43 {dimension_numbers = #tpu.dot_dimension_numbers<[1], [0], [0], [1], [0, 0, 1, 1], [], []>} : vector<2x32xf32>, vector<32x96xf32>, vector<2x96xf32> -> vector<2x96xf32>
    %78 = vector.broadcast %1 : vector<1x96xf32> to vector<2x96xf32>
    %79 = arith.addf %77, %78 : vector<2x96xf32>
    %80 = arith.index_cast %c7_i32 : i32 to index
    %c0_44 = arith.constant 0 : index
    %c0_45 = arith.constant 0 : index
    %81 = vector.load %arg7[%80, %c0_44, %c0_45] : memref<8x2x96xf32, #tpu.memory_space<vmem>>, vector<1x2x96xf32>
    %82 = vector.shape_cast %81 : vector<1x2x96xf32> to vector<2x96xf32>
    %83 = vector.shape_cast %79 : vector<2x96xf32> to vector<1x2x96xf32>
    tpu.vector_store %arg7[%80, %c0_44, %c0_45], %83 {strides = array<i32>} : memref<8x2x96xf32, #tpu.memory_space<vmem>>, vector<1x2x96xf32>,
    %c8_i32 = arith.constant 8 : i32
    %cst_46 = arith.constant 0.000000e+00 : f32
    %84 = vector.broadcast %cst_46 : f32 to vector<2x32xf32>
    %c0_47 = arith.constant 0 : index
    %c0_48 = arith.constant 0 : index
    %85 = vector.load %arg8[%c0_47, %c0_48] : memref<2x32xf32, #tpu.memory_space<vmem>>, vector<2x32xf32>
    tpu.vector_store %arg8[%c0_47, %c0_48], %84 {strides = array<i32>} : memref<2x32xf32, #tpu.memory_space<vmem>>, vector<2x32xf32>,
    %c0_i32_49 = arith.constant 0 : i32
    %c7_i32_50 = arith.constant 7 : i32
    %86 = arith.subi %c7_i32_50, %c0_i32_49 : i32
    %87 = arith.index_cast %86 : i32 to index
    %c0_51 = arith.constant 0 : index
    %c0_52 = arith.constant 0 : index
    %88 = vector.load %arg7[%87, %c0_51, %c0_52] : memref<8x2x96xf32, #tpu.memory_space<vmem>>, vector<1x2x96xf32>
    %89 = vector.shape_cast %88 : vector<1x2x96xf32> to vector<2x96xf32>
    %c0_53 = arith.constant 0 : index
    %c0_54 = arith.constant 0 : index
    %90 = vector.load %arg8[%c0_53, %c0_54] : memref<2x32xf32, #tpu.memory_space<vmem>>, vector<2x32xf32>
    %cst_55 = arith.constant dense<0.000000e+00> : vector<2x96xf32>
    %91 = tpu.matmul %90, %2, %cst_55 {dimension_numbers = #tpu.dot_dimension_numbers<[1], [0], [0], [1], [0, 0, 1, 1], [], []>} : vector<2x32xf32>, vector<32x96xf32>, vector<2x96xf32> -> vector<2x96xf32>
    %92 = vector.broadcast %3 : vector<1x96xf32> to vector<2x96xf32>
    %93 = arith.addf %91, %92 : vector<2x96xf32>
    %94 = vector.extract_strided_slice %89 {offsets = [0, 0], sizes = [2, 32], strides = [1, 1]} : vector<2x96xf32> to vector<2x32xf32>
    %95 = vector.extract_strided_slice %93 {offsets = [0, 0], sizes = [2, 32], strides = [1, 1]} : vector<2x96xf32> to vector<2x32xf32>
    %96 = arith.addf %94, %95 : vector<2x32xf32>
    %97 = arith.negf %96 : vector<2x32xf32>
    %98 = math.exp %97 : vector<2x32xf32>
    %cst_56 = arith.constant 1.000000e+00 : f32
    %99 = vector.broadcast %cst_56 : f32 to vector<2x32xf32>
    %100 = arith.addf %99, %98 : vector<2x32xf32>
    %101 = arith.divf %99, %100 : vector<2x32xf32>
    %102 = vector.extract_strided_slice %89 {offsets = [0, 32], sizes = [2, 32], strides = [1, 1]} : vector<2x96xf32> to vector<2x32xf32>
    %103 = vector.extract_strided_slice %93 {offsets = [0, 32], sizes = [2, 32], strides = [1, 1]} : vector<2x96xf32> to vector<2x32xf32>
    %104 = arith.addf %102, %103 : vector<2x32xf32>
    %105 = arith.negf %104 : vector<2x32xf32>
    %106 = math.exp %105 : vector<2x32xf32>
    %cst_57 = arith.constant 1.000000e+00 : f32
    %107 = vector.broadcast %cst_57 : f32 to vector<2x32xf32>
    %108 = arith.addf %107, %106 : vector<2x32xf32>
    %109 = arith.divf %107, %108 : vector<2x32xf32>
    %110 = vector.extract_strided_slice %89 {offsets = [0, 64], sizes = [2, 32], strides = [1, 1]} : vector<2x96xf32> to vector<2x32xf32>
    %111 = vector.extract_strided_slice %93 {offsets = [0, 64], sizes = [2, 32], strides = [1, 1]} : vector<2x96xf32> to vector<2x32xf32>
    %112 = arith.mulf %101, %111 : vector<2x32xf32>
    %113 = arith.addf %110, %112 : vector<2x32xf32>
    %114 = math.tanh %113 : vector<2x32xf32>
    %cst_58 = arith.constant 1.000000e+00 : f32
    %115 = vector.broadcast %cst_58 : f32 to vector<2x32xf32>
    %116 = arith.subf %115, %109 : vector<2x32xf32>
    %117 = arith.mulf %116, %114 : vector<2x32xf32>
    %118 = arith.mulf %109, %90 : vector<2x32xf32>
    %119 = arith.addf %117, %118 : vector<2x32xf32>
    %c0_59 = arith.constant 0 : index
    %c0_60 = arith.constant 0 : index
    %120 = vector.load %arg8[%c0_59, %c0_60] : memref<2x32xf32, #tpu.memory_space<vmem>>, vector<2x32xf32>
    tpu.vector_store %arg8[%c0_59, %c0_60], %119 {strides = array<i32>} : memref<2x32xf32, #tpu.memory_space<vmem>>, vector<2x32xf32>,
    %121 = arith.index_cast %86 : i32 to index
    %c0_61 = arith.constant 0 : index
    %c0_62 = arith.constant 0 : index
    %122 = vector.load %arg1[%121, %c0_61, %c0_62] : memref<8x2x32xf32, #tpu.memory_space<vmem>>, vector<1x2x32xf32>
    %123 = vector.shape_cast %122 : vector<1x2x32xf32> to vector<2x32xf32>
    %124 = arith.addf %123, %119 : vector<2x32xf32>
    %125 = arith.index_cast %86 : i32 to index
    %c0_63 = arith.constant 0 : index
    %c0_64 = arith.constant 0 : index
    %126 = vector.load %arg6[%125, %c0_63, %c0_64] : memref<8x2x32xf32, #tpu.memory_space<vmem>>, vector<1x2x32xf32>
    %127 = vector.shape_cast %126 : vector<1x2x32xf32> to vector<2x32xf32>
    %128 = vector.shape_cast %124 : vector<2x32xf32> to vector<1x2x32xf32>
    tpu.vector_store %arg6[%125, %c0_63, %c0_64], %128 {strides = array<i32>} : memref<8x2x32xf32, #tpu.memory_space<vmem>>, vector<1x2x32xf32>,
    %c1_i32_65 = arith.constant 1 : i32
    %c7_i32_66 = arith.constant 7 : i32
    %129 = arith.subi %c7_i32_66, %c1_i32_65 : i32
    %130 = arith.index_cast %129 : i32 to index
    %c0_67 = arith.constant 0 : index
    %c0_68 = arith.constant 0 : index
    %131 = vector.load %arg7[%130, %c0_67, %c0_68] : memref<8x2x96xf32, #tpu.memory_space<vmem>>, vector<1x2x96xf32>
    %132 = vector.shape_cast %131 : vector<1x2x96xf32> to vector<2x96xf32>
    %c0_69 = arith.constant 0 : index
    %c0_70 = arith.constant 0 : index
    %133 = vector.load %arg8[%c0_69, %c0_70] : memref<2x32xf32, #tpu.memory_space<vmem>>, vector<2x32xf32>
    %cst_71 = arith.constant dense<0.000000e+00> : vector<2x96xf32>
    %134 = tpu.matmul %133, %2, %cst_71 {dimension_numbers = #tpu.dot_dimension_numbers<[1], [0], [0], [1], [0, 0, 1, 1], [], []>} : vector<2x32xf32>, vector<32x96xf32>, vector<2x96xf32> -> vector<2x96xf32>
    %135 = vector.broadcast %3 : vector<1x96xf32> to vector<2x96xf32>
    %136 = arith.addf %134, %135 : vector<2x96xf32>
    %137 = vector.extract_strided_slice %132 {offsets = [0, 0], sizes = [2, 32], strides = [1, 1]} : vector<2x96xf32> to vector<2x32xf32>
    %138 = vector.extract_strided_slice %136 {offsets = [0, 0], sizes = [2, 32], strides = [1, 1]} : vector<2x96xf32> to vector<2x32xf32>
    %139 = arith.addf %137, %138 : vector<2x32xf32>
    %140 = arith.negf %139 : vector<2x32xf32>
    %141 = math.exp %140 : vector<2x32xf32>
    %cst_72 = arith.constant 1.000000e+00 : f32
    %142 = vector.broadcast %cst_72 : f32 to vector<2x32xf32>
    %143 = arith.addf %142, %141 : vector<2x32xf32>
    %144 = arith.divf %142, %143 : vector<2x32xf32>
    %145 = vector.extract_strided_slice %132 {offsets = [0, 32], sizes = [2, 32], strides = [1, 1]} : vector<2x96xf32> to vector<2x32xf32>
    %146 = vector.extract_strided_slice %136 {offsets = [0, 32], sizes = [2, 32], strides = [1, 1]} : vector<2x96xf32> to vector<2x32xf32>
    %147 = arith.addf %145, %146 : vector<2x32xf32>
    %148 = arith.negf %147 : vector<2x32xf32>
    %149 = math.exp %148 : vector<2x32xf32>
    %cst_73 = arith.constant 1.000000e+00 : f32
    %150 = vector.broadcast %cst_73 : f32 to vector<2x32xf32>
    %151 = arith.addf %150, %149 : vector<2x32xf32>
    %152 = arith.divf %150, %151 : vector<2x32xf32>
    %153 = vector.extract_strided_slice %132 {offsets = [0, 64], sizes = [2, 32], strides = [1, 1]} : vector<2x96xf32> to vector<2x32xf32>
    %154 = vector.extract_strided_slice %136 {offsets = [0, 64], sizes = [2, 32], strides = [1, 1]} : vector<2x96xf32> to vector<2x32xf32>
    %155 = arith.mulf %144, %154 : vector<2x32xf32>
    %156 = arith.addf %153, %155 : vector<2x32xf32>
    %157 = math.tanh %156 : vector<2x32xf32>
    %cst_74 = arith.constant 1.000000e+00 : f32
    %158 = vector.broadcast %cst_74 : f32 to vector<2x32xf32>
    %159 = arith.subf %158, %152 : vector<2x32xf32>
    %160 = arith.mulf %159, %157 : vector<2x32xf32>
    %161 = arith.mulf %152, %133 : vector<2x32xf32>
    %162 = arith.addf %160, %161 : vector<2x32xf32>
    %c0_75 = arith.constant 0 : index
    %c0_76 = arith.constant 0 : index
    %163 = vector.load %arg8[%c0_75, %c0_76] : memref<2x32xf32, #tpu.memory_space<vmem>>, vector<2x32xf32>
    tpu.vector_store %arg8[%c0_75, %c0_76], %162 {strides = array<i32>} : memref<2x32xf32, #tpu.memory_space<vmem>>, vector<2x32xf32>,
    %164 = arith.index_cast %129 : i32 to index
    %c0_77 = arith.constant 0 : index
    %c0_78 = arith.constant 0 : index
    %165 = vector.load %arg1[%164, %c0_77, %c0_78] : memref<8x2x32xf32, #tpu.memory_space<vmem>>, vector<1x2x32xf32>
    %166 = vector.shape_cast %165 : vector<1x2x32xf32> to vector<2x32xf32>
    %167 = arith.addf %166, %162 : vector<2x32xf32>
    %168 = arith.index_cast %129 : i32 to index
    %c0_79 = arith.constant 0 : index
    %c0_80 = arith.constant 0 : index
    %169 = vector.load %arg6[%168, %c0_79, %c0_80] : memref<8x2x32xf32, #tpu.memory_space<vmem>>, vector<1x2x32xf32>
    %170 = vector.shape_cast %169 : vector<1x2x32xf32> to vector<2x32xf32>
    %171 = vector.shape_cast %167 : vector<2x32xf32> to vector<1x2x32xf32>
    tpu.vector_store %arg6[%168, %c0_79, %c0_80], %171 {strides = array<i32>} : memref<8x2x32xf32, #tpu.memory_space<vmem>>, vector<1x2x32xf32>,
    %c2_i32_81 = arith.constant 2 : i32
    %c7_i32_82 = arith.constant 7 : i32
    %172 = arith.subi %c7_i32_82, %c2_i32_81 : i32
    %173 = arith.index_cast %172 : i32 to index
    %c0_83 = arith.constant 0 : index
    %c0_84 = arith.constant 0 : index
    %174 = vector.load %arg7[%173, %c0_83, %c0_84] : memref<8x2x96xf32, #tpu.memory_space<vmem>>, vector<1x2x96xf32>
    %175 = vector.shape_cast %174 : vector<1x2x96xf32> to vector<2x96xf32>
    %c0_85 = arith.constant 0 : index
    %c0_86 = arith.constant 0 : index
    %176 = vector.load %arg8[%c0_85, %c0_86] : memref<2x32xf32, #tpu.memory_space<vmem>>, vector<2x32xf32>
    %cst_87 = arith.constant dense<0.000000e+00> : vector<2x96xf32>
    %177 = tpu.matmul %176, %2, %cst_87 {dimension_numbers = #tpu.dot_dimension_numbers<[1], [0], [0], [1], [0, 0, 1, 1], [], []>} : vector<2x32xf32>, vector<32x96xf32>, vector<2x96xf32> -> vector<2x96xf32>
    %178 = vector.broadcast %3 : vector<1x96xf32> to vector<2x96xf32>
    %179 = arith.addf %177, %178 : vector<2x96xf32>
    %180 = vector.extract_strided_slice %175 {offsets = [0, 0], sizes = [2, 32], strides = [1, 1]} : vector<2x96xf32> to vector<2x32xf32>
    %181 = vector.extract_strided_slice %179 {offsets = [0, 0], sizes = [2, 32], strides = [1, 1]} : vector<2x96xf32> to vector<2x32xf32>
    %182 = arith.addf %180, %181 : vector<2x32xf32>
    %183 = arith.negf %182 : vector<2x32xf32>
    %184 = math.exp %183 : vector<2x32xf32>
    %cst_88 = arith.constant 1.000000e+00 : f32
    %185 = vector.broadcast %cst_88 : f32 to vector<2x32xf32>
    %186 = arith.addf %185, %184 : vector<2x32xf32>
    %187 = arith.divf %185, %186 : vector<2x32xf32>
    %188 = vector.extract_strided_slice %175 {offsets = [0, 32], sizes = [2, 32], strides = [1, 1]} : vector<2x96xf32> to vector<2x32xf32>
    %189 = vector.extract_strided_slice %179 {offsets = [0, 32], sizes = [2, 32], strides = [1, 1]} : vector<2x96xf32> to vector<2x32xf32>
    %190 = arith.addf %188, %189 : vector<2x32xf32>
    %191 = arith.negf %190 : vector<2x32xf32>
    %192 = math.exp %191 : vector<2x32xf32>
    %cst_89 = arith.constant 1.000000e+00 : f32
    %193 = vector.broadcast %cst_89 : f32 to vector<2x32xf32>
    %194 = arith.addf %193, %192 : vector<2x32xf32>
    %195 = arith.divf %193, %194 : vector<2x32xf32>
    %196 = vector.extract_strided_slice %175 {offsets = [0, 64], sizes = [2, 32], strides = [1, 1]} : vector<2x96xf32> to vector<2x32xf32>
    %197 = vector.extract_strided_slice %179 {offsets = [0, 64], sizes = [2, 32], strides = [1, 1]} : vector<2x96xf32> to vector<2x32xf32>
    %198 = arith.mulf %187, %197 : vector<2x32xf32>
    %199 = arith.addf %196, %198 : vector<2x32xf32>
    %200 = math.tanh %199 : vector<2x32xf32>
    %cst_90 = arith.constant 1.000000e+00 : f32
    %201 = vector.broadcast %cst_90 : f32 to vector<2x32xf32>
    %202 = arith.subf %201, %195 : vector<2x32xf32>
    %203 = arith.mulf %202, %200 : vector<2x32xf32>
    %204 = arith.mulf %195, %176 : vector<2x32xf32>
    %205 = arith.addf %203, %204 : vector<2x32xf32>
    %c0_91 = arith.constant 0 : index
    %c0_92 = arith.constant 0 : index
    %206 = vector.load %arg8[%c0_91, %c0_92] : memref<2x32xf32, #tpu.memory_space<vmem>>, vector<2x32xf32>
    tpu.vector_store %arg8[%c0_91, %c0_92], %205 {strides = array<i32>} : memref<2x32xf32, #tpu.memory_space<vmem>>, vector<2x32xf32>,
    %207 = arith.index_cast %172 : i32 to index
    %c0_93 = arith.constant 0 : index
    %c0_94 = arith.constant 0 : index
    %208 = vector.load %arg1[%207, %c0_93, %c0_94] : memref<8x2x32xf32, #tpu.memory_space<vmem>>, vector<1x2x32xf32>
    %209 = vector.shape_cast %208 : vector<1x2x32xf32> to vector<2x32xf32>
    %210 = arith.addf %209, %205 : vector<2x32xf32>
    %211 = arith.index_cast %172 : i32 to index
    %c0_95 = arith.constant 0 : index
    %c0_96 = arith.constant 0 : index
    %212 = vector.load %arg6[%211, %c0_95, %c0_96] : memref<8x2x32xf32, #tpu.memory_space<vmem>>, vector<1x2x32xf32>
    %213 = vector.shape_cast %212 : vector<1x2x32xf32> to vector<2x32xf32>
    %214 = vector.shape_cast %210 : vector<2x32xf32> to vector<1x2x32xf32>
    tpu.vector_store %arg6[%211, %c0_95, %c0_96], %214 {strides = array<i32>} : memref<8x2x32xf32, #tpu.memory_space<vmem>>, vector<1x2x32xf32>,
    %c3_i32_97 = arith.constant 3 : i32
    %c7_i32_98 = arith.constant 7 : i32
    %215 = arith.subi %c7_i32_98, %c3_i32_97 : i32
    %216 = arith.index_cast %215 : i32 to index
    %c0_99 = arith.constant 0 : index
    %c0_100 = arith.constant 0 : index
    %217 = vector.load %arg7[%216, %c0_99, %c0_100] : memref<8x2x96xf32, #tpu.memory_space<vmem>>, vector<1x2x96xf32>
    %218 = vector.shape_cast %217 : vector<1x2x96xf32> to vector<2x96xf32>
    %c0_101 = arith.constant 0 : index
    %c0_102 = arith.constant 0 : index
    %219 = vector.load %arg8[%c0_101, %c0_102] : memref<2x32xf32, #tpu.memory_space<vmem>>, vector<2x32xf32>
    %cst_103 = arith.constant dense<0.000000e+00> : vector<2x96xf32>
    %220 = tpu.matmul %219, %2, %cst_103 {dimension_numbers = #tpu.dot_dimension_numbers<[1], [0], [0], [1], [0, 0, 1, 1], [], []>} : vector<2x32xf32>, vector<32x96xf32>, vector<2x96xf32> -> vector<2x96xf32>
    %221 = vector.broadcast %3 : vector<1x96xf32> to vector<2x96xf32>
    %222 = arith.addf %220, %221 : vector<2x96xf32>
    %223 = vector.extract_strided_slice %218 {offsets = [0, 0], sizes = [2, 32], strides = [1, 1]} : vector<2x96xf32> to vector<2x32xf32>
    %224 = vector.extract_strided_slice %222 {offsets = [0, 0], sizes = [2, 32], strides = [1, 1]} : vector<2x96xf32> to vector<2x32xf32>
    %225 = arith.addf %223, %224 : vector<2x32xf32>
    %226 = arith.negf %225 : vector<2x32xf32>
    %227 = math.exp %226 : vector<2x32xf32>
    %cst_104 = arith.constant 1.000000e+00 : f32
    %228 = vector.broadcast %cst_104 : f32 to vector<2x32xf32>
    %229 = arith.addf %228, %227 : vector<2x32xf32>
    %230 = arith.divf %228, %229 : vector<2x32xf32>
    %231 = vector.extract_strided_slice %218 {offsets = [0, 32], sizes = [2, 32], strides = [1, 1]} : vector<2x96xf32> to vector<2x32xf32>
    %232 = vector.extract_strided_slice %222 {offsets = [0, 32], sizes = [2, 32], strides = [1, 1]} : vector<2x96xf32> to vector<2x32xf32>
    %233 = arith.addf %231, %232 : vector<2x32xf32>
    %234 = arith.negf %233 : vector<2x32xf32>
    %235 = math.exp %234 : vector<2x32xf32>
    %cst_105 = arith.constant 1.000000e+00 : f32
    %236 = vector.broadcast %cst_105 : f32 to vector<2x32xf32>
    %237 = arith.addf %236, %235 : vector<2x32xf32>
    %238 = arith.divf %236, %237 : vector<2x32xf32>
    %239 = vector.extract_strided_slice %218 {offsets = [0, 64], sizes = [2, 32], strides = [1, 1]} : vector<2x96xf32> to vector<2x32xf32>
    %240 = vector.extract_strided_slice %222 {offsets = [0, 64], sizes = [2, 32], strides = [1, 1]} : vector<2x96xf32> to vector<2x32xf32>
    %241 = arith.mulf %230, %240 : vector<2x32xf32>
    %242 = arith.addf %239, %241 : vector<2x32xf32>
    %243 = math.tanh %242 : vector<2x32xf32>
    %cst_106 = arith.constant 1.000000e+00 : f32
    %244 = vector.broadcast %cst_106 : f32 to vector<2x32xf32>
    %245 = arith.subf %244, %238 : vector<2x32xf32>
    %246 = arith.mulf %245, %243 : vector<2x32xf32>
    %247 = arith.mulf %238, %219 : vector<2x32xf32>
    %248 = arith.addf %246, %247 : vector<2x32xf32>
    %c0_107 = arith.constant 0 : index
    %c0_108 = arith.constant 0 : index
    %249 = vector.load %arg8[%c0_107, %c0_108] : memref<2x32xf32, #tpu.memory_space<vmem>>, vector<2x32xf32>
    tpu.vector_store %arg8[%c0_107, %c0_108], %248 {strides = array<i32>} : memref<2x32xf32, #tpu.memory_space<vmem>>, vector<2x32xf32>,
    %250 = arith.index_cast %215 : i32 to index
    %c0_109 = arith.constant 0 : index
    %c0_110 = arith.constant 0 : index
    %251 = vector.load %arg1[%250, %c0_109, %c0_110] : memref<8x2x32xf32, #tpu.memory_space<vmem>>, vector<1x2x32xf32>
    %252 = vector.shape_cast %251 : vector<1x2x32xf32> to vector<2x32xf32>
    %253 = arith.addf %252, %248 : vector<2x32xf32>
    %254 = arith.index_cast %215 : i32 to index
    %c0_111 = arith.constant 0 : index
    %c0_112 = arith.constant 0 : index
    %255 = vector.load %arg6[%254, %c0_111, %c0_112] : memref<8x2x32xf32, #tpu.memory_space<vmem>>, vector<1x2x32xf32>
    %256 = vector.shape_cast %255 : vector<1x2x32xf32> to vector<2x32xf32>
    %257 = vector.shape_cast %253 : vector<2x32xf32> to vector<1x2x32xf32>
    tpu.vector_store %arg6[%254, %c0_111, %c0_112], %257 {strides = array<i32>} : memref<8x2x32xf32, #tpu.memory_space<vmem>>, vector<1x2x32xf32>,
    %c4_i32_113 = arith.constant 4 : i32
    %c7_i32_114 = arith.constant 7 : i32
    %258 = arith.subi %c7_i32_114, %c4_i32_113 : i32
    %259 = arith.index_cast %258 : i32 to index
    %c0_115 = arith.constant 0 : index
    %c0_116 = arith.constant 0 : index
    %260 = vector.load %arg7[%259, %c0_115, %c0_116] : memref<8x2x96xf32, #tpu.memory_space<vmem>>, vector<1x2x96xf32>
    %261 = vector.shape_cast %260 : vector<1x2x96xf32> to vector<2x96xf32>
    %c0_117 = arith.constant 0 : index
    %c0_118 = arith.constant 0 : index
    %262 = vector.load %arg8[%c0_117, %c0_118] : memref<2x32xf32, #tpu.memory_space<vmem>>, vector<2x32xf32>
    %cst_119 = arith.constant dense<0.000000e+00> : vector<2x96xf32>
    %263 = tpu.matmul %262, %2, %cst_119 {dimension_numbers = #tpu.dot_dimension_numbers<[1], [0], [0], [1], [0, 0, 1, 1], [], []>} : vector<2x32xf32>, vector<32x96xf32>, vector<2x96xf32> -> vector<2x96xf32>
    %264 = vector.broadcast %3 : vector<1x96xf32> to vector<2x96xf32>
    %265 = arith.addf %263, %264 : vector<2x96xf32>
    %266 = vector.extract_strided_slice %261 {offsets = [0, 0], sizes = [2, 32], strides = [1, 1]} : vector<2x96xf32> to vector<2x32xf32>
    %267 = vector.extract_strided_slice %265 {offsets = [0, 0], sizes = [2, 32], strides = [1, 1]} : vector<2x96xf32> to vector<2x32xf32>
    %268 = arith.addf %266, %267 : vector<2x32xf32>
    %269 = arith.negf %268 : vector<2x32xf32>
    %270 = math.exp %269 : vector<2x32xf32>
    %cst_120 = arith.constant 1.000000e+00 : f32
    %271 = vector.broadcast %cst_120 : f32 to vector<2x32xf32>
    %272 = arith.addf %271, %270 : vector<2x32xf32>
    %273 = arith.divf %271, %272 : vector<2x32xf32>
    %274 = vector.extract_strided_slice %261 {offsets = [0, 32], sizes = [2, 32], strides = [1, 1]} : vector<2x96xf32> to vector<2x32xf32>
    %275 = vector.extract_strided_slice %265 {offsets = [0, 32], sizes = [2, 32], strides = [1, 1]} : vector<2x96xf32> to vector<2x32xf32>
    %276 = arith.addf %274, %275 : vector<2x32xf32>
    %277 = arith.negf %276 : vector<2x32xf32>
    %278 = math.exp %277 : vector<2x32xf32>
    %cst_121 = arith.constant 1.000000e+00 : f32
    %279 = vector.broadcast %cst_121 : f32 to vector<2x32xf32>
    %280 = arith.addf %279, %278 : vector<2x32xf32>
    %281 = arith.divf %279, %280 : vector<2x32xf32>
    %282 = vector.extract_strided_slice %261 {offsets = [0, 64], sizes = [2, 32], strides = [1, 1]} : vector<2x96xf32> to vector<2x32xf32>
    %283 = vector.extract_strided_slice %265 {offsets = [0, 64], sizes = [2, 32], strides = [1, 1]} : vector<2x96xf32> to vector<2x32xf32>
    %284 = arith.mulf %273, %283 : vector<2x32xf32>
    %285 = arith.addf %282, %284 : vector<2x32xf32>
    %286 = math.tanh %285 : vector<2x32xf32>
    %cst_122 = arith.constant 1.000000e+00 : f32
    %287 = vector.broadcast %cst_122 : f32 to vector<2x32xf32>
    %288 = arith.subf %287, %281 : vector<2x32xf32>
    %289 = arith.mulf %288, %286 : vector<2x32xf32>
    %290 = arith.mulf %281, %262 : vector<2x32xf32>
    %291 = arith.addf %289, %290 : vector<2x32xf32>
    %c0_123 = arith.constant 0 : index
    %c0_124 = arith.constant 0 : index
    %292 = vector.load %arg8[%c0_123, %c0_124] : memref<2x32xf32, #tpu.memory_space<vmem>>, vector<2x32xf32>
    tpu.vector_store %arg8[%c0_123, %c0_124], %291 {strides = array<i32>} : memref<2x32xf32, #tpu.memory_space<vmem>>, vector<2x32xf32>,
    %293 = arith.index_cast %258 : i32 to index
    %c0_125 = arith.constant 0 : index
    %c0_126 = arith.constant 0 : index
    %294 = vector.load %arg1[%293, %c0_125, %c0_126] : memref<8x2x32xf32, #tpu.memory_space<vmem>>, vector<1x2x32xf32>
    %295 = vector.shape_cast %294 : vector<1x2x32xf32> to vector<2x32xf32>
    %296 = arith.addf %295, %291 : vector<2x32xf32>
    %297 = arith.index_cast %258 : i32 to index
    %c0_127 = arith.constant 0 : index
    %c0_128 = arith.constant 0 : index
    %298 = vector.load %arg6[%297, %c0_127, %c0_128] : memref<8x2x32xf32, #tpu.memory_space<vmem>>, vector<1x2x32xf32>
    %299 = vector.shape_cast %298 : vector<1x2x32xf32> to vector<2x32xf32>
    %300 = vector.shape_cast %296 : vector<2x32xf32> to vector<1x2x32xf32>
    tpu.vector_store %arg6[%297, %c0_127, %c0_128], %300 {strides = array<i32>} : memref<8x2x32xf32, #tpu.memory_space<vmem>>, vector<1x2x32xf32>,
    %c5_i32_129 = arith.constant 5 : i32
    %c7_i32_130 = arith.constant 7 : i32
    %301 = arith.subi %c7_i32_130, %c5_i32_129 : i32
    %302 = arith.index_cast %301 : i32 to index
    %c0_131 = arith.constant 0 : index
    %c0_132 = arith.constant 0 : index
    %303 = vector.load %arg7[%302, %c0_131, %c0_132] : memref<8x2x96xf32, #tpu.memory_space<vmem>>, vector<1x2x96xf32>
    %304 = vector.shape_cast %303 : vector<1x2x96xf32> to vector<2x96xf32>
    %c0_133 = arith.constant 0 : index
    %c0_134 = arith.constant 0 : index
    %305 = vector.load %arg8[%c0_133, %c0_134] : memref<2x32xf32, #tpu.memory_space<vmem>>, vector<2x32xf32>
    %cst_135 = arith.constant dense<0.000000e+00> : vector<2x96xf32>
    %306 = tpu.matmul %305, %2, %cst_135 {dimension_numbers = #tpu.dot_dimension_numbers<[1], [0], [0], [1], [0, 0, 1, 1], [], []>} : vector<2x32xf32>, vector<32x96xf32>, vector<2x96xf32> -> vector<2x96xf32>
    %307 = vector.broadcast %3 : vector<1x96xf32> to vector<2x96xf32>
    %308 = arith.addf %306, %307 : vector<2x96xf32>
    %309 = vector.extract_strided_slice %304 {offsets = [0, 0], sizes = [2, 32], strides = [1, 1]} : vector<2x96xf32> to vector<2x32xf32>
    %310 = vector.extract_strided_slice %308 {offsets = [0, 0], sizes = [2, 32], strides = [1, 1]} : vector<2x96xf32> to vector<2x32xf32>
    %311 = arith.addf %309, %310 : vector<2x32xf32>
    %312 = arith.negf %311 : vector<2x32xf32>
    %313 = math.exp %312 : vector<2x32xf32>
    %cst_136 = arith.constant 1.000000e+00 : f32
    %314 = vector.broadcast %cst_136 : f32 to vector<2x32xf32>
    %315 = arith.addf %314, %313 : vector<2x32xf32>
    %316 = arith.divf %314, %315 : vector<2x32xf32>
    %317 = vector.extract_strided_slice %304 {offsets = [0, 32], sizes = [2, 32], strides = [1, 1]} : vector<2x96xf32> to vector<2x32xf32>
    %318 = vector.extract_strided_slice %308 {offsets = [0, 32], sizes = [2, 32], strides = [1, 1]} : vector<2x96xf32> to vector<2x32xf32>
    %319 = arith.addf %317, %318 : vector<2x32xf32>
    %320 = arith.negf %319 : vector<2x32xf32>
    %321 = math.exp %320 : vector<2x32xf32>
    %cst_137 = arith.constant 1.000000e+00 : f32
    %322 = vector.broadcast %cst_137 : f32 to vector<2x32xf32>
    %323 = arith.addf %322, %321 : vector<2x32xf32>
    %324 = arith.divf %322, %323 : vector<2x32xf32>
    %325 = vector.extract_strided_slice %304 {offsets = [0, 64], sizes = [2, 32], strides = [1, 1]} : vector<2x96xf32> to vector<2x32xf32>
    %326 = vector.extract_strided_slice %308 {offsets = [0, 64], sizes = [2, 32], strides = [1, 1]} : vector<2x96xf32> to vector<2x32xf32>
    %327 = arith.mulf %316, %326 : vector<2x32xf32>
    %328 = arith.addf %325, %327 : vector<2x32xf32>
    %329 = math.tanh %328 : vector<2x32xf32>
    %cst_138 = arith.constant 1.000000e+00 : f32
    %330 = vector.broadcast %cst_138 : f32 to vector<2x32xf32>
    %331 = arith.subf %330, %324 : vector<2x32xf32>
    %332 = arith.mulf %331, %329 : vector<2x32xf32>
    %333 = arith.mulf %324, %305 : vector<2x32xf32>
    %334 = arith.addf %332, %333 : vector<2x32xf32>
    %c0_139 = arith.constant 0 : index
    %c0_140 = arith.constant 0 : index
    %335 = vector.load %arg8[%c0_139, %c0_140] : memref<2x32xf32, #tpu.memory_space<vmem>>, vector<2x32xf32>
    tpu.vector_store %arg8[%c0_139, %c0_140], %334 {strides = array<i32>} : memref<2x32xf32, #tpu.memory_space<vmem>>, vector<2x32xf32>,
    %336 = arith.index_cast %301 : i32 to index
    %c0_141 = arith.constant 0 : index
    %c0_142 = arith.constant 0 : index
    %337 = vector.load %arg1[%336, %c0_141, %c0_142] : memref<8x2x32xf32, #tpu.memory_space<vmem>>, vector<1x2x32xf32>
    %338 = vector.shape_cast %337 : vector<1x2x32xf32> to vector<2x32xf32>
    %339 = arith.addf %338, %334 : vector<2x32xf32>
    %340 = arith.index_cast %301 : i32 to index
    %c0_143 = arith.constant 0 : index
    %c0_144 = arith.constant 0 : index
    %341 = vector.load %arg6[%340, %c0_143, %c0_144] : memref<8x2x32xf32, #tpu.memory_space<vmem>>, vector<1x2x32xf32>
    %342 = vector.shape_cast %341 : vector<1x2x32xf32> to vector<2x32xf32>
    %343 = vector.shape_cast %339 : vector<2x32xf32> to vector<1x2x32xf32>
    tpu.vector_store %arg6[%340, %c0_143, %c0_144], %343 {strides = array<i32>} : memref<8x2x32xf32, #tpu.memory_space<vmem>>, vector<1x2x32xf32>,
    %c6_i32_145 = arith.constant 6 : i32
    %c7_i32_146 = arith.constant 7 : i32
    %344 = arith.subi %c7_i32_146, %c6_i32_145 : i32
    %345 = arith.index_cast %344 : i32 to index
    %c0_147 = arith.constant 0 : index
    %c0_148 = arith.constant 0 : index
    %346 = vector.load %arg7[%345, %c0_147, %c0_148] : memref<8x2x96xf32, #tpu.memory_space<vmem>>, vector<1x2x96xf32>
    %347 = vector.shape_cast %346 : vector<1x2x96xf32> to vector<2x96xf32>
    %c0_149 = arith.constant 0 : index
    %c0_150 = arith.constant 0 : index
    %348 = vector.load %arg8[%c0_149, %c0_150] : memref<2x32xf32, #tpu.memory_space<vmem>>, vector<2x32xf32>
    %cst_151 = arith.constant dense<0.000000e+00> : vector<2x96xf32>
    %349 = tpu.matmul %348, %2, %cst_151 {dimension_numbers = #tpu.dot_dimension_numbers<[1], [0], [0], [1], [0, 0, 1, 1], [], []>} : vector<2x32xf32>, vector<32x96xf32>, vector<2x96xf32> -> vector<2x96xf32>
    %350 = vector.broadcast %3 : vector<1x96xf32> to vector<2x96xf32>
    %351 = arith.addf %349, %350 : vector<2x96xf32>
    %352 = vector.extract_strided_slice %347 {offsets = [0, 0], sizes = [2, 32], strides = [1, 1]} : vector<2x96xf32> to vector<2x32xf32>
    %353 = vector.extract_strided_slice %351 {offsets = [0, 0], sizes = [2, 32], strides = [1, 1]} : vector<2x96xf32> to vector<2x32xf32>
    %354 = arith.addf %352, %353 : vector<2x32xf32>
    %355 = arith.negf %354 : vector<2x32xf32>
    %356 = math.exp %355 : vector<2x32xf32>
    %cst_152 = arith.constant 1.000000e+00 : f32
    %357 = vector.broadcast %cst_152 : f32 to vector<2x32xf32>
    %358 = arith.addf %357, %356 : vector<2x32xf32>
    %359 = arith.divf %357, %358 : vector<2x32xf32>
    %360 = vector.extract_strided_slice %347 {offsets = [0, 32], sizes = [2, 32], strides = [1, 1]} : vector<2x96xf32> to vector<2x32xf32>
    %361 = vector.extract_strided_slice %351 {offsets = [0, 32], sizes = [2, 32], strides = [1, 1]} : vector<2x96xf32> to vector<2x32xf32>
    %362 = arith.addf %360, %361 : vector<2x32xf32>
    %363 = arith.negf %362 : vector<2x32xf32>
    %364 = math.exp %363 : vector<2x32xf32>
    %cst_153 = arith.constant 1.000000e+00 : f32
    %365 = vector.broadcast %cst_153 : f32 to vector<2x32xf32>
    %366 = arith.addf %365, %364 : vector<2x32xf32>
    %367 = arith.divf %365, %366 : vector<2x32xf32>
    %368 = vector.extract_strided_slice %347 {offsets = [0, 64], sizes = [2, 32], strides = [1, 1]} : vector<2x96xf32> to vector<2x32xf32>
    %369 = vector.extract_strided_slice %351 {offsets = [0, 64], sizes = [2, 32], strides = [1, 1]} : vector<2x96xf32> to vector<2x32xf32>
    %370 = arith.mulf %359, %369 : vector<2x32xf32>
    %371 = arith.addf %368, %370 : vector<2x32xf32>
    %372 = math.tanh %371 : vector<2x32xf32>
    %cst_154 = arith.constant 1.000000e+00 : f32
    %373 = vector.broadcast %cst_154 : f32 to vector<2x32xf32>
    %374 = arith.subf %373, %367 : vector<2x32xf32>
    %375 = arith.mulf %374, %372 : vector<2x32xf32>
    %376 = arith.mulf %367, %348 : vector<2x32xf32>
    %377 = arith.addf %375, %376 : vector<2x32xf32>
    %c0_155 = arith.constant 0 : index
    %c0_156 = arith.constant 0 : index
    %378 = vector.load %arg8[%c0_155, %c0_156] : memref<2x32xf32, #tpu.memory_space<vmem>>, vector<2x32xf32>
    tpu.vector_store %arg8[%c0_155, %c0_156], %377 {strides = array<i32>} : memref<2x32xf32, #tpu.memory_space<vmem>>, vector<2x32xf32>,
    %379 = arith.index_cast %344 : i32 to index
    %c0_157 = arith.constant 0 : index
    %c0_158 = arith.constant 0 : index
    %380 = vector.load %arg1[%379, %c0_157, %c0_158] : memref<8x2x32xf32, #tpu.memory_space<vmem>>, vector<1x2x32xf32>
    %381 = vector.shape_cast %380 : vector<1x2x32xf32> to vector<2x32xf32>
    %382 = arith.addf %381, %377 : vector<2x32xf32>
    %383 = arith.index_cast %344 : i32 to index
    %c0_159 = arith.constant 0 : index
    %c0_160 = arith.constant 0 : index
    %384 = vector.load %arg6[%383, %c0_159, %c0_160] : memref<8x2x32xf32, #tpu.memory_space<vmem>>, vector<1x2x32xf32>
    %385 = vector.shape_cast %384 : vector<1x2x32xf32> to vector<2x32xf32>
    %386 = vector.shape_cast %382 : vector<2x32xf32> to vector<1x2x32xf32>
    tpu.vector_store %arg6[%383, %c0_159, %c0_160], %386 {strides = array<i32>} : memref<8x2x32xf32, #tpu.memory_space<vmem>>, vector<1x2x32xf32>,
    %c7_i32_161 = arith.constant 7 : i32
    %c7_i32_162 = arith.constant 7 : i32
    %387 = arith.subi %c7_i32_162, %c7_i32_161 : i32
    %388 = arith.index_cast %387 : i32 to index
    %c0_163 = arith.constant 0 : index
    %c0_164 = arith.constant 0 : index
    %389 = vector.load %arg7[%388, %c0_163, %c0_164] : memref<8x2x96xf32, #tpu.memory_space<vmem>>, vector<1x2x96xf32>
    %390 = vector.shape_cast %389 : vector<1x2x96xf32> to vector<2x96xf32>
    %c0_165 = arith.constant 0 : index
    %c0_166 = arith.constant 0 : index
    %391 = vector.load %arg8[%c0_165, %c0_166] : memref<2x32xf32, #tpu.memory_space<vmem>>, vector<2x32xf32>
    %cst_167 = arith.constant dense<0.000000e+00> : vector<2x96xf32>
    %392 = tpu.matmul %391, %2, %cst_167 {dimension_numbers = #tpu.dot_dimension_numbers<[1], [0], [0], [1], [0, 0, 1, 1], [], []>} : vector<2x32xf32>, vector<32x96xf32>, vector<2x96xf32> -> vector<2x96xf32>
    %393 = vector.broadcast %3 : vector<1x96xf32> to vector<2x96xf32>
    %394 = arith.addf %392, %393 : vector<2x96xf32>
    %395 = vector.extract_strided_slice %390 {offsets = [0, 0], sizes = [2, 32], strides = [1, 1]} : vector<2x96xf32> to vector<2x32xf32>
    %396 = vector.extract_strided_slice %394 {offsets = [0, 0], sizes = [2, 32], strides = [1, 1]} : vector<2x96xf32> to vector<2x32xf32>
    %397 = arith.addf %395, %396 : vector<2x32xf32>
    %398 = arith.negf %397 : vector<2x32xf32>
    %399 = math.exp %398 : vector<2x32xf32>
    %cst_168 = arith.constant 1.000000e+00 : f32
    %400 = vector.broadcast %cst_168 : f32 to vector<2x32xf32>
    %401 = arith.addf %400, %399 : vector<2x32xf32>
    %402 = arith.divf %400, %401 : vector<2x32xf32>
    %403 = vector.extract_strided_slice %390 {offsets = [0, 32], sizes = [2, 32], strides = [1, 1]} : vector<2x96xf32> to vector<2x32xf32>
    %404 = vector.extract_strided_slice %394 {offsets = [0, 32], sizes = [2, 32], strides = [1, 1]} : vector<2x96xf32> to vector<2x32xf32>
    %405 = arith.addf %403, %404 : vector<2x32xf32>
    %406 = arith.negf %405 : vector<2x32xf32>
    %407 = math.exp %406 : vector<2x32xf32>
    %cst_169 = arith.constant 1.000000e+00 : f32
    %408 = vector.broadcast %cst_169 : f32 to vector<2x32xf32>
    %409 = arith.addf %408, %407 : vector<2x32xf32>
    %410 = arith.divf %408, %409 : vector<2x32xf32>
    %411 = vector.extract_strided_slice %390 {offsets = [0, 64], sizes = [2, 32], strides = [1, 1]} : vector<2x96xf32> to vector<2x32xf32>
    %412 = vector.extract_strided_slice %394 {offsets = [0, 64], sizes = [2, 32], strides = [1, 1]} : vector<2x96xf32> to vector<2x32xf32>
    %413 = arith.mulf %402, %412 : vector<2x32xf32>
    %414 = arith.addf %411, %413 : vector<2x32xf32>
    %415 = math.tanh %414 : vector<2x32xf32>
    %cst_170 = arith.constant 1.000000e+00 : f32
    %416 = vector.broadcast %cst_170 : f32 to vector<2x32xf32>
    %417 = arith.subf %416, %410 : vector<2x32xf32>
    %418 = arith.mulf %417, %415 : vector<2x32xf32>
    %419 = arith.mulf %410, %391 : vector<2x32xf32>
    %420 = arith.addf %418, %419 : vector<2x32xf32>
    %c0_171 = arith.constant 0 : index
    %c0_172 = arith.constant 0 : index
    %421 = vector.load %arg8[%c0_171, %c0_172] : memref<2x32xf32, #tpu.memory_space<vmem>>, vector<2x32xf32>
    tpu.vector_store %arg8[%c0_171, %c0_172], %420 {strides = array<i32>} : memref<2x32xf32, #tpu.memory_space<vmem>>, vector<2x32xf32>,
    %422 = arith.index_cast %387 : i32 to index
    %c0_173 = arith.constant 0 : index
    %c0_174 = arith.constant 0 : index
    %423 = vector.load %arg1[%422, %c0_173, %c0_174] : memref<8x2x32xf32, #tpu.memory_space<vmem>>, vector<1x2x32xf32>
    %424 = vector.shape_cast %423 : vector<1x2x32xf32> to vector<2x32xf32>
    %425 = arith.addf %424, %420 : vector<2x32xf32>
    %426 = arith.index_cast %387 : i32 to index
    %c0_175 = arith.constant 0 : index
    %c0_176 = arith.constant 0 : index
    %427 = vector.load %arg6[%426, %c0_175, %c0_176] : memref<8x2x32xf32, #tpu.memory_space<vmem>>, vector<1x2x32xf32>
    %428 = vector.shape_cast %427 : vector<1x2x32xf32> to vector<2x32xf32>
    %429 = vector.shape_cast %425 : vector<2x32xf32> to vector<1x2x32xf32>
    tpu.vector_store %arg6[%426, %c0_175, %c0_176], %429 {strides = array<i32>} : memref<8x2x32xf32, #tpu.memory_space<vmem>>, vector<1x2x32xf32>,
    %c8_i32_177 = arith.constant 8 : i32
    return
  }
  func.func @transform_0(%arg0: i32) -> (i32, i32, i32) {
    %c0_i32 = arith.constant 0 : i32
    %c0_i32_0 = arith.constant 0 : i32
    %c0_i32_1 = arith.constant 0 : i32
    %c0_i32_2 = arith.constant 0 : i32
    return %c0_i32, %c0_i32_0, %c0_i32_1 : i32, i32, i32
  }
  func.func @transform_1(%arg0: i32) -> (i32, i32) {
    %c0_i32 = arith.constant 0 : i32
    %c0_i32_0 = arith.constant 0 : i32
    %c0_i32_1 = arith.constant 0 : i32
    return %c0_i32, %c0_i32_0 : i32, i32
  }
  func.func @transform_2(%arg0: i32) -> (i32, i32) {
    %c0_i32 = arith.constant 0 : i32
    %c0_i32_0 = arith.constant 0 : i32
    %c0_i32_1 = arith.constant 0 : i32
    return %c0_i32, %c0_i32_0 : i32, i32
  }
  func.func @transform_3(%arg0: i32) -> (i32, i32) {
    %c0_i32 = arith.constant 0 : i32
    %c0_i32_0 = arith.constant 0 : i32
    %c0_i32_1 = arith.constant 0 : i32
    return %c0_i32, %c0_i32_0 : i32, i32
  }
  func.func @transform_4(%arg0: i32) -> (i32, i32) {
    %c0_i32 = arith.constant 0 : i32
    %c0_i32_0 = arith.constant 0 : i32
    %c0_i32_1 = arith.constant 0 : i32
    return %c0_i32, %c0_i32_0 : i32, i32
  }
  func.func @transform_5(%arg0: i32) -> (i32, i32, i32) {
    %c0_i32 = arith.constant 0 : i32
    %c0_i32_0 = arith.constant 0 : i32
    %c0_i32_1 = arith.constant 0 : i32
    %c0_i32_2 = arith.constant 0 : i32
    return %c0_i32, %c0_i32_0, %c0_i32_1 : i32, i32, i32
  }
}

module attributes {stable_mosaic.version = 11 : i64} {
  func.func @head_kernel(%arg0: i32, %arg1: memref<16x32xf32, #tpu.memory_space<vmem>>, %arg2: memref<32x128xf32, #tpu.memory_space<vmem>>, %arg3: memref<1x128xf32, #tpu.memory_space<vmem>>, %arg4: memref<16x128xf32, #tpu.memory_space<vmem>>) attributes {dimension_semantics = [#tpu.dimension_semantics<parallel>], iteration_bounds = array<i64: 1>, scalar_prefetch = 0 : i64, scratch_operands = 0 : i64, tpu.core_type = #tpu.core_type<tc>, window_params = [{transform_indices = @transform_0, window_bounds = array<i64: 16, 32>}, {pipeline_mode = #tpu.pipeline_mode<synchronous>, transform_indices = @transform_1, window_bounds = array<i64: 32, 128>}, {pipeline_mode = #tpu.pipeline_mode<synchronous>, transform_indices = @transform_2, window_bounds = array<i64: 1, 128>}, {transform_indices = @transform_3, window_bounds = array<i64: 16, 128>}]} {
    %c0 = arith.constant 0 : index
    %c0_0 = arith.constant 0 : index
    %0 = vector.load %arg1[%c0, %c0_0] : memref<16x32xf32, #tpu.memory_space<vmem>>, vector<16x32xf32>
    %c0_1 = arith.constant 0 : index
    %c0_2 = arith.constant 0 : index
    %1 = vector.load %arg2[%c0_1, %c0_2] : memref<32x128xf32, #tpu.memory_space<vmem>>, vector<32x128xf32>
    %cst = arith.constant dense<0.000000e+00> : vector<16x128xf32>
    %2 = tpu.matmul %0, %1, %cst {dimension_numbers = #tpu.dot_dimension_numbers<[1], [0], [0], [1], [0, 0, 1, 1], [], []>} : vector<16x32xf32>, vector<32x128xf32>, vector<16x128xf32> -> vector<16x128xf32>
    %c0_3 = arith.constant 0 : index
    %c0_4 = arith.constant 0 : index
    %3 = vector.load %arg3[%c0_3, %c0_4] : memref<1x128xf32, #tpu.memory_space<vmem>>, vector<1x128xf32>
    %4 = vector.broadcast %3 : vector<1x128xf32> to vector<16x128xf32>
    %5 = arith.addf %2, %4 : vector<16x128xf32>
    %cst_5 = arith.constant dense<0xFF800000> : vector<16xf32>
    %6 = vector.multi_reduction <maximumf>, %5, %cst_5 [1] : vector<16x128xf32> to vector<16xf32>
    %7 = vector.shape_cast %6 : vector<16xf32> to vector<16x1xf32>
    %8 = vector.broadcast %7 : vector<16x1xf32> to vector<16x128xf32>
    %9 = arith.subf %5, %8 : vector<16x128xf32>
    %10 = math.exp %9 : vector<16x128xf32>
    %cst_6 = arith.constant dense<0.000000e+00> : vector<16xf32>
    %11 = vector.multi_reduction <add>, %10, %cst_6 [1] : vector<16x128xf32> to vector<16xf32>
    %12 = vector.shape_cast %11 : vector<16xf32> to vector<16x1xf32>
    %13 = math.log %12 : vector<16x1xf32>
    %14 = vector.broadcast %13 : vector<16x1xf32> to vector<16x128xf32>
    %15 = arith.subf %9, %14 : vector<16x128xf32>
    %c0_7 = arith.constant 0 : index
    %c0_8 = arith.constant 0 : index
    %16 = vector.load %arg4[%c0_7, %c0_8] : memref<16x128xf32, #tpu.memory_space<vmem>>, vector<16x128xf32>
    tpu.vector_store %arg4[%c0_7, %c0_8], %15 {strides = array<i32>} : memref<16x128xf32, #tpu.memory_space<vmem>>, vector<16x128xf32>,
    return
  }
  func.func @transform_0(%arg0: i32) -> (i32, i32) {
    %c0_i32 = arith.constant 0 : i32
    %c0_i32_0 = arith.constant 0 : i32
    return %arg0, %c0_i32 : i32, i32
  }
  func.func @transform_1(%arg0: i32) -> (i32, i32) {
    %c0_i32 = arith.constant 0 : i32
    %c0_i32_0 = arith.constant 0 : i32
    %c0_i32_1 = arith.constant 0 : i32
    return %c0_i32, %c0_i32_0 : i32, i32
  }
  func.func @transform_2(%arg0: i32) -> (i32, i32) {
    %c0_i32 = arith.constant 0 : i32
    %c0_i32_0 = arith.constant 0 : i32
    %c0_i32_1 = arith.constant 0 : i32
    return %c0_i32, %c0_i32_0 : i32, i32
  }
  func.func @transform_3(%arg0: i32) -> (i32, i32) {
    %c0_i32 = arith.constant 0 : i32
    %c0_i32_0 = arith.constant 0 : i32
    return %arg0, %c0_i32 : i32, i32
  }
}

</mosaic_0001>

<bundles_post_ra>
// kernel: bigru_predicate_detection.5
= control target key start
LH: loop header
LB: loop body
LE: loop exit
PB: predicated region body
PF: predicated region fallthrough
CT: control target
= control target key end

     0   :  { %vm24_vm0 = vcmask 261120   ;;  %s142_s1 = inlined_call_operand.vmem [shape: f32[32,128], index: 1, kind: input, shape index: {}]   ;;  %s143_s2 = inlined_call_operand.vmem [shape: f32[1,128], index: 2, kind: input, shape index: {}]   ;;  %s144_s0 = inlined_call_operand.vmem [shape: f32[16,32], index: 0, kind: input, shape index: {}]   ;;  %s145_s3 = inlined_call_operand.vmem [shape: f32[16,128], index: 3, kind: output, shape index: {}]  }
   0x1   :  { %v19_v0 = vld [vmem:[%s142_s1 + $0x18] sm:$0xff]  ;;  %v18_v1 = vld [vmem:[%s142_s1 + $0x10] sm:$0xff]  ;;  %v17_v2 = vld [vmem:[%s142_s1 + $0x8] sm:$0xff] }
   0x2   :  { %43 = vmatpush.msra.mxu0 %v19_v0  ;;  %82 = vmatpush.msra.mxu1 %v19_v0  ;;  %v16_v3 = vld [vmem:[%s142_s1] sm:$0xff]  ;;  %v15_v5 = vld [vmem:[%s144_s0 + $0x8] sm:$0xff] }
   0x3   :  { %v14_v4 = vld [vmem:[%s144_s0] sm:$0xff] }
   0x4   :  { %44 = vmatpush.msra.mxu0 %v18_v1  ;;  %83 = vmatpush.msra.mxu1 %v18_v1  ;;  %v86_v6 = vld [vmem:[%s143_s2] ss:$0 sm:$0xff] }
   0x6   :  { %45 = vmatpush.msra.mxu0 %v17_v2  ;;  %84 = vmatpush.msra.mxu1 %v17_v2 }
   0x8   :  { %46 = vmatpush.msra.mxu0 %v16_v3  ;;  %85 = vmatpush.msra.mxu1 %v16_v3 }
   0x9   :  { %80 = vmatmul.msk.f32.vlgmr.msra.gmra.mxu0 %vm24_vm0, %v14_v4  ;;  %81 = vmatmul.msk.f32.vlgmr.msra.gmra.mxu1 %vm24_vm0, %v15_v5 }
  0x86   :  { %v48_v7 = vpop.f32.mrf.mxu0  ;;  %v51_v9 = vpop.f32.mrf.mxu1 }
  0x87   :  { %v49_v8 = vadd.f32 %v86_v6, %v48_v7  ;;  %v52_v10 = vadd.f32 %v86_v6, %v51_v9 }
  0x89   :  { %54 = vmax.xlane.f32.xlu0 %v49_v8 }
  0x91   :  { %56 = vmax.xlane.f32.xlu0 %v52_v10 }
  0xfc   :  { %v55_v11 = vpop.xlane.xlu0 %54 }
  0xfd   :  { %v58_v12 = vsub.f32 %v49_v8, %v55_v11 }
  0xff   :  { %v60_v13 = vmul.f32 1.442695, %v58_v12 }
 0x101   :  { %87 = vpow2.f32 %v60_v13 }
 0x104   :  { %v57_v14 = vpop.xlane.xlu0 %56 }
 0x105   :  { %v59_v15 = vsub.f32 %v52_v10, %v57_v14 }
 0x107   :  { %v88_v16 = vpop.eup %87  ;;  %v62_v17 = vmul.f32 1.442695, %v59_v15 }
 0x108   :  { %64 = vadd.xlane.f32.xlu1 %v88_v16 }
 0x109   :  { %89 = vpow2.f32 %v62_v17 }
 0x10f   :  { %v90_v18 = vpop.eup %89 }
 0x110   :  { %66 = vadd.xlane.f32.xlu1 %v90_v18 }
 0x17b   :  { %v65_v19 = vpop.xlane.xlu1 %64 }
 0x17c   :  { %91 = vlog2.f32 %v65_v19 }
 0x182   :  { %v92_v20 = vpop.eup %91 }
 0x183   :  { %v69_v21 = vmul.f32 0.6931472, %v92_v20  ;;  %v67_v22 = vpop.xlane.xlu1 %66 }
 0x184   :  { %93 = vlog2.f32 %v67_v22 }
 0x185   :  { %v72_v23 = vsub.f32 %v58_v12, %v69_v21 }
 0x187   :  { %74 = vst [vmem:[%s145_s3] sm:$0xff] %v72_v23 }
 0x18a   :  { %v94_v24 = vpop.eup %93 }
 0x18b   :  { %v71_v25 = vmul.f32 0.6931472, %v94_v24 }
 0x18d   :  { %v73_v26 = vsub.f32 %v59_v15, %v71_v25 }
 0x18f   :  { %75 = vst [vmem:[%s145_s3 + $0x8] sm:$0xff] %v73_v26 }

// kernel: bigru_predicate_detection.4
= control target key start
LH: loop header
LB: loop body
LE: loop exit
PB: predicated region body
PF: predicated region fallthrough
CT: control target
= control target key end

     0   :  { %10 = vsyncpa [#allocation5], 0  ;;  %s1317_s0 = inlined_call_operand.vmem [shape: f32[8,2,32], index: 0, kind: input, shape index: {}]   ;;  %s1318_s1 = inlined_call_operand.hbm [shape: f32[32,96], index: 1, kind: input, shape index: {}]   ;;  %s1319_s2 = inlined_call_operand.hbm [shape: f32[32,96], index: 2, kind: input, shape index: {}]   ;;  %s1320_s3 = inlined_call_operand.vmem [shape: f32[1,96], index: 3, kind: input, shape index: {}]   ;;  %s1321_s4 = inlined_call_operand.vmem [shape: f32[1,96], index: 4, kind: input, shape index: {}]   ;;  %s1322_s5 = inlined_call_operand.vmem [shape: f32[8,2,32], index: 5, kind: output, shape index: {}]  }
   0x1   :  { %s18_s20 = sshll.u32 %s1318_s1, 4  ;;  %s19_s20 = int_to_ptr.hbm [resolvable:$true] %s18_s20 }
   0x2   :  { %11 = vsyncpa [#allocation7], 0  ;;  %s1054_s21 = smov [#allocation4]   ;;  %s31_s25 = sshll.u32 %s1319_s2, 4  ;;  %s32_s25 = int_to_ptr.hbm [resolvable:$true] %s31_s25 }
   0x3   :  { %s20_s22 = sshll.u32 %s1054_s21, 4  ;;  %s1055_s26 = smov 128   ;;  %s21_s22 = int_to_ptr.vmem [resolvable:$true] %s20_s22 }
   0x4   :  { %s1056_s27 = smov 8   ;;  %s1057_s28 = smov [#allocation6]  }
   0x5   :  { %26 = dma.hbm_to_vmem [thread:$0]  %s19_s20, 512, %s21_s22, [#allocation5], %s1055_s26, %s1055_s26, %s1056_s27  }
   0x6   :  { %s33_s29 = sshll.u32 %s1057_s28, 4  ;;  %s34_s29 = int_to_ptr.vmem [resolvable:$true] %s33_s29 }
   0x7   :  { %39 = dma.hbm_to_vmem [thread:$0]  %s32_s25, 512, %s34_s29, [#allocation7], %s1055_s26, %s1055_s26, %s1056_s27  }
   0x8   :  { %1050 = dma.done.wait [#allocation5], 512  }
   0x9   :  { %1051 = vsyncadd [#allocation5], 4294966784 }
   0xa   :  { %1052 = dma.done.wait [#allocation7], 512  }
   0xb   :  { %1053 = vsyncadd [#allocation7], 4294966784  ;;  %vm281_vm0 = vcmask 254976   ;;  %v1058_v0 = vmov 0.0   ;;  %v55_v1 = vld [vmem:[#allocation4 + $0x18] sm:$0xff]  ;;  %v54_v2 = vld [vmem:[#allocation4 + $0x10] sm:$0xff] }
   0xc   :  { %282 = vst.msk [vmem:[#allocation3] sm:$0x3] %vm281_vm0, %v1058_v0  ;;  %82 = vmatpush.msra.mxu0 %v55_v1  ;;  %163 = vmatpush.msra.mxu3 %v55_v1  ;;  %v53_v3 = vld [vmem:[#allocation4 + $0x8] sm:$0xff]  ;;  %v52_v4 = vld [vmem:[#allocation4] sm:$0xff]  ;;  %vm66_vm1 = vcmask 261120   ;;  %v1113_v9 = vld [vmem:[#allocation6 + $0x18] sm:$0xff] }
   0xd   :  { %136 = vmatpush.msra.mxu2 %v55_v1  ;;  %109 = vmatpush.msra.mxu1 %v55_v1  ;;  %v62_v5 = vld [vmem:[%s1317_s0] sm:$0x3]  ;;  %v904_v6 = vld [vmem:[%s1317_s0 + $0x6] sm:$0x3]  ;;  %v906_v7 = vld [vmem:[%s1317_s0 + $0x8] sm:$0x3] }
   0xe   :  { %83 = vmatpush.msra.mxu0 %v54_v2  ;;  %164 = vmatpush.msra.mxu3 %v54_v2  ;;  %v912_v8 = vld [vmem:[%s1317_s0 + $0xe] sm:$0x3]  ;;  %v1117_v10 = vld [vmem:[#allocation6 + $0x10] sm:$0xff]  ;;  %v1120_v11 = vld [vmem:[#allocation6 + $0x8] sm:$0xff]  ;;  %vm90_vm2 = vcmask 779264   ;;  %s1061_s15 = smov 32  }
   0xf   :  { %137 = vmatpush.msra.mxu2 %v54_v2  ;;  %110 = vmatpush.msra.mxu1 %v54_v2  ;;  %v1124_v12 = vld [vmem:[#allocation6] sm:$0xff]  ;;  %v1143_v14 = vld [vmem:[%s1320_s3] ss:$0 sm:$0xff]  ;;  %s1059_s3 = smov 64   ;;  %v902_v46 = vld [vmem:[%s1317_s0 + $0x4] sm:$0x3] }
  0x10   :  { %84 = vmatpush.msra.mxu0 %v53_v3  ;;  %165 = vmatpush.msra.mxu3 %v53_v3  ;;  %v1154_v21 = vld [vmem:[%s1321_s4] ss:$0 sm:$0xff]  ;;  %s1060_s4 = smov 96   ;;  %v900_v47 = vld [vmem:[%s1317_s0 + $0x2] sm:$0x3] }
  0x11   :  { %138 = vmatpush.msra.mxu2 %v53_v3  ;;  %111 = vmatpush.msra.mxu1 %v53_v3  ;;  %v910_v48 = vld [vmem:[%s1317_s0 + $0xc] sm:$0x3]  ;;  %v908_v55 = vld [vmem:[%s1317_s0 + $0xa] sm:$0x3]  ;;  %v916_v56 = vld [vmem:[%s1317_s0 + $0xe] sm:$0x3] }
  0x12   :  { %85 = vmatpush.msra.mxu0 %v52_v4  ;;  %166 = vmatpush.msra.mxu3 %v52_v4 }
  0x13   :  { %899 = vmatmul.msk.f32.vlgmr.msra.gmra.mxu0 %vm66_vm1, %v62_v5  ;;  %905 = vmatmul.msk.f32.vlgmr.msra.gmra.mxu3 %vm66_vm1, %v904_v6  ;;  %v284_v13 = vld [vmem:[#allocation3] sm:$0x3] }
  0x14   :  { %190 = vmatpush.msrb.mxu0 %v55_v1  ;;  %271 = vmatpush.msrb.mxu3 %v55_v1 }
  0x15   :  { %139 = vmatpush.msra.mxu2 %v52_v4  ;;  %112 = vmatpush.msra.mxu1 %v52_v4 }
  0x16   :  { %191 = vmatpush.msrb.mxu0 %v54_v2  ;;  %272 = vmatpush.msrb.mxu3 %v54_v2 }
  0x17   :  { %244 = vmatpush.msrb.mxu2 %v55_v1  ;;  %217 = vmatpush.msrb.mxu1 %v55_v1 }
  0x18   :  { %192 = vmatpush.msrb.mxu0 %v53_v3  ;;  %273 = vmatpush.msrb.mxu3 %v53_v3 }
  0x19   :  { %245 = vmatpush.msrb.mxu2 %v54_v2  ;;  %218 = vmatpush.msrb.mxu1 %v54_v2 }
  0x1a   :  { %193 = vmatpush.msrb.mxu0 %v52_v4  ;;  %274 = vmatpush.msrb.mxu3 %v52_v4 }
  0x1b   :  { %907 = vmatmul.msk.f32.vlgmr.msrb.gmra.mxu0 %vm66_vm1, %v906_v7  ;;  %913 = vmatmul.msk.f32.vlgmr.msrb.gmra.mxu3 %vm66_vm1, %v912_v8 }
  0x1c   :  { %303 = vmatpush.msra.mxu0 %v1113_v9  ;;  %246 = vmatpush.msrb.mxu2 %v53_v3 }
  0x1d   :  { %219 = vmatpush.msrb.mxu1 %v53_v3  ;;  %531 = vmatpush.msra.mxu3 %v1113_v9 }
  0x1e   :  { %304 = vmatpush.msra.mxu0 %v1117_v10  ;;  %247 = vmatpush.msrb.mxu2 %v52_v4 }
  0x1f   :  { %220 = vmatpush.msrb.mxu1 %v52_v4  ;;  %532 = vmatpush.msra.mxu3 %v1117_v10 }
  0x20   :  { %305 = vmatpush.msra.mxu0 %v1120_v11  ;;  %903 = vmatmul.msk.f32.vlgmr.msra.gmra.mxu2 %vm66_vm1, %v902_v46 }
  0x21   :  { %533 = vmatpush.msra.mxu3 %v1120_v11  ;;  %901 = vmatmul.msk.f32.vlgmr.msra.gmra.mxu1 %vm66_vm1, %v900_v47 }
  0x22   :  { %306 = vmatpush.msra.mxu0 %v1124_v12  ;;  %379 = vmatpush.msra.mxu1 %v1113_v9 }
  0x23   :  { %914 = vmatmul.msk.f32.vlgmr.msra.gmra.mxu0 %vm66_vm1, %v284_v13  ;;  %534 = vmatpush.msra.mxu3 %v1124_v12 }
  0x24   :  { %607 = vmatpush.msrb.mxu0 %v1113_v9  ;;  %455 = vmatpush.msra.mxu2 %v1113_v9 }
  0x25   :  { %835 = vmatpush.msrb.mxu3 %v1113_v9  ;;  %380 = vmatpush.msra.mxu1 %v1117_v10 }
  0x26   :  { %608 = vmatpush.msrb.mxu0 %v1117_v10  ;;  %456 = vmatpush.msra.mxu2 %v1117_v10 }
  0x27   :  { %836 = vmatpush.msrb.mxu3 %v1117_v10  ;;  %381 = vmatpush.msra.mxu1 %v1120_v11 }
  0x28   :  { %609 = vmatpush.msrb.mxu0 %v1120_v11  ;;  %457 = vmatpush.msra.mxu2 %v1120_v11 }
  0x29   :  { %837 = vmatpush.msrb.mxu3 %v1120_v11  ;;  %382 = vmatpush.msra.mxu1 %v1124_v12 }
  0x2a   :  { %610 = vmatpush.msrb.mxu0 %v1124_v12  ;;  %458 = vmatpush.msra.mxu2 %v1124_v12 }
  0x2b   :  { %838 = vmatpush.msrb.mxu3 %v1124_v12  ;;  %911 = vmatmul.msk.f32.vlgmr.msrb.gmra.mxu2 %vm66_vm1, %v910_v48 }
  0x2c   :  { %759 = vmatpush.msrb.mxu2 %v1113_v9  ;;  %909 = vmatmul.msk.f32.vlgmr.msrb.gmra.mxu1 %vm66_vm1, %v908_v55 }
  0x2d   :  { %683 = vmatpush.msrb.mxu1 %v1113_v9 }
  0x2e   :  { %760 = vmatpush.msrb.mxu2 %v1117_v10 }
  0x2f   :  { %684 = vmatpush.msrb.mxu1 %v1117_v10 }
  0x30   :  { %761 = vmatpush.msrb.mxu2 %v1120_v11 }
  0x31   :  { %685 = vmatpush.msrb.mxu1 %v1120_v11 }
  0x32   :  { %762 = vmatpush.msrb.mxu2 %v1124_v12 }
  0x33   :  { %686 = vmatpush.msrb.mxu1 %v1124_v12 }
  0x90   :  { %v87_v15 = vpop.f32.mrf.mxu0 }
  0x91   :  { %v88_v16 = vadd.f32 %v1143_v14, %v87_v15 }
  0x93   :  { %91 = vst.msk [vmem:[#allocation2] sm:$0x3] %vm90_vm2, %v88_v16 }
  0x96   :  { %v168_v17 = vpop.f32.mrf.mxu3 }
  0x97   :  { %v169_v18 = vadd.f32 %v1143_v14, %v168_v17 }
  0x98   :  { %v195_v19 = vpop.f32.mrf.mxu0 }
  0x99   :  { %172 = vst.msk [vmem:[#allocation2 + $0x6] sm:$0x3] %vm90_vm2, %v169_v18  ;;  %v196_v20 = vadd.f32 %v1143_v14, %v195_v19 }
  0x9b   :  { %199 = vst.msk [vmem:[#allocation2 + $0x8] sm:$0x3] %vm90_vm2, %v196_v20 }
  0x9e   :  { %v276_v22 = vpop.f32.mrf.mxu3  ;;  %v114_v59 = vpop.f32.mrf.mxu1 }
  0x9f   :  { %v277_v23 = vadd.f32 %v1143_v14, %v276_v22  ;;  %v115_v60 = vadd.f32 %v1143_v14, %v114_v59 }
  0xa0   :  { %v308_v24 = vpop.f32.mrf.mxu0 }
  0xa1   :  { %280 = vst.msk [vmem:[#allocation2 + $0xe] sm:$0x3] %vm90_vm2, %v277_v23  ;;  %v309_v25 = vadd.f32 %v1154_v21, %v308_v24 }
  0xa2   :  { %118 = vst.msk [vmem:[#allocation2 + $0x2] sm:$0x3] %vm90_vm2, %v115_v60 }
  0xa3   :  { %332 = vrot.lane.b32.xlu0 %v309_v25, %s1059_s3  ;;  %v141_v62 = vpop.f32.mrf.mxu2 }
  0xa4   :  { %v142_v63 = vadd.f32 %v1143_v14, %v141_v62 }
  0xa6   :  { %145 = vst.msk [vmem:[#allocation2 + $0x4] sm:$0x3] %vm90_vm2, %v142_v63 }
  0xa8   :  { %v283_v26 = vld [vmem:[#allocation2 + $0xe] sm:$0x3] }
  0xa9   :  { %v311_v27 = vadd.f32 %v309_v25, %v283_v26  ;;  %v222_v2 = vpop.f32.mrf.mxu1 }
  0xaa   :  { %v223_v3 = vadd.f32 %v1143_v14, %v222_v2 }
  0xab   :  { %v915_v28 = vmul.f32 -1.442695, %v311_v27 }
  0xac   :  { %226 = vst.msk [vmem:[#allocation2 + $0xa] sm:$0x3] %vm90_vm2, %v223_v3 }
  0xad   :  { %954 = vpow2.f32 %v915_v28 }
  0xae   :  { %v249_v0 = vpop.f32.mrf.mxu2 }
  0xaf   :  { %v250_v1 = vadd.f32 %v1143_v14, %v249_v0 }
  0xb1   :  { %253 = vst.msk [vmem:[#allocation2 + $0xc] sm:$0x3] %vm90_vm2, %v250_v1  ;;  %v924_v1 = vld [vmem:[%s1317_s0 + $0xa] sm:$0x3] }
  0xb3   :  { %v955_v29 = vpop.eup %954 }
  0xb4   :  { %v315_v30 = vadd.f32 1.0, %v955_v29 }
  0xb6   :  { %956 = vrcp.f32 %v315_v30  ;;  %v327_v36 = vand.u32 2147483648, %v315_v30  ;;  %vm321_vm4 = vweird.f32 %v315_v30  ;;  %v325_v37 = vand.u32 2147483647, %v315_v30 }
  0xb8   :  { %v328_v39 = vor.u32 1.1754944e-38, %v327_v36  ;;  %vm326_vm6 = vcmp.eq.f32.partialorder %v325_v37, 8.507059e+37  ;;  %v362_v6 = vld [vmem:[#allocation2 + $0xc] sm:$0x3] }
  0xbc   :  { %v957_v31 = vpop.eup %956 }
  0xbd   :  { %v317_v32 = vmul.f32 %v957_v31, %v315_v30  ;;  %vm322_vm3 = vweird.f32 %v957_v31 }
  0xbe   :  { %vm323_vm5 = vmor %vm321_vm4, %vm322_vm3 }
  0xbf   :  { %v318_v33 = vsub.f32 1.0, %v317_v32 }
  0xc1   :  { %v319_v34 = vmul.f32 %v957_v31, %v318_v33  ;;  %v920_v33 = vld [vmem:[%s1317_s0 + $0xc] sm:$0x3] }
  0xc3   :  { %v320_v35 = vadd.f32 %v957_v31, %v319_v34 }
  0xc5   :  { %v324_v38 = vsel %vm323_vm5, %v957_v31, %v320_v35 }
  0xc6   :  { %v329_v41 = vsel %vm326_vm6, %v328_v39, %v324_v38  ;;  %v438_v39 = vld [vmem:[#allocation2 + $0xa] sm:$0x3] }
  0xc7   :  { %v342_v50 = vsub.f32 1.0, %v329_v41 }
 0x115   :  { %v333_v40 = vpop.permute.xlu0 %332 }
 0x116   :  { %v335_v42 = vmul.f32 %v333_v40, %v329_v41 }
 0x118   :  { %337 = vrot.lane.b32.xlu0 %v335_v42, %s1059_s3 }
 0x18a   :  { %v338_v43 = vpop.permute.xlu0 %337 }
 0x18b   :  { %v340_v44 = vadd.f32 %v338_v43, %v283_v26 }
 0x18d   :  { %958 = vtanh.f32 %v340_v44 }
 0x193   :  { %v959_v45 = vpop.eup %958 }
 0x194   :  { %344 = vrot.lane.b32.xlu1 %v959_v45, %s1060_s4 }
 0x19c   :  { %348 = vrot.lane.b32.xlu1 %v284_v13, %s1061_s15 }
 0x206   :  { %v345_v49 = vpop.permute.xlu1 %344 }
 0x207   :  { %v347_v52 = vmul.f32 %v345_v49, %v342_v50 }
 0x20e   :  { %v349_v51 = vpop.permute.xlu1 %348 }
 0x20f   :  { %v351_v53 = vmul.f32 %v349_v51, %v329_v41 }
 0x211   :  { %v352_v54 = vadd.f32 %v351_v53, %v347_v52 }
 0x213   :  { %354 = vrot.lane.b32.xlu2 %v352_v54, %s1060_s4 }
 0x26d   :  { %v355_v57 = vpop.permute.xlu2 %354 }
 0x26e   :  { %357 = vst.msk [vmem:[#allocation3] sm:$0x3] %vm281_vm0, %v355_v57  ;;  %v359_v58 = vadd.f32 %v916_v56, %v355_v57 }
 0x270   :  { %917 = vst.msk [vmem:[%s1322_s5 + $0xe] sm:$0x3] %vm281_vm0, %v359_v58 }
 0x275   :  { %v363_v61 = vld [vmem:[#allocation3] sm:$0x3] }
 0x276   :  { %918 = vmatmul.msk.f32.vlgmr.msra.gmra.mxu1 %vm66_vm1, %v363_v61 }
 0x2f3   :  { %v384_v4 = vpop.f32.mrf.mxu1 }
 0x2f4   :  { %v385_v5 = vadd.f32 %v1154_v21, %v384_v4 }
 0x2f6   :  { %408 = vrot.lane.b32.xlu2 %v385_v5, %s1059_s3  ;;  %v387_v7 = vadd.f32 %v385_v5, %v362_v6 }
 0x2f8   :  { %v919_v8 = vmul.f32 -1.442695, %v387_v7  ;;  %v514_v7 = vld [vmem:[#allocation2 + $0x8] sm:$0x3] }
 0x2fa   :  { %960 = vpow2.f32 %v919_v8 }
 0x2fe   :  { %424 = vrot.lane.b32.xlu2 %v363_v61, %s1061_s15 }
 0x300   :  { %v961_v9 = vpop.eup %960 }
 0x301   :  { %v391_v10 = vadd.f32 1.0, %v961_v9 }
 0x303   :  { %962 = vrcp.f32 %v391_v10  ;;  %v403_v16 = vand.u32 2147483648, %v391_v10  ;;  %vm397_vm8 = vweird.f32 %v391_v10  ;;  %v401_v17 = vand.u32 2147483647, %v391_v10 }
 0x305   :  { %v404_v19 = vor.u32 1.1754944e-38, %v403_v16  ;;  %vm402_vm10 = vcmp.eq.f32.partialorder %v401_v17, 8.507059e+37 }
 0x309   :  { %v963_v11 = vpop.eup %962 }
 0x30a   :  { %v393_v12 = vmul.f32 %v963_v11, %v391_v10  ;;  %vm398_vm7 = vweird.f32 %v963_v11 }
 0x30b   :  { %vm399_vm9 = vmor %vm397_vm8, %vm398_vm7 }
 0x30c   :  { %v394_v13 = vsub.f32 1.0, %v393_v12 }
 0x30e   :  { %v395_v14 = vmul.f32 %v963_v11, %v394_v13 }
 0x310   :  { %v396_v15 = vadd.f32 %v963_v11, %v395_v14 }
 0x312   :  { %v400_v18 = vsel %vm399_vm9, %v963_v11, %v396_v15 }
 0x313   :  { %v405_v22 = vsel %vm402_vm10, %v404_v19, %v400_v18 }
 0x314   :  { %v418_v28 = vsub.f32 1.0, %v405_v22 }
 0x350   :  { %v409_v20 = vpop.permute.xlu2 %408 }
 0x351   :  { %v411_v23 = vmul.f32 %v409_v20, %v405_v22 }
 0x353   :  { %413 = vrot.lane.b32.xlu0 %v411_v23, %s1059_s3 }
 0x358   :  { %v425_v27 = vpop.permute.xlu2 %424 }
 0x359   :  { %v427_v30 = vmul.f32 %v425_v27, %v405_v22 }
 0x3c5   :  { %v414_v24 = vpop.permute.xlu0 %413 }
 0x3c6   :  { %v416_v25 = vadd.f32 %v414_v24, %v362_v6 }
 0x3c8   :  { %964 = vtanh.f32 %v416_v25 }
 0x3ce   :  { %v965_v26 = vpop.eup %964 }
 0x3cf   :  { %420 = vrot.lane.b32.xlu1 %v965_v26, %s1060_s4 }
 0x441   :  { %v421_v29 = vpop.permute.xlu1 %420 }
 0x442   :  { %v423_v31 = vmul.f32 %v421_v29, %v418_v28 }
 0x444   :  { %v428_v32 = vadd.f32 %v427_v30, %v423_v31 }
 0x446   :  { %430 = vrot.lane.b32.xlu0 %v428_v32, %s1060_s4 }
 0x4b8   :  { %v431_v34 = vpop.permute.xlu0 %430 }
 0x4b9   :  { %433 = vst.msk [vmem:[#allocation3] sm:$0x3] %vm281_vm0, %v431_v34  ;;  %v435_v35 = vadd.f32 %v920_v33, %v431_v34  ;;  %v928_v34 = vld [vmem:[%s1317_s0 + $0x8] sm:$0x3] }
 0x4bb   :  { %921 = vst.msk [vmem:[%s1322_s5 + $0xc] sm:$0x3] %vm281_vm0, %v435_v35 }
 0x4c0   :  { %v439_v36 = vld [vmem:[#allocation3] sm:$0x3] }
 0x4c1   :  { %922 = vmatmul.msk.f32.vlgmr.msra.gmra.mxu2 %vm66_vm1, %v439_v36 }
 0x544   :  { %v460_v37 = vpop.f32.mrf.mxu2 }
 0x545   :  { %v461_v38 = vadd.f32 %v1154_v21, %v460_v37 }
 0x547   :  { %484 = vrot.lane.b32.xlu1 %v461_v38, %s1059_s3  ;;  %v463_v40 = vadd.f32 %v461_v38, %v438_v39 }
 0x549   :  { %v923_v41 = vmul.f32 -1.442695, %v463_v40  ;;  %v590_v40 = vld [vmem:[#allocation2 + $0x6] sm:$0x3] }
 0x54b   :  { %966 = vpow2.f32 %v923_v41 }
 0x54f   :  { %500 = vrot.lane.b32.xlu1 %v439_v36, %s1061_s15 }
 0x551   :  { %v967_v42 = vpop.eup %966 }
 0x552   :  { %v467_v43 = vadd.f32 1.0, %v967_v42 }
 0x554   :  { %968 = vrcp.f32 %v467_v43  ;;  %v479_v49 = vand.u32 2147483648, %v467_v43  ;;  %vm473_vm12 = vweird.f32 %v467_v43  ;;  %v477_v50 = vand.u32 2147483647, %v467_v43 }
 0x556   :  { %v480_v52 = vor.u32 1.1754944e-38, %v479_v49  ;;  %vm478_vm14 = vcmp.eq.f32.partialorder %v477_v50, 8.507059e+37 }
 0x55a   :  { %v969_v44 = vpop.eup %968 }
 0x55b   :  { %v469_v45 = vmul.f32 %v969_v44, %v467_v43  ;;  %vm474_vm11 = vweird.f32 %v969_v44 }
 0x55c   :  { %vm475_vm13 = vmor %vm473_vm12, %vm474_vm11 }
 0x55d   :  { %v470_v46 = vsub.f32 1.0, %v469_v45 }
 0x55f   :  { %v471_v47 = vmul.f32 %v969_v44, %v470_v46 }
 0x561   :  { %v472_v48 = vadd.f32 %v969_v44, %v471_v47 }
 0x563   :  { %v476_v51 = vsel %vm475_vm13, %v969_v44, %v472_v48 }
 0x564   :  { %v481_v54 = vsel %vm478_vm14, %v480_v52, %v476_v51 }
 0x565   :  { %v494_v60 = vsub.f32 1.0, %v481_v54 }
 0x5b9   :  { %v485_v53 = vpop.permute.xlu1 %484 }
 0x5ba   :  { %v487_v55 = vmul.f32 %v485_v53, %v481_v54 }
 0x5bc   :  { %489 = vrot.lane.b32.xlu2 %v487_v55, %s1059_s3 }
 0x5c1   :  { %v501_v59 = vpop.permute.xlu1 %500 }
 0x5c2   :  { %v503_v62 = vmul.f32 %v501_v59, %v481_v54 }
 0x616   :  { %v490_v56 = vpop.permute.xlu2 %489 }
 0x617   :  { %v492_v57 = vadd.f32 %v490_v56, %v438_v39 }
 0x619   :  { %970 = vtanh.f32 %v492_v57 }
 0x61f   :  { %v971_v58 = vpop.eup %970 }
 0x620   :  { %496 = vrot.lane.b32.xlu0 %v971_v58, %s1060_s4 }
 0x692   :  { %v497_v61 = vpop.permute.xlu0 %496 }
 0x693   :  { %v499_v63 = vmul.f32 %v497_v61, %v494_v60 }
 0x695   :  { %v504_v0 = vadd.f32 %v503_v62, %v499_v63 }
 0x697   :  { %506 = vrot.lane.b32.xlu2 %v504_v0, %s1060_s4 }
 0x6f1   :  { %v507_v2 = vpop.permute.xlu2 %506 }
 0x6f2   :  { %509 = vst.msk [vmem:[#allocation3] sm:$0x3] %vm281_vm0, %v507_v2  ;;  %v511_v3 = vadd.f32 %v924_v1, %v507_v2  ;;  %v932_v2 = vld [vmem:[%s1317_s0 + $0x6] sm:$0x3] }
 0x6f4   :  { %925 = vst.msk [vmem:[%s1322_s5 + $0xa] sm:$0x3] %vm281_vm0, %v511_v3 }
 0x6f9   :  { %v515_v4 = vld [vmem:[#allocation3] sm:$0x3] }
 0x6fa   :  { %926 = vmatmul.msk.f32.vlgmr.msra.gmra.mxu3 %vm66_vm1, %v515_v4 }
 0x77d   :  { %v536_v5 = vpop.f32.mrf.mxu3 }
 0x77e   :  { %v537_v6 = vadd.f32 %v1154_v21, %v536_v5 }
 0x780   :  { %560 = vrot.lane.b32.xlu0 %v537_v6, %s1059_s3  ;;  %v539_v8 = vadd.f32 %v537_v6, %v514_v7 }
 0x782   :  { %v927_v9 = vmul.f32 -1.442695, %v539_v8  ;;  %v666_v8 = vld [vmem:[#allocation2 + $0x4] sm:$0x3] }
 0x784   :  { %972 = vpow2.f32 %v927_v9 }
 0x788   :  { %576 = vrot.lane.b32.xlu0 %v515_v4, %s1061_s15 }
 0x78a   :  { %v973_v10 = vpop.eup %972 }
 0x78b   :  { %v543_v11 = vadd.f32 1.0, %v973_v10 }
 0x78d   :  { %974 = vrcp.f32 %v543_v11  ;;  %v555_v17 = vand.u32 2147483648, %v543_v11  ;;  %vm549_vm2 = vweird.f32 %v543_v11  ;;  %v553_v18 = vand.u32 2147483647, %v543_v11 }
 0x78f   :  { %v556_v20 = vor.u32 1.1754944e-38, %v555_v17  ;;  %vm554_vm4 = vcmp.eq.f32.partialorder %v553_v18, 8.507059e+37 }
 0x793   :  { %v975_v12 = vpop.eup %974 }
 0x794   :  { %v545_v13 = vmul.f32 %v975_v12, %v543_v11  ;;  %vm550_vm15 = vweird.f32 %v975_v12 }
 0x795   :  { %vm551_vm3 = vmor %vm549_vm2, %vm550_vm15 }
 0x796   :  { %v546_v14 = vsub.f32 1.0, %v545_v13 }
 0x798   :  { %v547_v15 = vmul.f32 %v975_v12, %v546_v14 }
 0x79a   :  { %v548_v16 = vadd.f32 %v975_v12, %v547_v15 }
 0x79c   :  { %v552_v19 = vsel %vm551_vm3, %v975_v12, %v548_v16 }
 0x79d   :  { %v557_v23 = vsel %vm554_vm4, %v556_v20, %v552_v19 }
 0x79e   :  { %v570_v29 = vsub.f32 1.0, %v557_v23 }
 0x7f2   :  { %v561_v22 = vpop.permute.xlu0 %560 }
 0x7f3   :  { %v563_v24 = vmul.f32 %v561_v22, %v557_v23 }
 0x7f5   :  { %565 = vrot.lane.b32.xlu1 %v563_v24, %s1059_s3 }
 0x7fa   :  { %v577_v28 = vpop.permute.xlu0 %576 }
 0x7fb   :  { %v579_v31 = vmul.f32 %v577_v28, %v557_v23 }
 0x867   :  { %v566_v25 = vpop.permute.xlu1 %565 }
 0x868   :  { %v568_v26 = vadd.f32 %v566_v25, %v514_v7 }
 0x86a   :  { %976 = vtanh.f32 %v568_v26 }
 0x870   :  { %v977_v27 = vpop.eup %976 }
 0x871   :  { %572 = vrot.lane.b32.xlu2 %v977_v27, %s1060_s4 }
 0x8cb   :  { %v573_v30 = vpop.permute.xlu2 %572 }
 0x8cc   :  { %v575_v32 = vmul.f32 %v573_v30, %v570_v29 }
 0x8ce   :  { %v580_v33 = vadd.f32 %v579_v31, %v575_v32 }
 0x8d0   :  { %582 = vrot.lane.b32.xlu1 %v580_v33, %s1060_s4 }
 0x942   :  { %v583_v35 = vpop.permute.xlu1 %582 }
 0x943   :  { %585 = vst.msk [vmem:[#allocation3] sm:$0x3] %vm281_vm0, %v583_v35  ;;  %v587_v36 = vadd.f32 %v928_v34, %v583_v35  ;;  %v936_v35 = vld [vmem:[%s1317_s0 + $0x4] sm:$0x3] }
 0x945   :  { %929 = vst.msk [vmem:[%s1322_s5 + $0x8] sm:$0x3] %vm281_vm0, %v587_v36 }
 0x94a   :  { %v591_v37 = vld [vmem:[#allocation3] sm:$0x3] }
 0x94b   :  { %930 = vmatmul.msk.f32.vlgmr.msrb.gmra.mxu0 %vm66_vm1, %v591_v37 }
 0x9c8   :  { %v612_v38 = vpop.f32.mrf.mxu0 }
 0x9c9   :  { %v613_v39 = vadd.f32 %v1154_v21, %v612_v38 }
 0x9cb   :  { %636 = vrot.lane.b32.xlu2 %v613_v39, %s1059_s3  ;;  %v615_v41 = vadd.f32 %v613_v39, %v590_v40 }
 0x9cd   :  { %v931_v42 = vmul.f32 -1.442695, %v615_v41  ;;  %v742_v41 = vld [vmem:[#allocation2 + $0x2] sm:$0x3] }
 0x9cf   :  { %978 = vpow2.f32 %v931_v42 }
 0x9d3   :  { %652 = vrot.lane.b32.xlu2 %v591_v37, %s1061_s15 }
 0x9d5   :  { %v979_v43 = vpop.eup %978 }
 0x9d6   :  { %v619_v44 = vadd.f32 1.0, %v979_v43 }
 0x9d8   :  { %980 = vrcp.f32 %v619_v44  ;;  %v631_v50 = vand.u32 2147483648, %v619_v44  ;;  %vm625_vm6 = vweird.f32 %v619_v44  ;;  %v629_v51 = vand.u32 2147483647, %v619_v44 }
 0x9da   :  { %v632_v53 = vor.u32 1.1754944e-38, %v631_v50  ;;  %vm630_vm8 = vcmp.eq.f32.partialorder %v629_v51, 8.507059e+37 }
 0x9de   :  { %v981_v45 = vpop.eup %980 }
 0x9df   :  { %v621_v46 = vmul.f32 %v981_v45, %v619_v44  ;;  %vm626_vm5 = vweird.f32 %v981_v45 }
 0x9e0   :  { %vm627_vm7 = vmor %vm625_vm6, %vm626_vm5 }
 0x9e1   :  { %v622_v47 = vsub.f32 1.0, %v621_v46 }
 0x9e3   :  { %v623_v48 = vmul.f32 %v981_v45, %v622_v47 }
 0x9e5   :  { %v624_v49 = vadd.f32 %v981_v45, %v623_v48 }
 0x9e7   :  { %v628_v52 = vsel %vm627_vm7, %v981_v45, %v624_v49 }
 0x9e8   :  { %v633_v55 = vsel %vm630_vm8, %v632_v53, %v628_v52 }
 0x9e9   :  { %v646_v61 = vsub.f32 1.0, %v633_v55 }
 0xa25   :  { %v637_v54 = vpop.permute.xlu2 %636 }
 0xa26   :  { %v639_v56 = vmul.f32 %v637_v54, %v633_v55 }
 0xa28   :  { %641 = vrot.lane.b32.xlu0 %v639_v56, %s1059_s3 }
 0xa2d   :  { %v653_v60 = vpop.permute.xlu2 %652 }
 0xa2e   :  { %v655_v63 = vmul.f32 %v653_v60, %v633_v55 }
 0xa9a   :  { %v642_v57 = vpop.permute.xlu0 %641 }
 0xa9b   :  { %v644_v58 = vadd.f32 %v642_v57, %v590_v40 }
 0xa9d   :  { %982 = vtanh.f32 %v644_v58 }
 0xaa3   :  { %v983_v59 = vpop.eup %982 }
 0xaa4   :  { %648 = vrot.lane.b32.xlu1 %v983_v59, %s1060_s4 }
 0xb16   :  { %v649_v62 = vpop.permute.xlu1 %648 }
 0xb17   :  { %v651_v0 = vmul.f32 %v649_v62, %v646_v61 }
 0xb19   :  { %v656_v1 = vadd.f32 %v655_v63, %v651_v0 }
 0xb1b   :  { %658 = vrot.lane.b32.xlu0 %v656_v1, %s1060_s4 }
 0xb8d   :  { %v659_v3 = vpop.permute.xlu0 %658 }
 0xb8e   :  { %661 = vst.msk [vmem:[#allocation3] sm:$0x3] %vm281_vm0, %v659_v3  ;;  %v663_v4 = vadd.f32 %v932_v2, %v659_v3  ;;  %v940_v3 = vld [vmem:[%s1317_s0 + $0x2] sm:$0x3] }
 0xb90   :  { %933 = vst.msk [vmem:[%s1322_s5 + $0x6] sm:$0x3] %vm281_vm0, %v663_v4 }
 0xb95   :  { %v667_v5 = vld [vmem:[#allocation3] sm:$0x3] }
 0xb96   :  { %934 = vmatmul.msk.f32.vlgmr.msrb.gmra.mxu1 %vm66_vm1, %v667_v5 }
 0xc13   :  { %v688_v6 = vpop.f32.mrf.mxu1 }
 0xc14   :  { %v689_v7 = vadd.f32 %v1154_v21, %v688_v6 }
 0xc16   :  { %712 = vrot.lane.b32.xlu1 %v689_v7, %s1059_s3  ;;  %v691_v9 = vadd.f32 %v689_v7, %v666_v8 }
 0xc18   :  { %v935_v10 = vmul.f32 -1.442695, %v691_v9  ;;  %v818_v9 = vld [vmem:[#allocation2] sm:$0x3] }
 0xc1a   :  { %984 = vpow2.f32 %v935_v10 }
 0xc1e   :  { %728 = vrot.lane.b32.xlu1 %v667_v5, %s1061_s15 }
 0xc20   :  { %v985_v11 = vpop.eup %984 }
 0xc21   :  { %v695_v12 = vadd.f32 1.0, %v985_v11 }
 0xc23   :  { %986 = vrcp.f32 %v695_v12  ;;  %v707_v18 = vand.u32 2147483648, %v695_v12  ;;  %vm701_vm10 = vweird.f32 %v695_v12  ;;  %v705_v19 = vand.u32 2147483647, %v695_v12 }
 0xc25   :  { %v708_v22 = vor.u32 1.1754944e-38, %v707_v18  ;;  %vm706_vm12 = vcmp.eq.f32.partialorder %v705_v19, 8.507059e+37 }
 0xc29   :  { %v987_v13 = vpop.eup %986 }
 0xc2a   :  { %v697_v14 = vmul.f32 %v987_v13, %v695_v12  ;;  %vm702_vm9 = vweird.f32 %v987_v13 }
 0xc2b   :  { %vm703_vm11 = vmor %vm701_vm10, %vm702_vm9 }
 0xc2c   :  { %v698_v15 = vsub.f32 1.0, %v697_v14 }
 0xc2e   :  { %v699_v16 = vmul.f32 %v987_v13, %v698_v15 }
 0xc30   :  { %v700_v17 = vadd.f32 %v987_v13, %v699_v16 }
 0xc32   :  { %v704_v20 = vsel %vm703_vm11, %v987_v13, %v700_v17 }
 0xc33   :  { %v709_v24 = vsel %vm706_vm12, %v708_v22, %v704_v20 }
 0xc34   :  { %v722_v30 = vsub.f32 1.0, %v709_v24 }
 0xc88   :  { %v713_v23 = vpop.permute.xlu1 %712 }
 0xc89   :  { %v715_v25 = vmul.f32 %v713_v23, %v709_v24 }
 0xc8b   :  { %717 = vrot.lane.b32.xlu2 %v715_v25, %s1059_s3 }
 0xc90   :  { %v729_v29 = vpop.permute.xlu1 %728 }
 0xc91   :  { %v731_v32 = vmul.f32 %v729_v29, %v709_v24 }
 0xce5   :  { %v718_v26 = vpop.permute.xlu2 %717 }
 0xce6   :  { %v720_v27 = vadd.f32 %v718_v26, %v666_v8 }
 0xce8   :  { %988 = vtanh.f32 %v720_v27 }
 0xcee   :  { %v989_v28 = vpop.eup %988 }
 0xcef   :  { %724 = vrot.lane.b32.xlu0 %v989_v28, %s1060_s4 }
 0xd61   :  { %v725_v31 = vpop.permute.xlu0 %724 }
 0xd62   :  { %v727_v33 = vmul.f32 %v725_v31, %v722_v30 }
 0xd64   :  { %v732_v34 = vadd.f32 %v731_v32, %v727_v33 }
 0xd66   :  { %734 = vrot.lane.b32.xlu2 %v732_v34, %s1060_s4 }
 0xdc0   :  { %v735_v36 = vpop.permute.xlu2 %734 }
 0xdc1   :  { %737 = vst.msk [vmem:[#allocation3] sm:$0x3] %vm281_vm0, %v735_v36  ;;  %v739_v37 = vadd.f32 %v936_v35, %v735_v36  ;;  %v890_v35 = vld [vmem:[%s1317_s0] sm:$0x3] }
 0xdc3   :  { %937 = vst.msk [vmem:[%s1322_s5 + $0x4] sm:$0x3] %vm281_vm0, %v739_v37 }
 0xdc8   :  { %v743_v38 = vld [vmem:[#allocation3] sm:$0x3] }
 0xdc9   :  { %938 = vmatmul.msk.f32.vlgmr.msrb.gmra.mxu2 %vm66_vm1, %v743_v38 }
 0xe4c   :  { %v764_v39 = vpop.f32.mrf.mxu2 }
 0xe4d   :  { %v765_v40 = vadd.f32 %v1154_v21, %v764_v39 }
 0xe4f   :  { %788 = vrot.lane.b32.xlu0 %v765_v40, %s1059_s3  ;;  %v767_v42 = vadd.f32 %v765_v40, %v742_v41 }
 0xe51   :  { %v939_v43 = vmul.f32 -1.442695, %v767_v42 }
 0xe53   :  { %990 = vpow2.f32 %v939_v43 }
 0xe57   :  { %804 = vrot.lane.b32.xlu0 %v743_v38, %s1061_s15 }
 0xe59   :  { %v991_v44 = vpop.eup %990 }
 0xe5a   :  { %v771_v45 = vadd.f32 1.0, %v991_v44 }
 0xe5c   :  { %992 = vrcp.f32 %v771_v45  ;;  %v783_v51 = vand.u32 2147483648, %v771_v45  ;;  %vm777_vm14 = vweird.f32 %v771_v45  ;;  %v781_v52 = vand.u32 2147483647, %v771_v45 }
 0xe5e   :  { %v784_v54 = vor.u32 1.1754944e-38, %v783_v51  ;;  %vm782_vm2 = vcmp.eq.f32.partialorder %v781_v52, 8.507059e+37 }
 0xe62   :  { %v993_v46 = vpop.eup %992 }
 0xe63   :  { %v773_v47 = vmul.f32 %v993_v46, %v771_v45  ;;  %vm778_vm13 = vweird.f32 %v993_v46 }
 0xe64   :  { %vm779_vm15 = vmor %vm777_vm14, %vm778_vm13 }
 0xe65   :  { %v774_v48 = vsub.f32 1.0, %v773_v47 }
 0xe67   :  { %v775_v49 = vmul.f32 %v993_v46, %v774_v48 }
 0xe69   :  { %v776_v50 = vadd.f32 %v993_v46, %v775_v49 }
 0xe6b   :  { %v780_v53 = vsel %vm779_vm15, %v993_v46, %v776_v50 }
 0xe6c   :  { %v785_v56 = vsel %vm782_vm2, %v784_v54, %v780_v53 }
 0xe6d   :  { %v798_v62 = vsub.f32 1.0, %v785_v56 }
 0xec1   :  { %v789_v55 = vpop.permute.xlu0 %788 }
 0xec2   :  { %v791_v57 = vmul.f32 %v789_v55, %v785_v56 }
 0xec4   :  { %793 = vrot.lane.b32.xlu1 %v791_v57, %s1059_s3 }
 0xec9   :  { %v805_v61 = vpop.permute.xlu0 %804 }
 0xeca   :  { %v807_v0 = vmul.f32 %v805_v61, %v785_v56 }
 0xf36   :  { %v794_v58 = vpop.permute.xlu1 %793 }
 0xf37   :  { %v796_v59 = vadd.f32 %v794_v58, %v742_v41 }
 0xf39   :  { %994 = vtanh.f32 %v796_v59 }
 0xf3f   :  { %v995_v60 = vpop.eup %994 }
 0xf40   :  { %800 = vrot.lane.b32.xlu2 %v995_v60, %s1060_s4 }
 0xf9a   :  { %v801_v63 = vpop.permute.xlu2 %800 }
 0xf9b   :  { %v803_v1 = vmul.f32 %v801_v63, %v798_v62 }
 0xf9d   :  { %v808_v2 = vadd.f32 %v807_v0, %v803_v1 }
 0xf9f   :  { %810 = vrot.lane.b32.xlu1 %v808_v2, %s1060_s4 }
0x1011   :  { %v811_v4 = vpop.permute.xlu1 %810 }
0x1012   :  { %813 = vst.msk [vmem:[#allocation3] sm:$0x3] %vm281_vm0, %v811_v4  ;;  %v815_v5 = vadd.f32 %v940_v3, %v811_v4 }
0x1014   :  { %941 = vst.msk [vmem:[%s1322_s5 + $0x2] sm:$0x3] %vm281_vm0, %v815_v5 }
0x1019   :  { %v819_v6 = vld [vmem:[#allocation3] sm:$0x3] }
0x101a   :  { %942 = vmatmul.msk.f32.vlgmr.msrb.gmra.mxu3 %vm66_vm1, %v819_v6 }
0x109d   :  { %v840_v7 = vpop.f32.mrf.mxu3 }
0x109e   :  { %v841_v8 = vadd.f32 %v1154_v21, %v840_v7 }
0x10a0   :  { %864 = vrot.lane.b32.xlu2 %v841_v8, %s1059_s3  ;;  %v843_v10 = vadd.f32 %v841_v8, %v818_v9 }
0x10a2   :  { %v943_v11 = vmul.f32 -1.442695, %v843_v10 }
0x10a4   :  { %996 = vpow2.f32 %v943_v11 }
0x10a8   :  { %880 = vrot.lane.b32.xlu2 %v819_v6, %s1061_s15 }
0x10aa   :  { %v997_v12 = vpop.eup %996 }
0x10ab   :  { %v847_v13 = vadd.f32 1.0, %v997_v12 }
0x10ad   :  { %998 = vrcp.f32 %v847_v13  ;;  %v859_v19 = vand.u32 2147483648, %v847_v13  ;;  %vm853_vm3 = vweird.f32 %v847_v13  ;;  %v857_v21 = vand.u32 2147483647, %v847_v13 }
0x10af   :  { %v860_v22 = vor.u32 1.1754944e-38, %v859_v19  ;;  %vm858_vm5 = vcmp.eq.f32.partialorder %v857_v21, 8.507059e+37 }
0x10b3   :  { %v999_v14 = vpop.eup %998 }
0x10b4   :  { %v849_v15 = vmul.f32 %v999_v14, %v847_v13  ;;  %vm854_vm1 = vweird.f32 %v999_v14 }
0x10b5   :  { %vm855_vm4 = vmor %vm853_vm3, %vm854_vm1 }
0x10b6   :  { %v850_v16 = vsub.f32 1.0, %v849_v15 }
0x10b8   :  { %v851_v17 = vmul.f32 %v999_v14, %v850_v16 }
0x10ba   :  { %v852_v18 = vadd.f32 %v999_v14, %v851_v17 }
0x10bc   :  { %v856_v20 = vsel %vm855_vm4, %v999_v14, %v852_v18 }
0x10bd   :  { %v861_v24 = vsel %vm858_vm5, %v860_v22, %v856_v20 }
0x10be   :  { %v874_v30 = vsub.f32 1.0, %v861_v24 }
0x10fa   :  { %v865_v23 = vpop.permute.xlu2 %864 }
0x10fb   :  { %v867_v25 = vmul.f32 %v865_v23, %v861_v24 }
0x10fd   :  { %869 = vrot.lane.b32.xlu0 %v867_v25, %s1059_s3 }
0x1102   :  { %v881_v29 = vpop.permute.xlu2 %880 }
0x1103   :  { %v883_v32 = vmul.f32 %v881_v29, %v861_v24 }
0x116f   :  { %v870_v26 = vpop.permute.xlu0 %869 }
0x1170   :  { %v872_v27 = vadd.f32 %v870_v26, %v818_v9 }
0x1172   :  { %1000 = vtanh.f32 %v872_v27 }
0x1178   :  { %v1001_v28 = vpop.eup %1000 }
0x1179   :  { %876 = vrot.lane.b32.xlu1 %v1001_v28, %s1060_s4 }
0x11eb   :  { %v877_v31 = vpop.permute.xlu1 %876 }
0x11ec   :  { %v879_v33 = vmul.f32 %v877_v31, %v874_v30 }
0x11ee   :  { %v884_v34 = vadd.f32 %v883_v32, %v879_v33 }
0x11f0   :  { %886 = vrot.lane.b32.xlu0 %v884_v34, %s1060_s4 }
0x1262   :  { %v887_v36 = vpop.permute.xlu0 %886 }
0x1263   :  { %889 = vst.msk [vmem:[#allocation3] sm:$0x3] %vm281_vm0, %v887_v36  ;;  %v891_v37 = vadd.f32 %v890_v35, %v887_v36 }
0x1265   :  { %892 = vst.msk [vmem:[%s1322_s5] sm:$0x3] %vm281_vm0, %v891_v37 }
0x1266   :  { %897 = vsyncpa [#allocation5], 1 }
0x1267   :  { %898 = vsyncpa [#allocation7], 1 }

// kernel: bigru_predicate_detection.3
= control target key start
LH: loop header
LB: loop body
LE: loop exit
PB: predicated region body
PF: predicated region fallthrough
CT: control target
= control target key end

     0   :  { %10 = vsyncpa [#allocation5], 0  ;;  %s986_s21 = smov [#allocation4]   ;;  %s987_s23 = smov 128   ;;  %s1233_s0 = inlined_call_operand.vmem [shape: f32[8,2,16], index: 0, kind: input, shape index: {}]   ;;  %s1234_s1 = inlined_call_operand.hbm [shape: f32[16,96], index: 1, kind: input, shape index: {}]   ;;  %s1235_s2 = inlined_call_operand.vmem [shape: f32[32,96], index: 2, kind: input, shape index: {}]   ;;  %s1236_s3 = inlined_call_operand.vmem [shape: f32[1,96], index: 3, kind: input, shape index: {}]   ;;  %s1237_s4 = inlined_call_operand.vmem [shape: f32[1,96], index: 4, kind: input, shape index: {}]   ;;  %s1238_s5 = inlined_call_operand.vmem [shape: f32[8,2,32], index: 5, kind: output, shape index: {}]  }
   0x1   :  { %s17_s20 = sshll.u32 %s1234_s1, 4  ;;  %s19_s22 = sshll.u32 %s986_s21, 4  ;;  %s18_s20 = int_to_ptr.hbm [resolvable:$true] %s17_s20  ;;  %s20_s22 = int_to_ptr.vmem [resolvable:$true] %s19_s22 }
   0x2   :  { %s988_s24 = smov 8  }
   0x3   :  { %25 = dma.hbm_to_vmem [thread:$0]  %s18_s20, 256, %s20_s22, [#allocation5], %s987_s23, %s987_s23, %s988_s24  }
   0x4   :  { %984 = dma.done.wait [#allocation5], 256  }
   0x5   :  { %985 = vsyncadd [#allocation5], 4294967040  ;;  %vm263_vm0 = vcmask 254976   ;;  %v989_v0 = vmov 0.0   ;;  %v37_v1 = vld [vmem:[#allocation4 + $0x8] sm:$0xff]  ;;  %v36_v2 = vld [vmem:[#allocation4] sm:$0xff] }
   0x6   :  { %264 = vst.msk [vmem:[#allocation3] sm:$0x3] %vm263_vm0, %v989_v0  ;;  %66 = vmatpush.msra.mxu0 %v37_v1  ;;  %v44_v3 = vld [vmem:[%s1233_s0] sm:$0x3]  ;;  %vm48_vm1 = vcmask 130048   ;;  %93 = vmatpush.msra.mxu1 %v37_v1  ;;  %v1034_v4 = vld [vmem:[%s1235_s2 + $0x18] sm:$0xff] }
   0x7   :  { %120 = vmatpush.msra.mxu2 %v37_v1  ;;  %147 = vmatpush.msra.mxu3 %v37_v1  ;;  %v1039_v5 = vld [vmem:[%s1235_s2 + $0x10] sm:$0xff]  ;;  %v872_v6 = vld [vmem:[%s1233_s0 + $0x8] sm:$0x3]  ;;  %v1055_v8 = vld [vmem:[%s1235_s2] sm:$0xff]  ;;  %vm270_vm2 = vcmask 261120   ;;  %vm72_vm3 = vcmask 779264  }
   0x8   :  { %67 = vmatpush.msra.mxu0 %v36_v2  ;;  %94 = vmatpush.msra.mxu1 %v36_v2  ;;  %v1049_v7 = vld [vmem:[%s1235_s2 + $0x8] sm:$0xff]  ;;  %v1067_v10 = vld [vmem:[%s1236_s3] ss:$0 sm:$0xff]  ;;  %s990_s3 = smov 64   ;;  %s992_s14 = smov 32  }
   0x9   :  { %865 = vmatmul.msk.f32.vlgmr.msra.gmra.mxu0 %vm48_vm1, %v44_v3  ;;  %121 = vmatpush.msra.mxu2 %v36_v2  ;;  %v1076_v15 = vld [vmem:[%s1237_s4] ss:$0 sm:$0xff]  ;;  %s991_s4 = smov 96   ;;  %v866_v38 = vld [vmem:[%s1233_s0 + $0x2] sm:$0x3] }
   0xa   :  { %201 = vmatpush.msrb.mxu1 %v37_v1  ;;  %174 = vmatpush.msrb.mxu0 %v37_v1  ;;  %v874_v45 = vld [vmem:[%s1233_s0 + $0xa] sm:$0x3] }
   0xb   :  { %228 = vmatpush.msrb.mxu2 %v37_v1  ;;  %148 = vmatpush.msra.mxu3 %v36_v2 }
   0xc   :  { %202 = vmatpush.msrb.mxu1 %v36_v2  ;;  %175 = vmatpush.msrb.mxu0 %v36_v2 }
   0xd   :  { %229 = vmatpush.msrb.mxu2 %v36_v2  ;;  %255 = vmatpush.msrb.mxu3 %v37_v1  ;;  %v266_v9 = vld [vmem:[#allocation3] sm:$0x3] }
   0xe   :  { %286 = vmatpush.msra.mxu0 %v1034_v4  ;;  %867 = vmatmul.msk.f32.vlgmr.msra.gmra.mxu1 %vm48_vm1, %v866_v38 }
   0xf   :  { %256 = vmatpush.msrb.mxu3 %v36_v2  ;;  %359 = vmatpush.msra.mxu1 %v1034_v4 }
  0x10   :  { %287 = vmatpush.msra.mxu0 %v1039_v5 }
  0x11   :  { %873 = vmatmul.msk.f32.vlgmr.msrb.gmra.mxu0 %vm48_vm1, %v872_v6  ;;  %360 = vmatpush.msra.mxu1 %v1039_v5 }
  0x12   :  { %288 = vmatpush.msra.mxu0 %v1049_v7 }
  0x13   :  { %361 = vmatpush.msra.mxu1 %v1049_v7 }
  0x14   :  { %289 = vmatpush.msra.mxu0 %v1055_v8 }
  0x15   :  { %362 = vmatpush.msra.mxu1 %v1055_v8 }
  0x16   :  { %581 = vmatpush.msrb.mxu0 %v1034_v4  ;;  %875 = vmatmul.msk.f32.vlgmr.msrb.gmra.mxu1 %vm48_vm1, %v874_v45 }
  0x17   :  { %655 = vmatpush.msrb.mxu1 %v1034_v4 }
  0x18   :  { %582 = vmatpush.msrb.mxu0 %v1039_v5 }
  0x19   :  { %880 = vmatmul.msk.f32.vlgmr.msra.gmra.mxu0 %vm270_vm2, %v266_v9  ;;  %656 = vmatpush.msrb.mxu1 %v1039_v5 }
  0x1a   :  { %583 = vmatpush.msrb.mxu0 %v1049_v7 }
  0x1b   :  { %657 = vmatpush.msrb.mxu1 %v1049_v7 }
  0x1c   :  { %584 = vmatpush.msrb.mxu0 %v1055_v8 }
  0x1d   :  { %658 = vmatpush.msrb.mxu1 %v1055_v8 }
  0x86   :  { %v69_v11 = vpop.f32.mrf.mxu0 }
  0x87   :  { %v70_v12 = vadd.f32 %v1067_v10, %v69_v11 }
  0x89   :  { %73 = vst.msk [vmem:[#allocation2] sm:$0x3] %vm72_vm3, %v70_v12 }
  0x8b   :  { %v96_v47 = vpop.f32.mrf.mxu1 }
  0x8c   :  { %v97_v48 = vadd.f32 %v1067_v10, %v96_v47 }
  0x8e   :  { %v177_v13 = vpop.f32.mrf.mxu0  ;;  %100 = vst.msk [vmem:[#allocation2 + $0x2] sm:$0x3] %vm72_vm3, %v97_v48 }
  0x8f   :  { %v178_v14 = vadd.f32 %v1067_v10, %v177_v13 }
  0x90   :  { %v265_v18 = vld [vmem:[#allocation2] sm:$0x3] }
  0x91   :  { %181 = vst.msk [vmem:[#allocation2 + $0x8] sm:$0x3] %vm72_vm3, %v178_v14 }
  0x93   :  { %v204_v50 = vpop.f32.mrf.mxu1 }
  0x94   :  { %v205_v51 = vadd.f32 %v1067_v10, %v204_v50 }
  0x95   :  { %v342_v54 = vld [vmem:[#allocation2 + $0x2] sm:$0x3] }
  0x96   :  { %v291_v16 = vpop.f32.mrf.mxu0  ;;  %208 = vst.msk [vmem:[#allocation2 + $0xa] sm:$0x3] %vm72_vm3, %v205_v51 }
  0x97   :  { %v292_v17 = vadd.f32 %v1076_v15, %v291_v16  ;;  %v868_v16 = vld [vmem:[%s1233_s0 + $0x4] sm:$0x3] }
  0x98   :  { %869 = vmatmul.msk.f32.vlgmr.msra.gmra.mxu2 %vm48_vm1, %v868_v16 }
  0x99   :  { %315 = vrot.lane.b32.xlu0 %v292_v17, %s990_s3  ;;  %v294_v19 = vadd.f32 %v292_v17, %v265_v18  ;;  %433 = vmatpush.msra.mxu2 %v1034_v4 }
  0x9b   :  { %v881_v20 = vmul.f32 -1.442695, %v294_v19  ;;  %434 = vmatpush.msra.mxu2 %v1039_v5 }
  0x9d   :  { %912 = vpow2.f32 %v881_v20  ;;  %435 = vmatpush.msra.mxu2 %v1049_v7 }
  0x9f   :  { %436 = vmatpush.msra.mxu2 %v1055_v8 }
  0xa3   :  { %v913_v21 = vpop.eup %912 }
  0xa4   :  { %v298_v22 = vadd.f32 1.0, %v913_v21 }
  0xa6   :  { %914 = vrcp.f32 %v298_v22  ;;  %v310_v28 = vand.u32 2147483648, %v298_v22  ;;  %vm304_vm5 = vweird.f32 %v298_v22  ;;  %v308_v29 = vand.u32 2147483647, %v298_v22 }
  0xa8   :  { %v311_v31 = vor.u32 1.1754944e-38, %v310_v28  ;;  %vm309_vm7 = vcmp.eq.f32.partialorder %v308_v29, 8.507059e+37 }
  0xac   :  { %v915_v23 = vpop.eup %914 }
  0xad   :  { %v300_v24 = vmul.f32 %v915_v23, %v298_v22  ;;  %vm305_vm4 = vweird.f32 %v915_v23 }
  0xae   :  { %vm306_vm6 = vmor %vm304_vm5, %vm305_vm4 }
  0xaf   :  { %v301_v25 = vsub.f32 1.0, %v300_v24 }
  0xb1   :  { %v302_v26 = vmul.f32 %v915_v23, %v301_v25 }
  0xb3   :  { %v303_v27 = vadd.f32 %v915_v23, %v302_v26 }
  0xb5   :  { %v307_v30 = vsel %vm306_vm6, %v915_v23, %v303_v27  ;;  %v876_v23 = vld [vmem:[%s1233_s0 + $0xc] sm:$0x3] }
  0xb6   :  { %v312_v33 = vsel %vm309_vm7, %v311_v31, %v307_v30  ;;  %877 = vmatmul.msk.f32.vlgmr.msrb.gmra.mxu2 %vm48_vm1, %v876_v23 }
  0xb7   :  { %v325_v40 = vsub.f32 1.0, %v312_v33  ;;  %729 = vmatpush.msrb.mxu2 %v1034_v4 }
  0xb9   :  { %730 = vmatpush.msrb.mxu2 %v1039_v5 }
  0xbb   :  { %731 = vmatpush.msrb.mxu2 %v1049_v7 }
  0xbd   :  { %732 = vmatpush.msrb.mxu2 %v1055_v8 }
 0x10b   :  { %v316_v32 = vpop.permute.xlu0 %315 }
 0x10c   :  { %v318_v34 = vmul.f32 %v316_v32, %v312_v33 }
 0x10e   :  { %320 = vrot.lane.b32.xlu0 %v318_v34, %s990_s3 }
 0x11b   :  { %v123_v24 = vpop.f32.mrf.mxu2 }
 0x11c   :  { %v124_v25 = vadd.f32 %v1067_v10, %v123_v24 }
 0x11e   :  { %127 = vst.msk [vmem:[#allocation2 + $0x4] sm:$0x3] %vm72_vm3, %v124_v25 }
 0x125   :  { %v416_v32 = vld [vmem:[#allocation2 + $0x4] sm:$0x3] }
 0x139   :  { %v231_v28 = vpop.f32.mrf.mxu2 }
 0x13a   :  { %v232_v29 = vadd.f32 %v1067_v10, %v231_v28 }
 0x13c   :  { %235 = vst.msk [vmem:[#allocation2 + $0xc] sm:$0x3] %vm72_vm3, %v232_v29 }
 0x180   :  { %v321_v35 = vpop.permute.xlu0 %320 }
 0x181   :  { %v323_v36 = vadd.f32 %v321_v35, %v265_v18 }
 0x183   :  { %916 = vtanh.f32 %v323_v36 }
 0x189   :  { %v917_v37 = vpop.eup %916 }
 0x18a   :  { %327 = vrot.lane.b32.xlu1 %v917_v37, %s991_s4 }
 0x192   :  { %331 = vrot.lane.b32.xlu1 %v266_v9, %s992_s14 }
 0x1fc   :  { %v328_v39 = vpop.permute.xlu1 %327 }
 0x1fd   :  { %v330_v42 = vmul.f32 %v328_v39, %v325_v40 }
 0x204   :  { %v332_v41 = vpop.permute.xlu1 %331 }
 0x205   :  { %v334_v43 = vmul.f32 %v332_v41, %v312_v33 }
 0x207   :  { %v335_v44 = vadd.f32 %v334_v43, %v330_v42 }
 0x209   :  { %337 = vrot.lane.b32.xlu2 %v335_v44, %s991_s4 }
 0x263   :  { %v338_v46 = vpop.permute.xlu2 %337 }
 0x264   :  { %340 = vst.msk [vmem:[#allocation3] sm:$0x3] %vm263_vm0, %v338_v46 }
 0x265   :  { %341 = vst.msk [vmem:[%s1238_s5] sm:$0x3] %vm263_vm0, %v338_v46 }
 0x26b   :  { %v343_v49 = vld [vmem:[#allocation3] sm:$0x3] }
 0x26c   :  { %882 = vmatmul.msk.f32.vlgmr.msra.gmra.mxu1 %vm270_vm2, %v343_v49 }
 0x2e9   :  { %v364_v52 = vpop.f32.mrf.mxu1 }
 0x2ea   :  { %v365_v53 = vadd.f32 %v1076_v15, %v364_v52  ;;  %v870_v52 = vld [vmem:[%s1233_s0 + $0x6] sm:$0x3] }
 0x2eb   :  { %871 = vmatmul.msk.f32.vlgmr.msra.gmra.mxu3 %vm48_vm1, %v870_v52 }
 0x2ec   :  { %388 = vrot.lane.b32.xlu2 %v365_v53, %s990_s3  ;;  %v367_v55 = vadd.f32 %v365_v53, %v342_v54  ;;  %507 = vmatpush.msra.mxu3 %v1034_v4 }
 0x2ee   :  { %v883_v56 = vmul.f32 -1.442695, %v367_v55  ;;  %508 = vmatpush.msra.mxu3 %v1039_v5 }
 0x2f0   :  { %918 = vpow2.f32 %v883_v56  ;;  %509 = vmatpush.msra.mxu3 %v1049_v7 }
 0x2f2   :  { %510 = vmatpush.msra.mxu3 %v1055_v8 }
 0x2f4   :  { %404 = vrot.lane.b32.xlu2 %v343_v49, %s992_s14 }
 0x2f6   :  { %v919_v57 = vpop.eup %918 }
 0x2f7   :  { %v371_v58 = vadd.f32 1.0, %v919_v57 }
 0x2f9   :  { %920 = vrcp.f32 %v371_v58  ;;  %v383_v0 = vand.u32 2147483648, %v371_v58  ;;  %vm377_vm9 = vweird.f32 %v371_v58  ;;  %v381_v1 = vand.u32 2147483647, %v371_v58 }
 0x2fb   :  { %v384_v3 = vor.u32 1.1754944e-38, %v383_v0  ;;  %vm382_vm11 = vcmp.eq.f32.partialorder %v381_v1, 8.507059e+37 }
 0x2ff   :  { %v921_v59 = vpop.eup %920 }
 0x300   :  { %v373_v60 = vmul.f32 %v921_v59, %v371_v58  ;;  %vm378_vm8 = vweird.f32 %v921_v59 }
 0x301   :  { %vm379_vm10 = vmor %vm377_vm9, %vm378_vm8 }
 0x302   :  { %v374_v61 = vsub.f32 1.0, %v373_v60 }
 0x304   :  { %v375_v62 = vmul.f32 %v921_v59, %v374_v61 }
 0x306   :  { %v376_v63 = vadd.f32 %v921_v59, %v375_v62 }
 0x308   :  { %v380_v2 = vsel %vm379_vm10, %v921_v59, %v376_v63  ;;  %v878_v59 = vld [vmem:[%s1233_s0 + $0xe] sm:$0x3] }
 0x309   :  { %v385_v9 = vsel %vm382_vm11, %v384_v3, %v380_v2  ;;  %879 = vmatmul.msk.f32.vlgmr.msrb.gmra.mxu3 %vm48_vm1, %v878_v59 }
 0x30a   :  { %v398_v18 = vsub.f32 1.0, %v385_v9  ;;  %803 = vmatpush.msrb.mxu3 %v1034_v4 }
 0x30c   :  { %804 = vmatpush.msrb.mxu3 %v1039_v5 }
 0x30e   :  { %805 = vmatpush.msrb.mxu3 %v1049_v7 }
 0x310   :  { %806 = vmatpush.msrb.mxu3 %v1055_v8 }
 0x346   :  { %v389_v6 = vpop.permute.xlu2 %388 }
 0x347   :  { %v391_v11 = vmul.f32 %v389_v6, %v385_v9 }
 0x349   :  { %393 = vrot.lane.b32.xlu0 %v391_v11, %s990_s3 }
 0x34e   :  { %v405_v17 = vpop.permute.xlu2 %404 }
 0x34f   :  { %v407_v20 = vmul.f32 %v405_v17, %v385_v9 }
 0x36e   :  { %v150_v62 = vpop.f32.mrf.mxu3 }
 0x36f   :  { %v151_v4 = vadd.f32 %v1067_v10, %v150_v62 }
 0x371   :  { %154 = vst.msk [vmem:[#allocation2 + $0x6] sm:$0x3] %vm72_vm3, %v151_v4 }
 0x378   :  { %v490_v0 = vld [vmem:[#allocation2 + $0x6] sm:$0x3] }
 0x38c   :  { %v258_v5 = vpop.f32.mrf.mxu3 }
 0x38d   :  { %v259_v7 = vadd.f32 %v1067_v10, %v258_v5 }
 0x38f   :  { %262 = vst.msk [vmem:[#allocation2 + $0xe] sm:$0x3] %vm72_vm3, %v259_v7  ;;  %v638_v7 = vld [vmem:[#allocation2 + $0xa] sm:$0x3] }
 0x3bb   :  { %v394_v12 = vpop.permute.xlu0 %393 }
 0x3bc   :  { %v396_v13 = vadd.f32 %v394_v12, %v342_v54 }
 0x3be   :  { %922 = vtanh.f32 %v396_v13 }
 0x3c4   :  { %v923_v14 = vpop.eup %922 }
 0x3c5   :  { %400 = vrot.lane.b32.xlu1 %v923_v14, %s991_s4 }
 0x437   :  { %v401_v19 = vpop.permute.xlu1 %400 }
 0x438   :  { %v403_v21 = vmul.f32 %v401_v19, %v398_v18 }
 0x43a   :  { %v408_v22 = vadd.f32 %v407_v20, %v403_v21 }
 0x43c   :  { %410 = vrot.lane.b32.xlu0 %v408_v22, %s991_s4 }
 0x4ae   :  { %v411_v26 = vpop.permute.xlu0 %410 }
 0x4af   :  { %413 = vst.msk [vmem:[#allocation3] sm:$0x3] %vm263_vm0, %v411_v26 }
 0x4b0   :  { %884 = vst.msk [vmem:[%s1238_s5 + $0x2] sm:$0x3] %vm263_vm0, %v411_v26 }
 0x4b6   :  { %v417_v27 = vld [vmem:[#allocation3] sm:$0x3] }
 0x4b7   :  { %885 = vmatmul.msk.f32.vlgmr.msra.gmra.mxu2 %vm270_vm2, %v417_v27 }
 0x53a   :  { %v438_v30 = vpop.f32.mrf.mxu2 }
 0x53b   :  { %v439_v31 = vadd.f32 %v1076_v15, %v438_v30 }
 0x53d   :  { %462 = vrot.lane.b32.xlu1 %v439_v31, %s990_s3  ;;  %v441_v33 = vadd.f32 %v439_v31, %v416_v32 }
 0x53f   :  { %v886_v34 = vmul.f32 -1.442695, %v441_v33 }
 0x541   :  { %924 = vpow2.f32 %v886_v34 }
 0x545   :  { %478 = vrot.lane.b32.xlu1 %v417_v27, %s992_s14 }
 0x547   :  { %v925_v35 = vpop.eup %924 }
 0x548   :  { %v445_v36 = vadd.f32 1.0, %v925_v35  ;;  %v564_v35 = vld [vmem:[#allocation2 + $0x8] sm:$0x3] }
 0x54a   :  { %926 = vrcp.f32 %v445_v36  ;;  %v457_v42 = vand.u32 2147483648, %v445_v36  ;;  %vm451_vm13 = vweird.f32 %v445_v36  ;;  %v455_v43 = vand.u32 2147483647, %v445_v36 }
 0x54c   :  { %v458_v45 = vor.u32 1.1754944e-38, %v457_v42  ;;  %vm456_vm15 = vcmp.eq.f32.partialorder %v455_v43, 8.507059e+37 }
 0x550   :  { %v927_v37 = vpop.eup %926 }
 0x551   :  { %v447_v38 = vmul.f32 %v927_v37, %v445_v36  ;;  %vm452_vm12 = vweird.f32 %v927_v37 }
 0x552   :  { %vm453_vm14 = vmor %vm451_vm13, %vm452_vm12 }
 0x553   :  { %v448_v39 = vsub.f32 1.0, %v447_v38 }
 0x555   :  { %v449_v40 = vmul.f32 %v927_v37, %v448_v39 }
 0x557   :  { %v450_v41 = vadd.f32 %v927_v37, %v449_v40 }
 0x559   :  { %v454_v44 = vsel %vm453_vm14, %v927_v37, %v450_v41 }
 0x55a   :  { %v459_v47 = vsel %vm456_vm15, %v458_v45, %v454_v44 }
 0x55b   :  { %v472_v54 = vsub.f32 1.0, %v459_v47 }
 0x5af   :  { %v463_v46 = vpop.permute.xlu1 %462 }
 0x5b0   :  { %v465_v48 = vmul.f32 %v463_v46, %v459_v47 }
 0x5b2   :  { %467 = vrot.lane.b32.xlu2 %v465_v48, %s990_s3 }
 0x5b7   :  { %v479_v53 = vpop.permute.xlu1 %478 }
 0x5b8   :  { %v481_v56 = vmul.f32 %v479_v53, %v459_v47 }
 0x60c   :  { %v468_v49 = vpop.permute.xlu2 %467 }
 0x60d   :  { %v470_v50 = vadd.f32 %v468_v49, %v416_v32 }
 0x60f   :  { %928 = vtanh.f32 %v470_v50 }
 0x615   :  { %v929_v51 = vpop.eup %928 }
 0x616   :  { %474 = vrot.lane.b32.xlu0 %v929_v51, %s991_s4 }
 0x688   :  { %v475_v55 = vpop.permute.xlu0 %474 }
 0x689   :  { %v477_v57 = vmul.f32 %v475_v55, %v472_v54 }
 0x68b   :  { %v482_v58 = vadd.f32 %v481_v56, %v477_v57 }
 0x68d   :  { %484 = vrot.lane.b32.xlu2 %v482_v58, %s991_s4 }
 0x6e7   :  { %v485_v60 = vpop.permute.xlu2 %484 }
 0x6e8   :  { %487 = vst.msk [vmem:[#allocation3] sm:$0x3] %vm263_vm0, %v485_v60 }
 0x6e9   :  { %887 = vst.msk [vmem:[%s1238_s5 + $0x4] sm:$0x3] %vm263_vm0, %v485_v60 }
 0x6ef   :  { %v491_v61 = vld [vmem:[#allocation3] sm:$0x3] }
 0x6f0   :  { %888 = vmatmul.msk.f32.vlgmr.msra.gmra.mxu3 %vm270_vm2, %v491_v61 }
 0x773   :  { %v512_v8 = vpop.f32.mrf.mxu3 }
 0x774   :  { %v513_v63 = vadd.f32 %v1076_v15, %v512_v8 }
 0x776   :  { %536 = vrot.lane.b32.xlu0 %v513_v63, %s990_s3  ;;  %v515_v1 = vadd.f32 %v513_v63, %v490_v0 }
 0x778   :  { %v889_v2 = vmul.f32 -1.442695, %v515_v1 }
 0x77a   :  { %930 = vpow2.f32 %v889_v2 }
 0x77e   :  { %552 = vrot.lane.b32.xlu0 %v491_v61, %s992_s14 }
 0x780   :  { %v931_v3 = vpop.eup %930 }
 0x781   :  { %v519_v6 = vadd.f32 1.0, %v931_v3 }
 0x783   :  { %932 = vrcp.f32 %v519_v6  ;;  %v531_v14 = vand.u32 2147483648, %v519_v6  ;;  %vm525_vm3 = vweird.f32 %v519_v6  ;;  %v529_v16 = vand.u32 2147483647, %v519_v6 }
 0x785   :  { %v532_v18 = vor.u32 1.1754944e-38, %v531_v14  ;;  %vm530_vm5 = vcmp.eq.f32.partialorder %v529_v16, 8.507059e+37 }
 0x789   :  { %v933_v9 = vpop.eup %932 }
 0x78a   :  { %v521_v11 = vmul.f32 %v933_v9, %v519_v6  ;;  %vm526_vm1 = vweird.f32 %v933_v9 }
 0x78b   :  { %vm527_vm4 = vmor %vm525_vm3, %vm526_vm1 }
 0x78c   :  { %v522_v12 = vsub.f32 1.0, %v521_v11 }
 0x78e   :  { %v523_v10 = vmul.f32 %v933_v9, %v522_v12 }
 0x790   :  { %v524_v13 = vadd.f32 %v933_v9, %v523_v10 }
 0x792   :  { %v528_v17 = vsel %vm527_vm4, %v933_v9, %v524_v13 }
 0x793   :  { %v533_v20 = vsel %vm530_vm5, %v532_v18, %v528_v17 }
 0x794   :  { %v546_v26 = vsub.f32 1.0, %v533_v20 }
 0x7e8   :  { %v537_v19 = vpop.permute.xlu0 %536 }
 0x7e9   :  { %v539_v21 = vmul.f32 %v537_v19, %v533_v20 }
 0x7eb   :  { %541 = vrot.lane.b32.xlu1 %v539_v21, %s990_s3 }
 0x7f0   :  { %v553_v25 = vpop.permute.xlu0 %552 }
 0x7f1   :  { %v555_v28 = vmul.f32 %v553_v25, %v533_v20 }
 0x85d   :  { %v542_v22 = vpop.permute.xlu1 %541 }
 0x85e   :  { %v544_v23 = vadd.f32 %v542_v22, %v490_v0 }
 0x860   :  { %934 = vtanh.f32 %v544_v23 }
 0x866   :  { %v935_v24 = vpop.eup %934 }
 0x867   :  { %548 = vrot.lane.b32.xlu2 %v935_v24, %s991_s4 }
 0x8c1   :  { %v549_v27 = vpop.permute.xlu2 %548 }
 0x8c2   :  { %v551_v29 = vmul.f32 %v549_v27, %v546_v26 }
 0x8c4   :  { %v556_v30 = vadd.f32 %v555_v28, %v551_v29 }
 0x8c6   :  { %558 = vrot.lane.b32.xlu1 %v556_v30, %s991_s4 }
 0x938   :  { %v559_v31 = vpop.permute.xlu1 %558 }
 0x939   :  { %561 = vst.msk [vmem:[#allocation3] sm:$0x3] %vm263_vm0, %v559_v31 }
 0x93a   :  { %890 = vst.msk [vmem:[%s1238_s5 + $0x6] sm:$0x3] %vm263_vm0, %v559_v31 }
 0x940   :  { %v565_v32 = vld [vmem:[#allocation3] sm:$0x3] }
 0x941   :  { %891 = vmatmul.msk.f32.vlgmr.msrb.gmra.mxu0 %vm270_vm2, %v565_v32 }
 0x9be   :  { %v586_v33 = vpop.f32.mrf.mxu0 }
 0x9bf   :  { %v587_v34 = vadd.f32 %v1076_v15, %v586_v33 }
 0x9c1   :  { %610 = vrot.lane.b32.xlu2 %v587_v34, %s990_s3  ;;  %v589_v36 = vadd.f32 %v587_v34, %v564_v35 }
 0x9c3   :  { %v892_v37 = vmul.f32 -1.442695, %v589_v36 }
 0x9c5   :  { %936 = vpow2.f32 %v892_v37 }
 0x9c9   :  { %626 = vrot.lane.b32.xlu2 %v565_v32, %s992_s14  ;;  %v712_v32 = vld [vmem:[#allocation2 + $0xc] sm:$0x3] }
 0x9cb   :  { %v937_v38 = vpop.eup %936 }
 0x9cc   :  { %v593_v39 = vadd.f32 1.0, %v937_v38 }
 0x9ce   :  { %938 = vrcp.f32 %v593_v39  ;;  %v605_v45 = vand.u32 2147483648, %v593_v39  ;;  %vm599_vm7 = vweird.f32 %v593_v39  ;;  %v603_v46 = vand.u32 2147483647, %v593_v39 }
 0x9d0   :  { %v606_v48 = vor.u32 1.1754944e-38, %v605_v45  ;;  %vm604_vm9 = vcmp.eq.f32.partialorder %v603_v46, 8.507059e+37 }
 0x9d4   :  { %v939_v40 = vpop.eup %938 }
 0x9d5   :  { %v595_v41 = vmul.f32 %v939_v40, %v593_v39  ;;  %vm600_vm6 = vweird.f32 %v939_v40 }
 0x9d6   :  { %vm601_vm8 = vmor %vm599_vm7, %vm600_vm6 }
 0x9d7   :  { %v596_v42 = vsub.f32 1.0, %v595_v41 }
 0x9d9   :  { %v597_v43 = vmul.f32 %v939_v40, %v596_v42 }
 0x9db   :  { %v598_v44 = vadd.f32 %v939_v40, %v597_v43 }
 0x9dd   :  { %v602_v47 = vsel %vm601_vm8, %v939_v40, %v598_v44 }
 0x9de   :  { %v607_v50 = vsel %vm604_vm9, %v606_v48, %v602_v47 }
 0x9df   :  { %v620_v56 = vsub.f32 1.0, %v607_v50 }
 0xa1b   :  { %v611_v49 = vpop.permute.xlu2 %610 }
 0xa1c   :  { %v613_v51 = vmul.f32 %v611_v49, %v607_v50 }
 0xa1e   :  { %615 = vrot.lane.b32.xlu0 %v613_v51, %s990_s3 }
 0xa23   :  { %v627_v55 = vpop.permute.xlu2 %626 }
 0xa24   :  { %v629_v58 = vmul.f32 %v627_v55, %v607_v50 }
 0xa90   :  { %v616_v52 = vpop.permute.xlu0 %615 }
 0xa91   :  { %v618_v53 = vadd.f32 %v616_v52, %v564_v35 }
 0xa93   :  { %940 = vtanh.f32 %v618_v53 }
 0xa99   :  { %v941_v54 = vpop.eup %940 }
 0xa9a   :  { %622 = vrot.lane.b32.xlu1 %v941_v54, %s991_s4 }
 0xb0c   :  { %v623_v57 = vpop.permute.xlu1 %622 }
 0xb0d   :  { %v625_v59 = vmul.f32 %v623_v57, %v620_v56 }
 0xb0f   :  { %v630_v60 = vadd.f32 %v629_v58, %v625_v59 }
 0xb11   :  { %632 = vrot.lane.b32.xlu0 %v630_v60, %s991_s4 }
 0xb83   :  { %v633_v61 = vpop.permute.xlu0 %632 }
 0xb84   :  { %635 = vst.msk [vmem:[#allocation3] sm:$0x3] %vm263_vm0, %v633_v61 }
 0xb85   :  { %893 = vst.msk [vmem:[%s1238_s5 + $0x8] sm:$0x3] %vm263_vm0, %v633_v61 }
 0xb8b   :  { %v639_v62 = vld [vmem:[#allocation3] sm:$0x3] }
 0xb8c   :  { %894 = vmatmul.msk.f32.vlgmr.msrb.gmra.mxu1 %vm270_vm2, %v639_v62 }
 0xc09   :  { %v660_v4 = vpop.f32.mrf.mxu1 }
 0xc0a   :  { %v661_v5 = vadd.f32 %v1076_v15, %v660_v4 }
 0xc0c   :  { %684 = vrot.lane.b32.xlu1 %v661_v5, %s990_s3  ;;  %v663_v8 = vadd.f32 %v661_v5, %v638_v7 }
 0xc0e   :  { %v895_v63 = vmul.f32 -1.442695, %v663_v8 }
 0xc10   :  { %942 = vpow2.f32 %v895_v63 }
 0xc14   :  { %700 = vrot.lane.b32.xlu1 %v639_v62, %s992_s14  ;;  %v786_v62 = vld [vmem:[#allocation2 + $0xe] sm:$0x3] }
 0xc16   :  { %v943_v0 = vpop.eup %942 }
 0xc17   :  { %v667_v1 = vadd.f32 1.0, %v943_v0 }
 0xc19   :  { %944 = vrcp.f32 %v667_v1  ;;  %v679_v12 = vand.u32 2147483648, %v667_v1  ;;  %vm673_vm11 = vweird.f32 %v667_v1  ;;  %v677_v10 = vand.u32 2147483647, %v667_v1 }
 0xc1b   :  { %v680_v14 = vor.u32 1.1754944e-38, %v679_v12  ;;  %vm678_vm13 = vcmp.eq.f32.partialorder %v677_v10, 8.507059e+37 }
 0xc1f   :  { %v945_v2 = vpop.eup %944 }
 0xc20   :  { %v669_v3 = vmul.f32 %v945_v2, %v667_v1  ;;  %vm674_vm10 = vweird.f32 %v945_v2 }
 0xc21   :  { %vm675_vm12 = vmor %vm673_vm11, %vm674_vm10 }
 0xc22   :  { %v670_v6 = vsub.f32 1.0, %v669_v3 }
 0xc24   :  { %v671_v9 = vmul.f32 %v945_v2, %v670_v6 }
 0xc26   :  { %v672_v11 = vadd.f32 %v945_v2, %v671_v9 }
 0xc28   :  { %v676_v13 = vsel %vm675_vm12, %v945_v2, %v672_v11 }
 0xc29   :  { %v681_v17 = vsel %vm678_vm13, %v680_v14, %v676_v13 }
 0xc2a   :  { %v694_v23 = vsub.f32 1.0, %v681_v17 }
 0xc7e   :  { %v685_v16 = vpop.permute.xlu1 %684 }
 0xc7f   :  { %v687_v18 = vmul.f32 %v685_v16, %v681_v17 }
 0xc81   :  { %689 = vrot.lane.b32.xlu2 %v687_v18, %s990_s3 }
 0xc86   :  { %v701_v22 = vpop.permute.xlu1 %700 }
 0xc87   :  { %v703_v25 = vmul.f32 %v701_v22, %v681_v17 }
 0xcdb   :  { %v690_v19 = vpop.permute.xlu2 %689 }
 0xcdc   :  { %v692_v20 = vadd.f32 %v690_v19, %v638_v7 }
 0xcde   :  { %946 = vtanh.f32 %v692_v20 }
 0xce4   :  { %v947_v21 = vpop.eup %946 }
 0xce5   :  { %696 = vrot.lane.b32.xlu0 %v947_v21, %s991_s4 }
 0xd57   :  { %v697_v24 = vpop.permute.xlu0 %696 }
 0xd58   :  { %v699_v26 = vmul.f32 %v697_v24, %v694_v23 }
 0xd5a   :  { %v704_v27 = vadd.f32 %v703_v25, %v699_v26 }
 0xd5c   :  { %706 = vrot.lane.b32.xlu2 %v704_v27, %s991_s4 }
 0xdb6   :  { %v707_v28 = vpop.permute.xlu2 %706 }
 0xdb7   :  { %709 = vst.msk [vmem:[#allocation3] sm:$0x3] %vm263_vm0, %v707_v28 }
 0xdb8   :  { %896 = vst.msk [vmem:[%s1238_s5 + $0xa] sm:$0x3] %vm263_vm0, %v707_v28 }
 0xdbe   :  { %v713_v29 = vld [vmem:[#allocation3] sm:$0x3] }
 0xdbf   :  { %897 = vmatmul.msk.f32.vlgmr.msrb.gmra.mxu2 %vm270_vm2, %v713_v29 }
 0xe42   :  { %v734_v30 = vpop.f32.mrf.mxu2 }
 0xe43   :  { %v735_v31 = vadd.f32 %v1076_v15, %v734_v30 }
 0xe45   :  { %758 = vrot.lane.b32.xlu0 %v735_v31, %s990_s3  ;;  %v737_v33 = vadd.f32 %v735_v31, %v712_v32 }
 0xe47   :  { %v898_v34 = vmul.f32 -1.442695, %v737_v33 }
 0xe49   :  { %948 = vpow2.f32 %v898_v34 }
 0xe4d   :  { %774 = vrot.lane.b32.xlu0 %v713_v29, %s992_s14 }
 0xe4f   :  { %v949_v35 = vpop.eup %948 }
 0xe50   :  { %v741_v36 = vadd.f32 1.0, %v949_v35 }
 0xe52   :  { %950 = vrcp.f32 %v741_v36  ;;  %v753_v42 = vand.u32 2147483648, %v741_v36  ;;  %vm747_vm15 = vweird.f32 %v741_v36  ;;  %v751_v43 = vand.u32 2147483647, %v741_v36 }
 0xe54   :  { %v754_v45 = vor.u32 1.1754944e-38, %v753_v42  ;;  %vm752_vm3 = vcmp.eq.f32.partialorder %v751_v43, 8.507059e+37 }
 0xe58   :  { %v951_v37 = vpop.eup %950 }
 0xe59   :  { %v743_v38 = vmul.f32 %v951_v37, %v741_v36  ;;  %vm748_vm14 = vweird.f32 %v951_v37 }
 0xe5a   :  { %vm749_vm1 = vmor %vm747_vm15, %vm748_vm14 }
 0xe5b   :  { %v744_v39 = vsub.f32 1.0, %v743_v38 }
 0xe5d   :  { %v745_v40 = vmul.f32 %v951_v37, %v744_v39 }
 0xe5f   :  { %v746_v41 = vadd.f32 %v951_v37, %v745_v40 }
 0xe61   :  { %v750_v44 = vsel %vm749_vm1, %v951_v37, %v746_v41 }
 0xe62   :  { %v755_v47 = vsel %vm752_vm3, %v754_v45, %v750_v44 }
 0xe63   :  { %v768_v53 = vsub.f32 1.0, %v755_v47 }
 0xeb7   :  { %v759_v46 = vpop.permute.xlu0 %758 }
 0xeb8   :  { %v761_v48 = vmul.f32 %v759_v46, %v755_v47 }
 0xeba   :  { %763 = vrot.lane.b32.xlu1 %v761_v48, %s990_s3 }
 0xebf   :  { %v775_v52 = vpop.permute.xlu0 %774 }
 0xec0   :  { %v777_v55 = vmul.f32 %v775_v52, %v755_v47 }
 0xf2c   :  { %v764_v49 = vpop.permute.xlu1 %763 }
 0xf2d   :  { %v766_v50 = vadd.f32 %v764_v49, %v712_v32 }
 0xf2f   :  { %952 = vtanh.f32 %v766_v50 }
 0xf35   :  { %v953_v51 = vpop.eup %952 }
 0xf36   :  { %770 = vrot.lane.b32.xlu2 %v953_v51, %s991_s4 }
 0xf90   :  { %v771_v54 = vpop.permute.xlu2 %770 }
 0xf91   :  { %v773_v56 = vmul.f32 %v771_v54, %v768_v53 }
 0xf93   :  { %v778_v57 = vadd.f32 %v777_v55, %v773_v56 }
 0xf95   :  { %780 = vrot.lane.b32.xlu1 %v778_v57, %s991_s4 }
0x1007   :  { %v781_v58 = vpop.permute.xlu1 %780 }
0x1008   :  { %783 = vst.msk [vmem:[#allocation3] sm:$0x3] %vm263_vm0, %v781_v58 }
0x1009   :  { %899 = vst.msk [vmem:[%s1238_s5 + $0xc] sm:$0x3] %vm263_vm0, %v781_v58 }
0x100f   :  { %v787_v59 = vld [vmem:[#allocation3] sm:$0x3] }
0x1010   :  { %900 = vmatmul.msk.f32.vlgmr.msrb.gmra.mxu3 %vm270_vm2, %v787_v59 }
0x1093   :  { %v808_v60 = vpop.f32.mrf.mxu3 }
0x1094   :  { %v809_v61 = vadd.f32 %v1076_v15, %v808_v60 }
0x1096   :  { %832 = vrot.lane.b32.xlu2 %v809_v61, %s990_s3  ;;  %v811_v4 = vadd.f32 %v809_v61, %v786_v62 }
0x1098   :  { %v901_v5 = vmul.f32 -1.442695, %v811_v4 }
0x109a   :  { %954 = vpow2.f32 %v901_v5 }
0x109e   :  { %848 = vrot.lane.b32.xlu2 %v787_v59, %s992_s14 }
0x10a0   :  { %v955_v7 = vpop.eup %954 }
0x10a1   :  { %v815_v8 = vadd.f32 1.0, %v955_v7 }
0x10a3   :  { %956 = vrcp.f32 %v815_v8  ;;  %v827_v6 = vand.u32 2147483648, %v815_v8  ;;  %vm821_vm4 = vweird.f32 %v815_v8  ;;  %v825_v15 = vand.u32 2147483647, %v815_v8 }
0x10a5   :  { %v828_v11 = vor.u32 1.1754944e-38, %v827_v6  ;;  %vm826_vm6 = vcmp.eq.f32.partialorder %v825_v15, 8.507059e+37 }
0x10a9   :  { %v957_v63 = vpop.eup %956 }
0x10aa   :  { %v817_v0 = vmul.f32 %v957_v63, %v815_v8  ;;  %vm822_vm2 = vweird.f32 %v957_v63 }
0x10ab   :  { %vm823_vm5 = vmor %vm821_vm4, %vm822_vm2 }
0x10ac   :  { %v818_v1 = vsub.f32 1.0, %v817_v0 }
0x10ae   :  { %v819_v2 = vmul.f32 %v957_v63, %v818_v1 }
0x10b0   :  { %v820_v3 = vadd.f32 %v957_v63, %v819_v2 }
0x10b2   :  { %v824_v9 = vsel %vm823_vm5, %v957_v63, %v820_v3 }
0x10b3   :  { %v829_v10 = vsel %vm826_vm6, %v828_v11, %v824_v9 }
0x10b4   :  { %v842_v19 = vsub.f32 1.0, %v829_v10 }
0x10f0   :  { %v833_v12 = vpop.permute.xlu2 %832 }
0x10f1   :  { %v835_v13 = vmul.f32 %v833_v12, %v829_v10 }
0x10f3   :  { %837 = vrot.lane.b32.xlu0 %v835_v13, %s990_s3 }
0x10f8   :  { %v849_v18 = vpop.permute.xlu2 %848 }
0x10f9   :  { %v851_v21 = vmul.f32 %v849_v18, %v829_v10 }
0x1165   :  { %v838_v14 = vpop.permute.xlu0 %837 }
0x1166   :  { %v840_v16 = vadd.f32 %v838_v14, %v786_v62 }
0x1168   :  { %958 = vtanh.f32 %v840_v16 }
0x116e   :  { %v959_v17 = vpop.eup %958 }
0x116f   :  { %844 = vrot.lane.b32.xlu1 %v959_v17, %s991_s4 }
0x11e1   :  { %v845_v20 = vpop.permute.xlu1 %844 }
0x11e2   :  { %v847_v22 = vmul.f32 %v845_v20, %v842_v19 }
0x11e4   :  { %v852_v23 = vadd.f32 %v851_v21, %v847_v22 }
0x11e6   :  { %854 = vrot.lane.b32.xlu0 %v852_v23, %s991_s4 }
0x1258   :  { %v855_v24 = vpop.permute.xlu0 %854 }
0x1259   :  { %857 = vst.msk [vmem:[#allocation3] sm:$0x3] %vm263_vm0, %v855_v24 }
0x125a   :  { %902 = vst.msk [vmem:[%s1238_s5 + $0xe] sm:$0x3] %vm263_vm0, %v855_v24 }
0x125b   :  { %864 = vsyncpa [#allocation5], 1 }

</bundles_post_ra>
